<compile_context>
chip_gen: v6e
topology: v6e:2x2x1
jax: 0.10.0
libtpu: 0.0.40
codegen_flags: <defaults>
</compile_context>

<pallas_src>
import itertools

import numpy as np
import jax
import jax.numpy as jnp
from jax.experimental import pallas as pl
from jax.experimental.pallas import tpu as pltpu


# ----------------------------- problem sizes --------------------------------
BATCH = 2
P = 4              # features per constituent (len(params))
N = 8              # n_constituents
NR = N * (N - 1)   # 56 real directed edges (reference enumeration)
HIDDEN = 32
DE = 8
DO = 8
N_TARGETS = 5

PPAD = 16          # padded object-feature width (P + De = 12 -> 16, 8-aligned)
OUT_PAD = 128      # lane-dense classifier output; wrapper slices N_TARGETS
SLAB_LANES = 128
NSLOT = N * N      # 64 edge slots per sample (self-pairs masked) -> strides of 8
TB_DEFAULT = 8     # samples per grid step; raise to 32-128 for large batches

# Operand storage dtype.  Keep f32 so the correctness check is exact; on
# v6e/v7x set to jnp.bfloat16 (halves HBM/VMEM, MXU-native) -- accumulation
# stays f32 via preferred_element_type in every dot.
W_DTYPE = jnp.float32

# ----------------------- packed weight/bias slab layout ----------------------
# (name, din_padded, dout) -- every din is a multiple of 8 so all slab row
# slices are 8-aligned.  fr1 is split into receiver/sender halves (factored
# fr1); fr3's De outputs are placed in lanes [P, P+De) so obj_in is a plain
# add; "oflat" is the constant (Do, N*Do) tile matrix for the flatten.
_LAYERS = (
    ("fr1r", PPAD,        HIDDEN),
    ("fr1s", PPAD,        HIDDEN),
    ("fr2",  HIDDEN,      HIDDEN // 2),
    ("fr3",  HIDDEN // 2, PPAD),
    ("fo1",  PPAD,        HIDDEN),
    ("fo2",  HIDDEN,      HIDDEN // 2),
    ("fo3",  HIDDEN // 2, DO),
    ("oflat", DO,         N * DO),
    ("fc1",  N * DO,      HIDDEN),
    ("fc2",  HIDDEN,      HIDDEN // 2),
    ("fc3",  HIDDEN // 2, OUT_PAD),
)
_LAYER_DIMS = {name: (din, dout) for name, din, dout in _LAYERS}
_W_OFF = {}
_off = 0
for _name, _din, _dout in _LAYERS:
    _W_OFF[_name] = _off
    _off += _din                      # all din are multiples of 8 -> aligned
_W_ROWS = _off                        # 264
_B_ROW = {name: 8 * i for i, (name, _, _) in enumerate(_LAYERS)}
_B_ROWS = 8 * len(_LAYERS)            # 88


def build_slabs(params):
    """Pack all nn.Linear weights (pre-transposed to (in,out)) and biases into
    one weight slab and one bias slab (plus the constant flatten tile matrix)."""
    w = np.zeros((_W_ROWS, SLAB_LANES), np.float32)
    bsl = np.zeros((_B_ROWS, SLAB_LANES), np.float32)

    def put(name, wmat, bvec=None, col0=0):
        wmat = np.asarray(wmat, np.float32)
        off = _W_OFF[name]
        w[off:off + wmat.shape[0], col0:col0 + wmat.shape[1]] = wmat
        if bvec is not None:
            bvec = np.asarray(bvec, np.float32)
            bsl[_B_ROW[name], col0:col0 + bvec.shape[0]] = bvec

    fr1w = np.asarray(params["fr1_w"], np.float32).T          # (2P, hidden)
    put("fr1r", fr1w[:P], params["fr1_b"])                     # bias added once here
    put("fr1s", fr1w[P:])
    put("fr2", np.asarray(params["fr2_w"]).T, params["fr2_b"])
    put("fr3", np.asarray(params["fr3_w"]).T, params["fr3_b"], col0=P)
    put("fo1", np.asarray(params["fo1_w"]).T, params["fo1_b"])
    put("fo2", np.asarray(params["fo2_w"]).T, params["fo2_b"])
    put("fo3", np.asarray(params["fo3_w"]).T, params["fo3_b"])
    tile = np.zeros((DO, N * DO), np.float32)                  # flatten tile matrix
    for d in range(DO):
        tile[d, d::DO] = 1.0
    put("oflat", tile)
    put("fc1", np.asarray(params["fc1_w"]).T, params["fc1_b"])
    put("fc2", np.asarray(params["fc2_w"]).T, params["fc2_b"])
    put("fc3", np.asarray(params["fc3_w"]).T, params["fc3_b"])
    return jnp.asarray(w, W_DTYPE), jnp.asarray(bsl, jnp.float32)


def build_block_masks(tb):
    """Hoisted constants (same for every grid step, VMEM-resident).

    self_mask (tb*N*N, PPAD): zero for self-pair edge slots (r == s).
    lane_mask (tb*N, N*DO):   selects lane group n for object row n (flatten)."""
    m = np.arange(tb * NSLOT)
    r = (m // N) % N
    s = m % N
    self_mask = (r != s).astype(np.float32)[:, None] * np.ones((1, PPAD), np.float32)

    k = np.arange(tb * N)
    c = np.arange(N * DO)
    lane_mask = ((c[None, :] // DO) == (k[:, None] % N)).astype(np.float32)
    return jnp.asarray(self_mask), jnp.asarray(lane_mask)


# ------------------------------- the kernel ---------------------------------
def gnn_kernel(x_ref, smask_ref, lmask_ref, w_ref, b_ref, out_ref):
    f32 = jnp.float32
    tb_n = x_ref.shape[0]            # tb * N object rows in this block
    tb = out_ref.shape[0]            # tb samples in this block

    def dense(x, name, act=True):
        din, dout = _LAYER_DIMS[name]
        off = _W_OFF[name]
        w = w_ref[off:off + din, 0:dout]
        bb = b_ref[_B_ROW[name]:_B_ROW[name] + 1, 0:dout].astype(f32)
        y = jnp.dot(x.astype(w.dtype), w, preferred_element_type=f32) + bb
        return jnp.maximum(y, 0.0) if act else y

    # ---- relational (edge) MLP -------------------------------------------------
    # Factored fr1: per-object projections first (M = tb*N, K = 16), then
    # broadcast to the tb*N*N edge slots (slot layout: sample b, receiver r,
    # sender s).  Linear in tb; no pre-gathered edge tensor from HBM.
    xr = dense(x_ref[...], "fr1r", act=False)                  # (tb*N, H), bias inside
    xs = dense(x_ref[...], "fr1s", act=False)                  # (tb*N, H)
    recv = jnp.broadcast_to(xr[:, None, :], (tb_n, N, HIDDEN)).reshape(tb_n * N, HIDDEN)
    xs3 = xs.reshape(tb, N, HIDDEN)
    send = jnp.broadcast_to(xs3[:, None, :, :], (tb, N, N, HIDDEN)).reshape(tb_n * N, HIDDEN)
    h = jnp.maximum(recv + send, 0.0)                          # relu(fr1(edge_in))
    h = dense(h, "fr2")                                        # (tb*N*N, H/2)
    e = dense(h, "fr3")                                        # (tb*N*N, PPAD); De in lanes [P,P+De)
    e = e * smask_ref[...]                                     # zero self-pair slots

    # ---- receiver aggregation: free reshape + sum over the 8-slot group axis ---
    ebar = jnp.sum(e.reshape(tb_n, N, PPAD), axis=1)           # (tb*N, PPAD)

    # ---- object MLP -------------------------------------------------------------
    # x lives in lanes [0,P), Ebar in [P,P+De): plain add == concat, no relayout.
    obj_in = x_ref[...].astype(f32) + ebar
    h = dense(obj_in, "fo1")                                   # (tb*N, H)
    h = dense(h, "fo2")                                        # (tb*N, H/2)
    o = dense(h, "fo3")                                        # (tb*N, Do)

    # ---- flatten O (tb*N, Do) -> (tb, N*Do): scatter matmul + group sum ---------
    off = _W_OFF["oflat"]
    tmat = w_ref[off:off + DO, 0:N * DO]
    scat = jnp.dot(o.astype(tmat.dtype), tmat, preferred_element_type=f32) * lmask_ref[...]
    flat = jnp.sum(scat.reshape(tb, N, N * DO), axis=1)        # (tb, N*Do)

    # ---- classifier head --------------------------------------------------------
    h = dense(flat, "fc1")                                     # (tb, H)
    h = dense(h, "fc2")                                        # (tb, H/2)
    out_ref[...] = dense(h, "fc3", act=False).astype(out_ref.dtype)  # (tb, OUT_PAD)


# ----------------------------- wrapper / glue --------------------------------
def graphnet_forward_pallas(x, params, tb=TB_DEFAULT):
    """x: (B, P, N) like the PyTorch module.  Returns (B, n_targets)."""
    b, p, n = x.shape
    assert p == P and n == N
    assert tb % 8 == 0 and tb > 0, "tb must be a positive multiple of 8"

    # Pad the batch so the grid has >= 2 steps (both v7x TensorCores get work)
    # and every block is an exact (tb, ...) tile.  Padded samples are zeros and
    # are sliced off at the end.
    n_blocks = max(2, pl.cdiv(b, tb))
    b_pad = n_blocks * tb

    x_t = jnp.transpose(x, (0, 2, 1)).astype(jnp.float32)          # (B, N, P)
    x_t = jnp.pad(x_t, ((0, b_pad - b), (0, 0), (0, PPAD - P)))    # (B_pad, N, PPAD)
    x_pad = x_t.reshape(b_pad * N, PPAD).astype(W_DTYPE)

    self_mask, lane_mask = build_block_masks(tb)
    w_slab, b_slab = build_slabs(params)

    # Advisory cost estimate (per-sample MAC count * 2, all f32 traffic).
    macs_per_sample = (2 * N * PPAD * HIDDEN                 # factored fr1
                       + NSLOT * HIDDEN * (HIDDEN // 2)      # fr2
                       + NSLOT * (HIDDEN // 2) * PPAD        # fr3
                       + N * PPAD * HIDDEN                   # fo1
                       + N * HIDDEN * (HIDDEN // 2)          # fo2
                       + N * (HIDDEN // 2) * DO              # fo3
                       + N * DO * N * DO                     # flatten scatter
                       + N * DO * HIDDEN                     # fc1
                       + HIDDEN * (HIDDEN // 2)              # fc2
                       + (HIDDEN // 2) * OUT_PAD)            # fc3
    bytes_accessed = int(x_pad.size * x_pad.dtype.itemsize
                         + self_mask.size * 4 + lane_mask.size * 4
                         + w_slab.size * w_slab.dtype.itemsize + b_slab.size * 4
                         + b_pad * OUT_PAD * 4)

    out = pl.pallas_call(
        gnn_kernel,
        out_shape=jax.ShapeDtypeStruct((b_pad, OUT_PAD), jnp.float32),
        grid=(n_blocks,),
        in_specs=[
            pl.BlockSpec((tb * N, PPAD), lambda i: (i, 0)),            # x (per block)
            pl.BlockSpec((tb * NSLOT, PPAD), lambda i: (0, 0)),        # self-pair mask (const)
            pl.BlockSpec((tb * N, N * DO), lambda i: (0, 0)),          # lane mask (const)
            pl.BlockSpec((_W_ROWS, SLAB_LANES), lambda i: (0, 0)),     # weight slab (const)
            pl.BlockSpec((_B_ROWS, SLAB_LANES), lambda i: (0, 0)),     # bias slab (const)
        ],
        out_specs=pl.BlockSpec((tb, OUT_PAD), lambda i: (i, 0)),
        compiler_params=pltpu.CompilerParams(
            dimension_semantics=("parallel",),
            vmem_limit_bytes=32 * 1024 * 1024),
        cost_estimate=pl.CostEstimate(flops=2 * macs_per_sample * b_pad,
                                      transcendentals=0,
                                      bytes_accessed=bytes_accessed),
    )(x_pad, self_mask, lane_mask, w_slab, b_slab)
    return out[:b, :N_TARGETS]


# --------------------------- pure-JAX reference -------------------------------
_PAIRS = [pr for pr in itertools.product(range(N), range(N)) if pr[0] != pr[1]]


def make_rr_rs(n):
    nr = n * (n - 1)
    rr = np.zeros((n, nr), dtype=np.float32)
    rs = np.zeros((n, nr), dtype=np.float32)
    for i, (r, s) in enumerate(_PAIRS):
        rr[r, i] = 1.0
        rs[s, i] = 1.0
    return jnp.asarray(rr), jnp.asarray(rs)


def graphnet_forward_ref(x, params, rr, rs):
    b, p, n = x.shape
    orr = jnp.einsum("bpn,nr->bpr", x, rr)
    ors = jnp.einsum("bpn,nr->bpr", x, rs)
    bm = jnp.transpose(jnp.concatenate([orr, ors], axis=1), (0, 2, 1))   # (B,Nr,2P)
    h = jax.nn.relu(bm @ params["fr1_w"].T + params["fr1_b"])
    h = jax.nn.relu(h @ params["fr2_w"].T + params["fr2_b"])
    e = jax.nn.relu(h @ params["fr3_w"].T + params["fr3_b"])            # (B,Nr,De)
    ebar = jnp.einsum("bre,nr->bne", e, rr)                             # (B,N,De)
    c = jnp.concatenate([jnp.transpose(x, (0, 2, 1)), ebar], axis=2)
    h = jax.nn.relu(c @ params["fo1_w"].T + params["fo1_b"])
    h = jax.nn.relu(h @ params["fo2_w"].T + params["fo2_b"])
    o = jax.nn.relu(h @ params["fo3_w"].T + params["fo3_b"])            # (B,N,Do)
    flat = o.reshape(b, n * DO)
    h = jax.nn.relu(flat @ params["fc1_w"].T + params["fc1_b"])
    h = jax.nn.relu(h @ params["fc2_w"].T + params["fc2_b"])
    return h @ params["fc3_w"].T + params["fc3_b"]


# ------------------------------ param init ------------------------------------
def init_params(key):
    dims = {
        "fr1": (HIDDEN, 2 * P), "fr2": (HIDDEN // 2, HIDDEN), "fr3": (DE, HIDDEN // 2),
        "fo1": (HIDDEN, P + DE), "fo2": (HIDDEN // 2, HIDDEN), "fo3": (DO, HIDDEN // 2),
        "fc1": (HIDDEN, DO * N), "fc2": (HIDDEN // 2, HIDDEN), "fc3": (N_TARGETS, HIDDEN // 2),
    }
    params = {}
    for name, (out_d, in_d) in dims.items():
        key, kw, kb = jax.random.split(key, 3)
        params[name + "_w"] = 0.1 * jax.random.normal(kw, (out_d, in_d), jnp.float32)
        params[name + "_b"] = 0.05 * jax.random.normal(kb, (out_d,), jnp.float32)
    return params


if __name__ == "__main__":
    key = jax.random.PRNGKey(0)
    key, kx = jax.random.split(key)
    x = jax.random.normal(kx, (BATCH, P, N), jnp.float32)   # PyTorch-layout input (B, P, N)
    params = init_params(key)

    out = graphnet_forward_pallas(x, params)
    out = jax.block_until_ready(out)

    rr, rs = make_rr_rs(N)
    ref = graphnet_forward_ref(x, params, rr, rs)
    if not bool(jnp.allclose(out, ref, atol=1e-3, rtol=1e-3)):
        raise RuntimeError("Pallas kernel output does not match reference")

    print("KERNEL_OK")
</pallas_src>

<mosaic_0001>
module attributes {stable_mosaic.version = 11 : i64} {
  func.func @gnn_kernel(%arg0: i32, %arg1: memref<64x16xf32, #tpu.memory_space<vmem>>, %arg2: memref<512x16xf32, #tpu.memory_space<vmem>>, %arg3: memref<64x64xf32, #tpu.memory_space<vmem>>, %arg4: memref<264x128xf32, #tpu.memory_space<vmem>>, %arg5: memref<88x128xf32, #tpu.memory_space<vmem>>, %arg6: memref<8x128xf32, #tpu.memory_space<vmem>>) attributes {dimension_semantics = [#tpu.dimension_semantics<parallel>], iteration_bounds = array<i64: 2>, scalar_prefetch = 0 : i64, scratch_operands = 0 : i64, tpu.core_type = #tpu.core_type<tc>, window_params = [{transform_indices = @transform_0, window_bounds = array<i64: 64, 16>}, {pipeline_mode = #tpu.pipeline_mode<synchronous>, transform_indices = @transform_1, window_bounds = array<i64: 512, 16>}, {pipeline_mode = #tpu.pipeline_mode<synchronous>, transform_indices = @transform_2, window_bounds = array<i64: 64, 64>}, {pipeline_mode = #tpu.pipeline_mode<synchronous>, transform_indices = @transform_3, window_bounds = array<i64: 264, 128>}, {pipeline_mode = #tpu.pipeline_mode<synchronous>, transform_indices = @transform_4, window_bounds = array<i64: 88, 128>}, {transform_indices = @transform_5, window_bounds = array<i64: 8, 128>}]} {
    %c0 = arith.constant 0 : index
    %c0_0 = arith.constant 0 : index
    %0 = vector.load %arg1[%c0, %c0_0] : memref<64x16xf32, #tpu.memory_space<vmem>>, vector<64x16xf32>
    %c0_1 = arith.constant 0 : index
    %c0_2 = arith.constant 0 : index
    %1 = vector.load %arg4[%c0_1, %c0_2] : memref<264x128xf32, #tpu.memory_space<vmem>>, vector<16x32xf32>
    %c0_3 = arith.constant 0 : index
    %c0_4 = arith.constant 0 : index
    %2 = vector.load %arg5[%c0_3, %c0_4] : memref<88x128xf32, #tpu.memory_space<vmem>>, vector<1x32xf32>
    %cst = arith.constant dense<0.000000e+00> : vector<64x32xf32>
    %3 = tpu.matmul %0, %1, %cst {dimension_numbers = #tpu.dot_dimension_numbers<[1], [0], [0], [1], [0, 0, 1, 1], [], []>} : vector<64x16xf32>, vector<16x32xf32>, vector<64x32xf32> -> vector<64x32xf32>
    %4 = vector.broadcast %2 : vector<1x32xf32> to vector<64x32xf32>
    %5 = arith.addf %3, %4 : vector<64x32xf32>
    %c0_5 = arith.constant 0 : index
    %c0_6 = arith.constant 0 : index
    %6 = vector.load %arg1[%c0_5, %c0_6] : memref<64x16xf32, #tpu.memory_space<vmem>>, vector<64x16xf32>
    %c16 = arith.constant 16 : index
    %c0_7 = arith.constant 0 : index
    %7 = vector.load %arg4[%c16, %c0_7] : memref<264x128xf32, #tpu.memory_space<vmem>>, vector<16x32xf32>
    %c8 = arith.constant 8 : index
    %c0_8 = arith.constant 0 : index
    %8 = vector.load %arg5[%c8, %c0_8] : memref<88x128xf32, #tpu.memory_space<vmem>>, vector<1x32xf32>
    %cst_9 = arith.constant dense<0.000000e+00> : vector<64x32xf32>
    %9 = tpu.matmul %6, %7, %cst_9 {dimension_numbers = #tpu.dot_dimension_numbers<[1], [0], [0], [1], [0, 0, 1, 1], [], []>} : vector<64x16xf32>, vector<16x32xf32>, vector<64x32xf32> -> vector<64x32xf32>
    %10 = vector.broadcast %8 : vector<1x32xf32> to vector<64x32xf32>
    %11 = arith.addf %9, %10 : vector<64x32xf32>
    %12 = vector.shape_cast %5 : vector<64x32xf32> to vector<64x1x32xf32>
    %13 = vector.shape_cast %12 : vector<64x1x32xf32> to vector<64x1x32xf32>
    %14 = vector.broadcast %13 : vector<64x1x32xf32> to vector<64x8x32xf32>
    %15 = vector.shape_cast %14 : vector<64x8x32xf32> to vector<512x32xf32>
    %16 = vector.shape_cast %11 : vector<64x32xf32> to vector<8x8x32xf32>
    %17 = vector.shape_cast %16 : vector<8x8x32xf32> to vector<8x1x8x32xf32>
    %18 = vector.shape_cast %17 : vector<8x1x8x32xf32> to vector<8x1x8x32xf32>
    %19 = vector.broadcast %18 : vector<8x1x8x32xf32> to vector<8x8x8x32xf32>
    %20 = vector.shape_cast %19 : vector<8x8x8x32xf32> to vector<512x32xf32>
    %21 = arith.addf %15, %20 : vector<512x32xf32>
    %cst_10 = arith.constant 0.000000e+00 : f32
    %22 = vector.broadcast %cst_10 : f32 to vector<512x32xf32>
    %23 = arith.maximumf %21, %22 : vector<512x32xf32>
    %c32 = arith.constant 32 : index
    %c0_11 = arith.constant 0 : index
    %24 = vector.load %arg4[%c32, %c0_11] : memref<264x128xf32, #tpu.memory_space<vmem>>, vector<32x16xf32>
    %c16_12 = arith.constant 16 : index
    %c0_13 = arith.constant 0 : index
    %25 = vector.load %arg5[%c16_12, %c0_13] : memref<88x128xf32, #tpu.memory_space<vmem>>, vector<1x16xf32>
    %cst_14 = arith.constant dense<0.000000e+00> : vector<512x16xf32>
    %26 = tpu.matmul %23, %24, %cst_14 {dimension_numbers = #tpu.dot_dimension_numbers<[1], [0], [0], [1], [0, 0, 1, 1], [], []>} : vector<512x32xf32>, vector<32x16xf32>, vector<512x16xf32> -> vector<512x16xf32>
    %27 = vector.broadcast %25 : vector<1x16xf32> to vector<512x16xf32>
    %28 = arith.addf %26, %27 : vector<512x16xf32>
    %cst_15 = arith.constant 0.000000e+00 : f32
    %29 = vector.broadcast %cst_15 : f32 to vector<512x16xf32>
    %30 = arith.maximumf %28, %29 : vector<512x16xf32>
    %c64 = arith.constant 64 : index
    %c0_16 = arith.constant 0 : index
    %31 = vector.load %arg4[%c64, %c0_16] : memref<264x128xf32, #tpu.memory_space<vmem>>, vector<16x16xf32>
    %c24 = arith.constant 24 : index
    %c0_17 = arith.constant 0 : index
    %32 = vector.load %arg5[%c24, %c0_17] : memref<88x128xf32, #tpu.memory_space<vmem>>, vector<1x16xf32>
    %cst_18 = arith.constant dense<0.000000e+00> : vector<512x16xf32>
    %33 = tpu.matmul %30, %31, %cst_18 {dimension_numbers = #tpu.dot_dimension_numbers<[1], [0], [0], [1], [0, 0, 1, 1], [], []>} : vector<512x16xf32>, vector<16x16xf32>, vector<512x16xf32> -> vector<512x16xf32>
    %34 = vector.broadcast %32 : vector<1x16xf32> to vector<512x16xf32>
    %35 = arith.addf %33, %34 : vector<512x16xf32>
    %cst_19 = arith.constant 0.000000e+00 : f32
    %36 = vector.broadcast %cst_19 : f32 to vector<512x16xf32>
    %37 = arith.maximumf %35, %36 : vector<512x16xf32>
    %c0_20 = arith.constant 0 : index
    %c0_21 = arith.constant 0 : index
    %38 = vector.load %arg2[%c0_20, %c0_21] : memref<512x16xf32, #tpu.memory_space<vmem>>, vector<512x16xf32>
    %39 = arith.mulf %37, %38 : vector<512x16xf32>
    %40 = vector.shape_cast %39 : vector<512x16xf32> to vector<64x8x16xf32>
    %cst_22 = arith.constant dense<0.000000e+00> : vector<64x16xf32>
    %41 = vector.multi_reduction <add>, %40, %cst_22 [1] : vector<64x8x16xf32> to vector<64x16xf32>
    %c0_23 = arith.constant 0 : index
    %c0_24 = arith.constant 0 : index
    %42 = vector.load %arg1[%c0_23, %c0_24] : memref<64x16xf32, #tpu.memory_space<vmem>>, vector<64x16xf32>
    %43 = arith.addf %42, %41 : vector<64x16xf32>
    %c80 = arith.constant 80 : index
    %c0_25 = arith.constant 0 : index
    %44 = vector.load %arg4[%c80, %c0_25] : memref<264x128xf32, #tpu.memory_space<vmem>>, vector<16x32xf32>
    %c32_26 = arith.constant 32 : index
    %c0_27 = arith.constant 0 : index
    %45 = vector.load %arg5[%c32_26, %c0_27] : memref<88x128xf32, #tpu.memory_space<vmem>>, vector<1x32xf32>
    %cst_28 = arith.constant dense<0.000000e+00> : vector<64x32xf32>
    %46 = tpu.matmul %43, %44, %cst_28 {dimension_numbers = #tpu.dot_dimension_numbers<[1], [0], [0], [1], [0, 0, 1, 1], [], []>} : vector<64x16xf32>, vector<16x32xf32>, vector<64x32xf32> -> vector<64x32xf32>
    %47 = vector.broadcast %45 : vector<1x32xf32> to vector<64x32xf32>
    %48 = arith.addf %46, %47 : vector<64x32xf32>
    %cst_29 = arith.constant 0.000000e+00 : f32
    %49 = vector.broadcast %cst_29 : f32 to vector<64x32xf32>
    %50 = arith.maximumf %48, %49 : vector<64x32xf32>
    %c96 = arith.constant 96 : index
    %c0_30 = arith.constant 0 : index
    %51 = vector.load %arg4[%c96, %c0_30] : memref<264x128xf32, #tpu.memory_space<vmem>>, vector<32x16xf32>
    %c40 = arith.constant 40 : index
    %c0_31 = arith.constant 0 : index
    %52 = vector.load %arg5[%c40, %c0_31] : memref<88x128xf32, #tpu.memory_space<vmem>>, vector<1x16xf32>
    %cst_32 = arith.constant dense<0.000000e+00> : vector<64x16xf32>
    %53 = tpu.matmul %50, %51, %cst_32 {dimension_numbers = #tpu.dot_dimension_numbers<[1], [0], [0], [1], [0, 0, 1, 1], [], []>} : vector<64x32xf32>, vector<32x16xf32>, vector<64x16xf32> -> vector<64x16xf32>
    %54 = vector.broadcast %52 : vector<1x16xf32> to vector<64x16xf32>
    %55 = arith.addf %53, %54 : vector<64x16xf32>
    %cst_33 = arith.constant 0.000000e+00 : f32
    %56 = vector.broadcast %cst_33 : f32 to vector<64x16xf32>
    %57 = arith.maximumf %55, %56 : vector<64x16xf32>
    %c128 = arith.constant 128 : index
    %c0_34 = arith.constant 0 : index
    %58 = vector.load %arg4[%c128, %c0_34] : memref<264x128xf32, #tpu.memory_space<vmem>>, vector<16x8xf32>
    %c48 = arith.constant 48 : index
    %c0_35 = arith.constant 0 : index
    %59 = vector.load %arg5[%c48, %c0_35] : memref<88x128xf32, #tpu.memory_space<vmem>>, vector<1x8xf32>
    %cst_36 = arith.constant dense<0.000000e+00> : vector<64x8xf32>
    %60 = tpu.matmul %57, %58, %cst_36 {dimension_numbers = #tpu.dot_dimension_numbers<[1], [0], [0], [1], [0, 0, 1, 1], [], []>} : vector<64x16xf32>, vector<16x8xf32>, vector<64x8xf32> -> vector<64x8xf32>
    %61 = vector.broadcast %59 : vector<1x8xf32> to vector<64x8xf32>
    %62 = arith.addf %60, %61 : vector<64x8xf32>
    %cst_37 = arith.constant 0.000000e+00 : f32
    %63 = vector.broadcast %cst_37 : f32 to vector<64x8xf32>
    %64 = arith.maximumf %62, %63 : vector<64x8xf32>
    %c144 = arith.constant 144 : index
    %c0_38 = arith.constant 0 : index
    %65 = vector.load %arg4[%c144, %c0_38] : memref<264x128xf32, #tpu.memory_space<vmem>>, vector<8x64xf32>
    %cst_39 = arith.constant dense<0.000000e+00> : vector<64x64xf32>
    %66 = tpu.matmul %64, %65, %cst_39 {dimension_numbers = #tpu.dot_dimension_numbers<[1], [0], [0], [1], [0, 0, 1, 1], [], []>} : vector<64x8xf32>, vector<8x64xf32>, vector<64x64xf32> -> vector<64x64xf32>
    %c0_40 = arith.constant 0 : index
    %c0_41 = arith.constant 0 : index
    %67 = vector.load %arg3[%c0_40, %c0_41] : memref<64x64xf32, #tpu.memory_space<vmem>>, vector<64x64xf32>
    %68 = arith.mulf %66, %67 : vector<64x64xf32>
    %69 = vector.shape_cast %68 : vector<64x64xf32> to vector<8x8x64xf32>
    %cst_42 = arith.constant dense<0.000000e+00> : vector<8x64xf32>
    %70 = vector.multi_reduction <add>, %69, %cst_42 [1] : vector<8x8x64xf32> to vector<8x64xf32>
    %c152 = arith.constant 152 : index
    %c0_43 = arith.constant 0 : index
    %71 = vector.load %arg4[%c152, %c0_43] : memref<264x128xf32, #tpu.memory_space<vmem>>, vector<64x32xf32>
    %c64_44 = arith.constant 64 : index
    %c0_45 = arith.constant 0 : index
    %72 = vector.load %arg5[%c64_44, %c0_45] : memref<88x128xf32, #tpu.memory_space<vmem>>, vector<1x32xf32>
    %cst_46 = arith.constant dense<0.000000e+00> : vector<8x32xf32>
    %73 = tpu.matmul %70, %71, %cst_46 {dimension_numbers = #tpu.dot_dimension_numbers<[1], [0], [0], [1], [0, 0, 1, 1], [], []>} : vector<8x64xf32>, vector<64x32xf32>, vector<8x32xf32> -> vector<8x32xf32>
    %74 = vector.broadcast %72 : vector<1x32xf32> to vector<8x32xf32>
    %75 = arith.addf %73, %74 : vector<8x32xf32>
    %cst_47 = arith.constant 0.000000e+00 : f32
    %76 = vector.broadcast %cst_47 : f32 to vector<8x32xf32>
    %77 = arith.maximumf %75, %76 : vector<8x32xf32>
    %c216 = arith.constant 216 : index
    %c0_48 = arith.constant 0 : index
    %78 = vector.load %arg4[%c216, %c0_48] : memref<264x128xf32, #tpu.memory_space<vmem>>, vector<32x16xf32>
    %c72 = arith.constant 72 : index
    %c0_49 = arith.constant 0 : index
    %79 = vector.load %arg5[%c72, %c0_49] : memref<88x128xf32, #tpu.memory_space<vmem>>, vector<1x16xf32>
    %cst_50 = arith.constant dense<0.000000e+00> : vector<8x16xf32>
    %80 = tpu.matmul %77, %78, %cst_50 {dimension_numbers = #tpu.dot_dimension_numbers<[1], [0], [0], [1], [0, 0, 1, 1], [], []>} : vector<8x32xf32>, vector<32x16xf32>, vector<8x16xf32> -> vector<8x16xf32>
    %81 = vector.broadcast %79 : vector<1x16xf32> to vector<8x16xf32>
    %82 = arith.addf %80, %81 : vector<8x16xf32>
    %cst_51 = arith.constant 0.000000e+00 : f32
    %83 = vector.broadcast %cst_51 : f32 to vector<8x16xf32>
    %84 = arith.maximumf %82, %83 : vector<8x16xf32>
    %c248 = arith.constant 248 : index
    %c0_52 = arith.constant 0 : index
    %85 = vector.load %arg4[%c248, %c0_52] : memref<264x128xf32, #tpu.memory_space<vmem>>, vector<16x128xf32>
    %c80_53 = arith.constant 80 : index
    %c0_54 = arith.constant 0 : index
    %86 = vector.load %arg5[%c80_53, %c0_54] : memref<88x128xf32, #tpu.memory_space<vmem>>, vector<1x128xf32>
    %cst_55 = arith.constant dense<0.000000e+00> : vector<8x128xf32>
    %87 = tpu.matmul %84, %85, %cst_55 {dimension_numbers = #tpu.dot_dimension_numbers<[1], [0], [0], [1], [0, 0, 1, 1], [], []>} : vector<8x16xf32>, vector<16x128xf32>, vector<8x128xf32> -> vector<8x128xf32>
    %88 = vector.broadcast %86 : vector<1x128xf32> to vector<8x128xf32>
    %89 = arith.addf %87, %88 : vector<8x128xf32>
    %c0_56 = arith.constant 0 : index
    %c0_57 = arith.constant 0 : index
    %90 = vector.load %arg6[%c0_56, %c0_57] : memref<8x128xf32, #tpu.memory_space<vmem>>, vector<8x128xf32>
    tpu.vector_store %arg6[%c0_56, %c0_57], %89 {strides = array<i32>} : memref<8x128xf32, #tpu.memory_space<vmem>>, vector<8x128xf32>,
    return
  }
  func.func @transform_0(%arg0: i32) -> (i32, i32) {
    %c0_i32 = arith.constant 0 : i32
    %c0_i32_0 = arith.constant 0 : i32
    return %arg0, %c0_i32 : i32, i32
  }
  func.func @transform_1(%arg0: i32) -> (i32, i32) {
    %c0_i32 = arith.constant 0 : i32
    %c0_i32_0 = arith.constant 0 : i32
    %c0_i32_1 = arith.constant 0 : i32
    return %c0_i32, %c0_i32_0 : i32, i32
  }
  func.func @transform_2(%arg0: i32) -> (i32, i32) {
    %c0_i32 = arith.constant 0 : i32
    %c0_i32_0 = arith.constant 0 : i32
    %c0_i32_1 = arith.constant 0 : i32
    return %c0_i32, %c0_i32_0 : i32, i32
  }
  func.func @transform_3(%arg0: i32) -> (i32, i32) {
    %c0_i32 = arith.constant 0 : i32
    %c0_i32_0 = arith.constant 0 : i32
    %c0_i32_1 = arith.constant 0 : i32
    return %c0_i32, %c0_i32_0 : i32, i32
  }
  func.func @transform_4(%arg0: i32) -> (i32, i32) {
    %c0_i32 = arith.constant 0 : i32
    %c0_i32_0 = arith.constant 0 : i32
    %c0_i32_1 = arith.constant 0 : i32
    return %c0_i32, %c0_i32_0 : i32, i32
  }
  func.func @transform_5(%arg0: i32) -> (i32, i32) {
    %c0_i32 = arith.constant 0 : i32
    %c0_i32_0 = arith.constant 0 : i32
    return %arg0, %c0_i32 : i32, i32
  }
}

</mosaic_0001>

<bundles_post_ra>
// kernel: tpu_custom_call.1
= control target key start
LH: loop header
LB: loop body
LE: loop exit
PB: predicated region body
PF: predicated region fallthrough
CT: control target
= control target key end

     0   :  { %10 = vsyncpa [#allocation3], 0  ;;  %s6623_s0 = inlined_call_operand.vmem [shape: f32[128,16], index: 0, kind: input, shape index: {}]   ;;  %s6624_s1 = inlined_call_operand.vmem [shape: f32[512,16], index: 1, kind: input, shape index: {}]   ;;  %s6625_s2 = inlined_call_operand.vmem [shape: f32[64,64], index: 2, kind: input, shape index: {}]   ;;  %s6626_s3 = inlined_call_operand.vmem [shape: f32[264,128], index: 3, kind: input, shape index: {}]   ;;  %s6627_s4 = inlined_call_operand.vmem [shape: f32[88,128], index: 4, kind: input, shape index: {}]   ;;  %s6628_s5 = inlined_call_operand.hbm [shape: f32[16,128], index: 5, kind: output, shape index: {}]  }
   0x1   :  { %12 = vsyncpa [#allocation3 + $0x1], 0  ;;  %s5222_s18 = smov 0   ;;  %s5224_s19 = smov 0  }
   0x2   :  { %s5226_s20 = smov 0   ;;  %s5228_s21 = smov 0  }
   0x3 LB: > { %s5243_s22 = sadd.s32 4294967295, %s5186_s21   ;;  %s4324_s23 = sadd.s32 4294967294, %s5186_s21   ;;  %s5186_s21 = sphi %s5228_s21, %s6634_s21   ;;  %s5182_s20 = sphi %s5226_s20, %s6633_s20   ;;  %s5178_s19 = sphi %s5224_s19, %s6632_s19   ;;  %s5174_s18 = sphi %s5222_s18, %s6631_s18  }
   0x4   : > { %s5247_s24 = sadd.s32 1, %s5186_s21   ;;  %s135_s25 = sadd.s32 1, %s5182_s20 }
   0x5   : > { %s132_s26 = ssub.s32 %s5186_s21, %s5247_s24  ;;  %p145_p0 = scmp.ne.s32.totalorder %s5182_s20, %s5178_s19 }
   0x6   : > { %p133_p1 = scmp.eq.s32.totalorder %s132_s26, 0  ;;  %p146_p2 = scmp.eq.s32.totalorder %s5243_s22, 1 }
   0x7   : > { %p151_p3 = scmp.ne.s32.totalorder %s5178_s19, %s5174_s18  ;;  %p152_p4 = scmp.eq.s32.totalorder %s4324_s23, 1 }
   0x8   : > { %s5258_s27 = scalar_select %p133_p1, %s5182_s20, %s135_s25  }
   0x9   : > { %p5260_p5 = por %p146_p2, %p145_p0  ;;  %p5264_p6 = por %p152_p4, %p151_p3 }
   0xa   : > { %p4327_p7 = scmp.ge.s32.totalorder %s5186_s21, 1  ;;  %p191_p8 = scmp.lt.s32.totalorder %s5186_s21, 3 }
   0xc   : > { %p192_p9 = pnand %p4327_p7, %p191_p8 }
   0xd   : > { %s4329_s9 = sshll.u32 (!%p192_p9), %s5243_s22, 3  ;;  %s216_s10 = sand.u32 (!%p192_p9), 1, %s5178_s19  }
   0xe   : > { %195 = sbr.rel (%p192_p9) target bundleno = 2230 (0x8b6), region = 40  ;;  %p220_p10 = scmp.lt.s32.totalorder (!%p192_p9), %s4329_s9, 15 }
   0xf   : > { %s4328_s11 = sshll.u32 (!%p192_p9), %s216_s10, 3  ;;  %s4252_s26 = scalar_lea.sflag (!%p192_p9), [#allocation3], %s216_s10 }
  0x10   : > { %s218_s15 = scalar_lea.vmem (!%p192_p9), [#allocation2], %s4328_s11  ;;  %s5191_s6 = smov (!%p192_p9), [#allocation2]  }
  0x13   : > { %v234_v0 = vld [vmem:[%s6626_s3 + $0x8] sm:$0xff]  ;;  %v233_v1 = vld [vmem:[%s6626_s3] sm:$0xff]  ;;  %v371_v2 = vld [vmem:[%s6626_s3 + $0x18] sm:$0xff]  ;;  %s6636_s9 = smov (!%p220_p10, %s4329_s9), 15  ;;  %vm240_vm0 = vcmask 130048   ;;  %v494_v18 = vlaneseq  ;;  %vm1339_vm1 = vcmask 261120  }
  0x14   : > { %4736 = vmatprep.subr.mxu0 %v234_v0  ;;  %4752 = vmatprep.subr.mxu1 %v371_v2  ;;  %v370_v3 = vld [vmem:[%s6626_s3 + $0x10] sm:$0xff]  ;;  %s4330_s14 = sshll.u32 %s6636_s9, 3  ;;  %v1333_v12 = vld [vmem:[%s6626_s3 + $0x38] sm:$0xff]  ;;  %v1331_v14 = vld [vmem:[%s6626_s3 + $0x28] sm:$0xff]  ;;  %v5188_v16 = vmov 1966171168  }
  0x15   : > { %4737 = vmatpush3.msra.mxu0 %v234_v0  ;;  %4753 = vmatpush3.msra.mxu1 %v371_v2  ;;  %s5286_s17 = scalar_lea.vmem %s6623_s0, %s4330_s14  ;;  %v1332_v13 = vld [vmem:[%s6626_s3 + $0x30] sm:$0xff]  ;;  %v1330_v15 = vld [vmem:[%s6626_s3 + $0x20] sm:$0xff]  ;;  %v492_v17 = vunpack.c.l.s4 %v5188_v16  ;;  %v495_v21 = vshrl.u32 %v494_v18, 7  ;;  %v5336_v29 = vld [vmem:[%s6627_s4 + $0x8] ss:$0 sm:$0xff]  ;;  %vm3269_vm2 = vcmask 1041409  }
  0x16   : > { %4738 = vmatprep.subr.mxu0 %v233_v1  ;;  %4754 = vmatprep.subr.mxu1 %v370_v3  ;;  %v225_v4 = vld [vmem:[%s5286_s17] sm:$0xff]  ;;  %v226_v5 = vld [vmem:[%s5286_s17 + $0x8] sm:$0xff]  ;;  %v227_v6 = vld [vmem:[%s5286_s17 + $0x10] sm:$0xff]  ;;  %vm3271_vm3 = vcmask 1042434   ;;  %vm3273_vm4 = vcmask 1043459   ;;  %vm3275_vm5 = vcmask 1044484  }
  0x17   : > { %4739 = vmatpush3.msra.mxu0 %v233_v1  ;;  %4755 = vmatpush3.msra.mxu1 %v370_v3  ;;  %v228_v7 = vld [vmem:[%s5286_s17 + $0x18] sm:$0xff]  ;;  %v229_v8 = vld [vmem:[%s5286_s17 + $0x20] sm:$0xff]  ;;  %v230_v9 = vld [vmem:[%s5286_s17 + $0x28] sm:$0xff]  ;;  %v493_v20 = vunpack.c.0.s8 %v492_v17  ;;  %v5341_v35 = vsub.s32 0, %v495_v21  ;;  %vm3277_vm6 = vcmask 1045509   ;;  %vm3279_vm7 = vcmask 1046534  }
  0x18   : > { %4740 = vmatprep.mubr.msk.f32.mxu0 %vm240_vm0, %v225_v4  ;;  %4756 = vmatprep.mubr.msk.f32.mxu1 %vm240_vm0, %v225_v4  ;;  %v231_v10 = vld [vmem:[%s5286_s17 + $0x30] sm:$0xff]  ;;  %v232_v11 = vld [vmem:[%s5286_s17 + $0x38] sm:$0xff]  ;;  %v5327_v22 = vld [vmem:[%s6627_s4] ss:$0 sm:$0xff]  ;;  %vm3281_vm8 = vcmask 1047559   ;;  %vm3783_vm9 = vcmask 64512  }
  0x19   : > { %4741 = vmatmul.mubr.msk.f32.vlgmr.msra.gmra.mxu0 %vm240_vm0, %v226_v5  ;;  %4757 = vmatmul.mubr.msk.f32.vlgmr.msra.gmra.mxu1 %vm240_vm0, %v226_v5  ;;  %v5330_v26 = vsub.s32 %v493_v20, %v495_v21  ;;  %v1982_v53 = vld [vmem:[%s6626_s3 + $0x48] sm:$0xff]  ;;  %v1981_v54 = vld [vmem:[%s6626_s3 + $0x40] sm:$0xff]  ;;  %vm5190_vm10 = vmmov 0   ;;  %vm3929_vm11 = vcmask 523264   ;;  %s4521_s14 = sshll.u32 %s5243_s22, 7  ;;  %s5130_s22 = sshll.u32 %s5191_s6, 4  ;;  %s5131_s22 = int_to_ptr.vmem [resolvable:$false] %s5130_s22 }
  0x1a   : > { %4743 = vmatprep.mubr.msk.f32.mxu0 %vm240_vm0, %v227_v6  ;;  %4759 = vmatprep.mubr.msk.f32.mxu1 %vm240_vm0, %v227_v6  ;;  %s6588_s25 = scalar_lea.hbm %s6628_s5, %s4521_s14  ;;  %s5132_s7 = scalar_lea.vmem %s5131_s22, 256 }
  0x1b   : > { %4768 = vmatprep.subr.mxu0 %v1333_v12  ;;  %4872 = vmatprep.subr.mxu1 %v1982_v53 }
  0x1c   : > { %4769 = vmatpush3.msra.mxu0 %v1333_v12  ;;  %4873 = vmatpush3.msra.mxu1 %v1982_v53 }
  0x1d   : > { %4744 = vmatmul.mubr.msk.f32.gmra.mxu0 %vm240_vm0, %v228_v7  ;;  %4760 = vmatmul.mubr.msk.f32.gmra.mxu1 %vm240_vm0, %v228_v7 }
  0x1e   : > { %4746 = vmatprep.mubr.msk.f32.mxu0 %vm240_vm0, %v229_v8  ;;  %4762 = vmatprep.mubr.msk.f32.mxu1 %vm240_vm0, %v229_v8 }
  0x1f   : > { %4770 = vmatprep.subr.mxu0 %v1332_v13  ;;  %4874 = vmatprep.subr.mxu1 %v1981_v54 }
  0x20   : > { %4771 = vmatpush3.msra.mxu0 %v1332_v13  ;;  %4875 = vmatpush3.msra.mxu1 %v1981_v54 }
  0x21   : > { %4747 = vmatmul.mubr.msk.f32.gmra.mxu0 %vm240_vm0, %v230_v9  ;;  %4763 = vmatmul.mubr.msk.f32.gmra.mxu1 %vm240_vm0, %v230_v9 }
  0x22   : > { %4749 = vmatprep.mubr.msk.f32.mxu0 %vm240_vm0, %v231_v10  ;;  %4765 = vmatprep.mubr.msk.f32.mxu1 %vm240_vm0, %v231_v10 }
  0x23   : > { %4772 = vmatprep.subr.mxu0 %v1331_v14 }
  0x24   : > { %4773 = vmatpush3.msra.mxu0 %v1331_v14 }
  0x25   : > { %4750 = vmatmul.mubr.msk.f32.gmra.mxu0 %vm240_vm0, %v232_v11  ;;  %4766 = vmatmul.mubr.msk.f32.gmra.mxu1 %vm240_vm0, %v232_v11 }
  0x26   : > { %4774 = vmatprep.subr.mxu0 %v1330_v15 }
  0x27   : > { %4775 = vmatpush3.msra.mxu0 %v1330_v15 }
  0xd9   : > { %v4742_v19 = vpop.f32.mrf.mxu0  ;;  %v4758_v24 = vpop.f32.mrf.mxu1 }
  0xda   : > { %v337_v31 = vadd.f32 %v4742_v19, %v5327_v22  ;;  %v5370_v10 = vadd.f32 %v4758_v24, %v5336_v29 }
  0xdb   : > { %v331_v23 = vpop.f32.mrf.mxu0  ;;  %v443_v30 = vpop.f32.mrf.mxu1 }
  0xdc   : > { %v332_v25 = vadd.f32 %v5327_v22, %v331_v23  ;;  %v444_v36 = vadd.f32 %v5336_v29, %v443_v30  ;;  %v546_v42 = vrot.slane %v337_v31, %v5330_v26  ;;  %v539_v55 = vcombine.high %v337_v31, %v337_v31 }
  0xdd   : > { %v4745_v0 = vpop.f32.mrf.mxu0 }
  0xde   : > { %v490_v27 = vcombine.high %v332_v25, %v332_v25  ;;  %v497_v28 = vrot.slane %v332_v25, %v5330_v26  ;;  %v554_v56 = vcombine.high %v546_v42, %v546_v42  ;;  %v562_v62 = vrot.slane %v546_v42, %v5330_v26 }
  0xdf   : > { %v553_v2 = vrot.slane %v539_v55, %v5330_v26  ;;  %v341_v12 = vpop.f32.mrf.mxu0 }
  0xe0   : > { %v504_v32 = vrot.slane %v490_v27, %v5330_v26  ;;  %v505_v33 = vcombine.high %v497_v28, %v497_v28  ;;  %v513_v34 = vrot.slane %v497_v28, %v5330_v26  ;;  %v576_v3 = vrot.slane %v554_v56, %v5330_v26  ;;  %v5383_v28 = vpop.f32.mrf.mxu1 }
  0xe1   : > { %v584_v8 = vcombine.high %v562_v62, %v562_v62  ;;  %v917_v9 = vrot.slane %v562_v62, %v5341_v35  ;;  %v555_v14 = vcombine.high %v553_v2, %v553_v2  ;;  %v569_v15 = vrot.slane %v553_v2, %v5330_v26 }
  0xe2   : > { %v506_v37 = vcombine.high %v504_v32, %v504_v32  ;;  %v520_v38 = vrot.slane %v504_v32, %v5330_v26  ;;  %v527_v39 = vrot.slane %v505_v33, %v5330_v26  ;;  %v535_v40 = vcombine.high %v513_v34, %v513_v34  ;;  %v453_v42 = vpop.f32.mrf.mxu1 }
  0xe3   : > { %v885_v41 = vrot.slane %v513_v34, %v5341_v35  ;;  %v586_v16 = vcombine.high %v576_v3, %v576_v3  ;;  %v921_v17 = vrot.slane %v576_v3, %v5341_v35  ;;  %v342_v19 = vadd.f32 %v5327_v22, %v341_v12 }
  0xe4   : > { %v534_v43 = vrot.slane %v506_v37, %v5330_v26  ;;  %v537_v44 = vcombine.high %v527_v39, %v527_v39  ;;  %v889_v45 = vrot.slane %v527_v39, %v5341_v35  ;;  %v893_v46 = vrot.slane %v535_v40, %v5341_v35 }
  0xe5   : > { %v1202_v47 = vadd.f32 %v885_v41, %v444_v36  ;;  %v901_v48 = vrot.slane %v520_v38, %v5341_v35  ;;  %v536_v57 = vcombine.high %v520_v38, %v520_v38  ;;  %v925_v21 = vrot.slane %v584_v8, %v5341_v35 }
  0xe6   : > { %v1203_v50 = vadd.f32 %v889_v45, %v444_v36  ;;  %v1204_v51 = vadd.f32 %v893_v46, %v444_v36  ;;  %v897_v52 = vrot.slane %v537_v44, %v5341_v35  ;;  %v538_v58 = vcombine.high %v534_v43, %v534_v43 }
  0xe7   : > { %v1266_v49 = vmax.f32 %v1202_v47, 0.0  ;;  %v1206_v63 = vadd.f32 %v901_v48, %v444_v36  ;;  %v905_v1 = vrot.slane %v534_v43, %v5341_v35  ;;  %v909_v6 = vrot.slane %v536_v57, %v5341_v35  ;;  %v4748_v47 = vpop.f32.mrf.mxu0 }
  0xe8   : > { %v1267_v59 = vmax.f32 %v1203_v50, 0.0  ;;  %v1268_v60 = vmax.f32 %v1204_v51, 0.0  ;;  %v1205_v61 = vadd.f32 %v897_v52, %v444_v36  ;;  %v913_v7 = vrot.slane %v538_v58, %v5341_v35 }
  0xe9   : > { %4776 = vmatprep.mubr.msk.f32.mxu0 %vm1339_vm1, %v1266_v49  ;;  %v1207_v5 = vadd.f32 %v905_v1, %v444_v36  ;;  %v1270_v11 = vmax.f32 %v1206_v63, 0.0  ;;  %v1208_v13 = vadd.f32 %v909_v6, %v444_v36  ;;  %v1210_v24 = vadd.f32 %v917_v9, %v5370_v10 }
  0xea   : > { %4777 = vmatmul.mubr.msk.f32.vlgmr.msra.gmra.mxu0 %vm1339_vm1, %v1267_v59  ;;  %v1269_v4 = vmax.f32 %v1205_v61, 0.0  ;;  %v1209_v20 = vadd.f32 %v913_v7, %v444_v36  ;;  %v595_v25 = vrot.slane %v342_v19, %v5330_v26  ;;  %v583_v27 = vrot.slane %v555_v14, %v5330_v26 }
  0xeb   : > { %4779 = vmatprep.mubr.msk.f32.mxu0 %vm1339_vm1, %v1268_v60  ;;  %v1271_v18 = vmax.f32 %v1207_v5, 0.0  ;;  %v1272_v23 = vmax.f32 %v1208_v13, 0.0  ;;  %v933_v30 = vrot.slane %v569_v15, %v5341_v35  ;;  %v1211_v32 = vadd.f32 %v921_v17, %v5370_v10 }
  0xec   : > { %v1273_v31 = vmax.f32 %v1209_v20, 0.0  ;;  %v929_v33 = vrot.slane %v586_v16, %v5341_v35  ;;  %v585_v34 = vcombine.high %v569_v15, %v569_v15  ;;  %v1274_v36 = vmax.f32 %v1210_v24, 0.0 }
  0xed   : > { %v1212_v37 = vadd.f32 %v925_v21, %v5370_v10  ;;  %v588_v38 = vcombine.high %v342_v19, %v342_v19  ;;  %v603_v39 = vcombine.high %v595_v25, %v595_v25  ;;  %v587_v40 = vcombine.high %v583_v27, %v583_v27 }
  0xee   : > { %4780 = vmatmul.mubr.msk.f32.gmra.mxu0 %vm1339_vm1, %v1269_v4  ;;  %v611_v41 = vrot.slane %v595_v25, %v5330_v26  ;;  %v1275_v43 = vmax.f32 %v1211_v32, 0.0  ;;  %v1213_v44 = vadd.f32 %v929_v33, %v5370_v10  ;;  %v1214_v45 = vadd.f32 %v933_v30, %v5370_v10 }
  0xef   : > { %4782 = vmatprep.mubr.msk.f32.mxu0 %vm1339_vm1, %v1270_v11  ;;  %v937_v46 = vrot.slane %v583_v27, %v5341_v35  ;;  %v1276_v48 = vmax.f32 %v1212_v37, 0.0  ;;  %v941_v49 = vrot.slane %v585_v34, %v5341_v35  ;;  %v357_v50 = vadd.f32 %v4748_v47, %v5327_v22 }
  0xf0   : > { %v347_v51 = vadd.f32 %v4745_v0, %v5327_v22  ;;  %v602_v52 = vrot.slane %v588_v38, %v5330_v26  ;;  %v625_v53 = vrot.slane %v603_v39, %v5330_v26  ;;  %v5402_v54 = vadd.f32 %v5336_v29, %v453_v42 }
  0xf1   : > { %v633_v55 = vcombine.high %v611_v41, %v611_v41  ;;  %v949_v56 = vrot.slane %v611_v41, %v5341_v35  ;;  %v735_v57 = vcombine.high %v357_v50, %v357_v50  ;;  %v742_v58 = vrot.slane %v357_v50, %v5330_v26 }
  0xf2   : > { %4783 = vmatmul.mubr.msk.f32.gmra.mxu0 %vm1339_vm1, %v1271_v18  ;;  %v1277_v59 = vmax.f32 %v1213_v44, 0.0  ;;  %v1278_v60 = vmax.f32 %v1214_v45, 0.0  ;;  %v1215_v61 = vadd.f32 %v937_v46, %v5370_v10  ;;  %v945_v62 = vrot.slane %v587_v40, %v5341_v35 }
  0xf3   : > { %4785 = vmatprep.mubr.msk.f32.mxu0 %vm1339_vm1, %v1272_v23  ;;  %v1216_v63 = vadd.f32 %v941_v49, %v5370_v10  ;;  %v749_v0 = vrot.slane %v735_v57, %v5330_v26  ;;  %v750_v1 = vcombine.high %v742_v58, %v742_v58  ;;  %v5412_v2 = vrot.slane %v742_v58, %v5330_v26 }
  0xf4   : > { %v637_v3 = vcombine.high %v347_v51, %v347_v51  ;;  %v604_v4 = vcombine.high %v602_v52, %v602_v52  ;;  %v1218_v5 = vadd.f32 %v949_v56, %v5402_v54  ;;  %v635_v9 = vcombine.high %v625_v53, %v625_v53 }
  0xf5   : > { %v751_v6 = vcombine.high %v749_v0, %v749_v0  ;;  %v5418_v7 = vrot.slane %v749_v0, %v5330_v26  ;;  %v5421_v8 = vrot.slane %v750_v1, %v5330_v26  ;;  %v953_v11 = vrot.slane %v625_v53, %v5341_v35 }
  0xf6   : > { %4786 = vmatmul.mubr.msk.f32.gmra.mxu0 %vm1339_vm1, %v1273_v31  ;;  %v1279_v12 = vmax.f32 %v1215_v61, 0.0  ;;  %v1217_v13 = vadd.f32 %v945_v62, %v5370_v10  ;;  %v618_v14 = vrot.slane %v602_v52, %v5330_v26  ;;  %v957_v15 = vrot.slane %v633_v55, %v5341_v35  ;;  %v351_v31 = vpop.f32.mrf.mxu0 }
  0xf7   : > { %4788 = vmatprep.mubr.msk.f32.mxu0 %vm1339_vm1, %v1274_v36  ;;  %v1280_v16 = vmax.f32 %v1216_v63, 0.0  ;;  %v5428_v17 = vrot.slane %v751_v6, %v5330_v26  ;;  %v644_v18 = vrot.slane %v347_v51, %v5330_v26  ;;  %v632_v19 = vrot.slane %v604_v4, %v5330_v26 }
  0xf8   : > { %v1282_v20 = vmax.f32 %v1218_v5, 0.0  ;;  %v651_v21 = vrot.slane %v637_v3, %v5330_v26  ;;  %v1281_v10 = vmax.f32 %v1217_v13, 0.0  ;;  %v1219_v23 = vadd.f32 %v953_v11, %v5402_v54  ;;  %v4751_v36 = vpop.f32.mrf.mxu0 }
  0xf9   : > { %v961_v24 = vrot.slane %v635_v9, %v5341_v35  ;;  %v634_v25 = vcombine.high %v618_v14, %v618_v14  ;;  %v965_v27 = vrot.slane %v618_v14, %v5341_v35  ;;  %v1220_v30 = vadd.f32 %v957_v15, %v5402_v54 }
  0xfa   : > { %4789 = vmatmul.mubr.msk.f32.gmra.mxu0 %vm1339_vm1, %v1275_v43  ;;  %v652_v32 = vcombine.high %v644_v18, %v644_v18  ;;  %v636_v33 = vcombine.high %v632_v19, %v632_v19  ;;  %v660_v34 = vrot.slane %v644_v18, %v5330_v26  ;;  %v653_v37 = vcombine.high %v651_v21, %v651_v21  ;;  %v361_v49 = vpop.f32.mrf.mxu0 }
  0xfb   : > { %4791 = vmatprep.mubr.msk.f32.mxu0 %vm1339_vm1, %v1276_v48  ;;  %v1283_v38 = vmax.f32 %v1219_v23, 0.0  ;;  %v1221_v39 = vadd.f32 %v961_v24, %v5402_v54  ;;  %v969_v40 = vrot.slane %v632_v19, %v5341_v35  ;;  %v5445_v41 = vrot.slane %v651_v21, %v5330_v26  ;;  %v5491_v21 = vpop.f32.mrf.mxu1 }
  0xfc   : > { %v1284_v42 = vmax.f32 %v1220_v30, 0.0  ;;  %v1222_v43 = vadd.f32 %v965_v27, %v5402_v54  ;;  %v973_v44 = vrot.slane %v634_v25, %v5341_v35  ;;  %v674_v45 = vrot.slane %v652_v32, %v5330_v26 }
  0xfd   : > { %v977_v46 = vrot.slane %v636_v33, %v5341_v35  ;;  %v682_v47 = vcombine.high %v660_v34, %v660_v34  ;;  %v5454_v48 = vadd.f32 %v5383_v28, %v5336_v29  ;;  %v5458_v50 = vrot.slane %v653_v37, %v5330_v26 }
  0xfe   : > { %4792 = vmatmul.mubr.msk.f32.gmra.mxu0 %vm1339_vm1, %v1277_v59  ;;  %v981_v51 = vrot.slane %v660_v34, %v5341_v35  ;;  %v1285_v52 = vmax.f32 %v1221_v39, 0.0  ;;  %v1223_v53 = vadd.f32 %v969_v40, %v5402_v54  ;;  %v683_v55 = vcombine.high %v5445_v41, %v5445_v41 }
  0xff   : > { %4794 = vmatprep.mubr.msk.f32.mxu0 %vm1339_vm1, %v1278_v60  ;;  %v1286_v56 = vmax.f32 %v1222_v43, 0.0  ;;  %v1224_v57 = vadd.f32 %v973_v44, %v5402_v54  ;;  %v367_v28 = vadd.f32 %v4751_v36, %v5327_v22  ;;  %v684_v58 = vcombine.high %v674_v45, %v674_v45 }
 0x100   : > { %v985_v59 = vrot.slane %v674_v45, %v5341_v35  ;;  %v1225_v60 = vadd.f32 %v977_v46, %v5402_v54  ;;  %v362_v61 = vadd.f32 %v5327_v22, %v361_v49  ;;  %v989_v62 = vrot.slane %v682_v47, %v5341_v35 }
 0x101   : > { %v352_v63 = vadd.f32 %v5327_v22, %v351_v31  ;;  %v833_v0 = vcombine.high %v367_v28, %v367_v28  ;;  %v840_v1 = vrot.slane %v367_v28, %v5330_v26  ;;  %v1287_v3 = vmax.f32 %v1223_v53, 0.0 }
 0x102   : > { %4795 = vmatmul.mubr.msk.f32.gmra.mxu0 %vm1339_vm1, %v1279_v12  ;;  %v1226_v4 = vadd.f32 %v981_v51, %v5454_v48  ;;  %v784_v5 = vcombine.high %v362_v61, %v362_v61  ;;  %v791_v6 = vrot.slane %v362_v61, %v5330_v26  ;;  %v1288_v9 = vmax.f32 %v1224_v57, 0.0 }
 0x103   : > { %4797 = vmatprep.mubr.msk.f32.mxu0 %vm1339_vm1, %v1280_v16  ;;  %v847_v54 = vrot.slane %v833_v0, %v5330_v26  ;;  %v848_v11 = vcombine.high %v840_v1, %v840_v1  ;;  %v5478_v12 = vrot.slane %v840_v1, %v5330_v26  ;;  %v693_v22 = vrot.slane %v352_v63, %v5330_v26 }
 0x104   : > { %v1289_v13 = vmax.f32 %v1225_v60, 0.0  ;;  %v798_v14 = vrot.slane %v784_v5, %v5330_v26  ;;  %v799_v15 = vcombine.high %v791_v6, %v791_v6  ;;  %v1227_v16 = vadd.f32 %v985_v59, %v5454_v48 }
 0x105   : > { %v849_v18 = vcombine.high %v847_v54, %v847_v54  ;;  %v5486_v19 = vrot.slane %v847_v54, %v5330_v26  ;;  %v5495_v24 = vrot.slane %v791_v6, %v5330_v26  ;;  %v997_v27 = vrot.slane %v5445_v41, %v5341_v35 }
 0x106   : > { %4798 = vmatmul.mubr.msk.f32.gmra.mxu0 %vm1339_vm1, %v1281_v10  ;;  %v993_v10 = vrot.slane %v684_v58, %v5341_v35  ;;  %v800_v23 = vcombine.high %v798_v14, %v798_v14  ;;  %v5498_v25 = vrot.slane %v798_v14, %v5330_v26  ;;  %v1290_v30 = vmax.f32 %v1226_v4, 0.0 }
 0x107   : > { %4800 = vmatprep.mubr.msk.f32.mxu0 %vm1339_vm1, %v1282_v20  ;;  %v5489_v20 = vrot.slane %v848_v11, %v5330_v26  ;;  %v1228_v31 = vadd.f32 %v989_v62, %v5454_v48  ;;  %v5504_v32 = vrot.slane %v849_v18, %v5330_v26  ;;  %v5508_v33 = vrot.slane %v799_v15, %v5330_v26 }
 0x108   : > { %v5511_v34 = vrot.slane %v800_v23, %v5330_v26  ;;  %v685_v36 = vcombine.high %v5458_v50, %v5458_v50  ;;  %v686_v37 = vcombine.high %v352_v63, %v352_v63  ;;  %v701_v39 = vcombine.high %v693_v22, %v693_v22 }
 0x109   : > { %v1291_v40 = vmax.f32 %v1227_v16, 0.0  ;;  %v1229_v41 = vadd.f32 %v993_v10, %v5454_v48  ;;  %v1001_v43 = vrot.slane %v5458_v50, %v5341_v35  ;;  %v1292_v44 = vmax.f32 %v1228_v31, 0.0 }
 0x10a   : > { %4801 = vmatmul.mubr.msk.f32.gmra.mxu0 %vm1339_vm1, %v1283_v38  ;;  %v709_v38 = vrot.slane %v693_v22, %v5330_v26  ;;  %v1230_v45 = vadd.f32 %v997_v27, %v5454_v48  ;;  %v1005_v46 = vrot.slane %v683_v55, %v5341_v35  ;;  %v700_v47 = vrot.slane %v686_v37, %v5330_v26 }
 0x10b   : > { %4803 = vmatprep.mubr.msk.f32.mxu0 %vm1339_vm1, %v1284_v42  ;;  %v463_v42 = vpop.f32.mrf.mxu1  ;;  %v1293_v53 = vmax.f32 %v1229_v41, 0.0  ;;  %v1231_v50 = vadd.f32 %v1001_v43, %v5454_v48  ;;  %v780_v23 = vcombine.high %v5412_v2, %v5412_v2  ;;  %v469_v37 = vadd.f32 %v5491_v21, %v5336_v29 }
 0x10c   : > { %v1013_v49 = vrot.slane %v709_v38, %v5341_v35  ;;  %v464_v51 = vadd.f32 %v5336_v29, %v463_v42  ;;  %v731_v57 = vcombine.high %v709_v38, %v709_v38  ;;  %v1294_v28 = vmax.f32 %v1230_v45, 0.0 }
 0x10d   : > { %v1232_v55 = vadd.f32 %v1005_v46, %v5454_v48  ;;  %v702_v58 = vcombine.high %v700_v47, %v700_v47  ;;  %v1295_v62 = vmax.f32 %v1231_v50, 0.0  ;;  %v716_v0 = vrot.slane %v700_v47, %v5330_v26  ;;  %v4767_v47 = vpop.f32.mrf.mxu1 }
 0x10e   : > { %4804 = vmatmul.mubr.msk.f32.gmra.mxu0 %vm1339_vm1, %v1285_v52  ;;  %v723_v52 = vrot.slane %v701_v39, %v5330_v26  ;;  %v1234_v59 = vadd.f32 %v1013_v49, %v464_v51  ;;  %v1021_v1 = vrot.slane %v731_v57, %v5341_v35  ;;  %v1049_v41 = vrot.slane %v5421_v8, %v5341_v35 }
 0x10f   : > { %4806 = vmatprep.mubr.msk.f32.mxu0 %vm1339_vm1, %v1286_v56  ;;  %v1009_v56 = vrot.slane %v685_v36, %v5341_v35  ;;  %v730_v5 = vrot.slane %v702_v58, %v5330_v26  ;;  %v732_v11 = vcombine.high %v716_v0, %v716_v0  ;;  %v1029_v22 = vrot.slane %v716_v0, %v5341_v35 }
 0x110   : > { %v733_v60 = vcombine.high %v723_v52, %v723_v52  ;;  %v1017_v61 = vrot.slane %v723_v52, %v5341_v35  ;;  %v1298_v4 = vmax.f32 %v1234_v59, 0.0  ;;  %v1045_v36 = vrot.slane %v5412_v2, %v5341_v35 }
 0x111   : > { %v1233_v63 = vadd.f32 %v1009_v56, %v5454_v48  ;;  %v1236_v48 = vadd.f32 %v1021_v1, %v464_v51  ;;  %v1033_v16 = vrot.slane %v730_v5, %v5341_v35  ;;  %v1238_v10 = vadd.f32 %v1029_v22, %v464_v51 }
 0x112   : > { %4807 = vmatmul.mubr.msk.f32.gmra.mxu0 %vm1339_vm1, %v1287_v3  ;;  %v1296_v3 = vmax.f32 %v1232_v55, 0.0  ;;  %v1025_v54 = vrot.slane %v733_v60, %v5341_v35  ;;  %v1037_v26 = vrot.slane %v732_v11, %v5341_v35  ;;  %v1242_v45 = vadd.f32 %v1045_v36, %v469_v37 }
 0x113   : > { %4809 = vmatprep.mubr.msk.f32.mxu0 %vm1339_vm1, %v1288_v9  ;;  %v1297_v6 = vmax.f32 %v1233_v63, 0.0  ;;  %v1235_v9 = vadd.f32 %v1017_v61, %v464_v51  ;;  %v1300_v18 = vmax.f32 %v1236_v48, 0.0  ;;  %v1302_v38 = vmax.f32 %v1238_v10, 0.0 }
 0x114   : > { %v1237_v15 = vadd.f32 %v1025_v54, %v464_v51  ;;  %v1240_v39 = vadd.f32 %v1037_v26, %v464_v51  ;;  %v1243_v46 = vadd.f32 %v1049_v41, %v469_v37  ;;  %v781_v52 = vcombine.high %v5418_v7, %v5418_v7 }
 0x115   : > { %v1299_v14 = vmax.f32 %v1235_v9, 0.0  ;;  %v783_v50 = vcombine.high %v5428_v17, %v5428_v17  ;;  %v1065_v55 = vrot.slane %v5428_v17, %v5341_v35  ;;  %v829_v17 = vcombine.high %v5495_v24, %v5495_v24 }
 0x116   : > { %4810 = vmatmul.mubr.msk.f32.gmra.mxu0 %vm1339_vm1, %v1289_v13  ;;  %v734_v13 = vcombine.high %v730_v5, %v730_v5  ;;  %v1301_v27 = vmax.f32 %v1237_v15, 0.0  ;;  %v1304_v2 = vmax.f32 %v1240_v39, 0.0  ;;  %v1307_v56 = vmax.f32 %v1243_v46, 0.0 }
 0x117   : > { %4812 = vmatprep.mubr.msk.f32.mxu0 %vm1339_vm1, %v1290_v30  ;;  %v1239_v30 = vadd.f32 %v1033_v16, %v464_v51  ;;  %v1069_v60 = vrot.slane %v781_v52, %v5341_v35  ;;  %v1247_v63 = vadd.f32 %v1065_v55, %v469_v37  ;;  %v1073_v0 = vrot.slane %v783_v50, %v5341_v35 }
 0x118   : > { %v1041_v31 = vrot.slane %v734_v13, %v5341_v35  ;;  %v831_v5 = vcombine.high %v5508_v33, %v5508_v33  ;;  %v1085_v11 = vrot.slane %v829_v17, %v5341_v35  ;;  %v830_v15 = vcombine.high %v5498_v25, %v5498_v25 }
 0x119   : > { %v1303_v42 = vmax.f32 %v1239_v30, 0.0  ;;  %v1311_v9 = vmax.f32 %v1247_v63, 0.0  ;;  %v1249_v54 = vadd.f32 %v1073_v0, %v469_v37  ;;  %v1109_v39 = vrot.slane %v5478_v12, %v5341_v35 }
 0x11a   : > { %4813 = vmatmul.mubr.msk.f32.gmra.mxu0 %vm1339_vm1, %v1291_v40  ;;  %v782_v40 = vcombine.high %v5421_v8, %v5421_v8  ;;  %v1241_v43 = vadd.f32 %v1041_v31, %v464_v51  ;;  %v1061_v8 = vrot.slane %v5418_v7, %v5341_v35  ;;  %v1306_v51 = vmax.f32 %v1242_v45, 0.0 }
 0x11b   : > { %4815 = vmatprep.mubr.msk.f32.mxu0 %vm1339_vm1, %v1292_v44  ;;  %v1053_v44 = vrot.slane %v780_v23, %v5341_v35  ;;  %v1077_v7 = vrot.slane %v5495_v24, %v5341_v35  ;;  %v1313_v48 = vmax.f32 %v1249_v54, 0.0  ;;  %v1097_v23 = vrot.slane %v5511_v34, %v5341_v35 }
 0x11c   : > { %v1305_v21 = vmax.f32 %v1241_v43, 0.0  ;;  %v1057_v49 = vrot.slane %v782_v40, %v5341_v35  ;;  %v1246_v59 = vadd.f32 %v1061_v8, %v469_v37  ;;  %v1101_v31 = vrot.slane %v830_v15, %v5341_v35 }
 0x11d   : > { %v1113_v43 = vrot.slane %v5489_v20, %v5341_v35 }
 0x11e   : > { %4816 = vmatmul.mubr.msk.f32.gmra.mxu0 %vm1339_vm1, %v1293_v53  ;;  %v1244_v53 = vadd.f32 %v1053_v44, %v469_v37  ;;  %v1245_v57 = vadd.f32 %v1057_v49, %v469_v37  ;;  %v1310_v1 = vmax.f32 %v1246_v59, 0.0  ;;  %v879_v49 = vcombine.high %v5486_v19, %v5486_v19 }
 0x11f   : > { %4818 = vmatprep.mubr.msk.f32.mxu0 %vm1339_vm1, %v1294_v28  ;;  %v473_v28 = vpop.f32.mrf.mxu1 }
 0x120   : > { %v1308_v58 = vmax.f32 %v1244_v53, 0.0  ;;  %v474_v61 = vadd.f32 %v5336_v29, %v473_v28  ;;  %v1133_v55 = vrot.slane %v879_v49, %v5341_v35 }
 0x122   : > { %4819 = vmatmul.mubr.msk.f32.gmra.mxu0 %vm1339_vm1, %v1295_v62  ;;  %v1309_v62 = vmax.f32 %v1245_v57, 0.0  ;;  %v1252_v16 = vadd.f32 %v1085_v11, %v474_v61  ;;  %v1256_v41 = vadd.f32 %v1101_v31, %v474_v61 }
 0x123   : > { %4821 = vmatprep.mubr.msk.f32.mxu0 %vm1339_vm1, %v1296_v3  ;;  %v1248_v3 = vadd.f32 %v1069_v60, %v469_v37  ;;  %v1255_v37 = vadd.f32 %v1097_v23, %v474_v61 }
 0x125   : > { %v1312_v22 = vmax.f32 %v1248_v3, 0.0  ;;  %v1319_v44 = vmax.f32 %v1255_v37, 0.0 }
 0x126   : > { %4822 = vmatmul.mubr.msk.f32.gmra.mxu0 %vm1339_vm1, %v1297_v6  ;;  %v1081_v6 = vrot.slane %v5508_v33, %v5341_v35  ;;  %v1093_v33 = vrot.slane %v5498_v25, %v5341_v35  ;;  %v878_v25 = vcombine.high %v5478_v12, %v5478_v12 }
 0x127   : > { %4824 = vmatprep.mubr.msk.f32.mxu0 %vm1339_vm1, %v1298_v4  ;;  %v1250_v4 = vadd.f32 %v1077_v7, %v474_v61 }
 0x128   : > { %v1251_v13 = vadd.f32 %v1081_v6, %v474_v61  ;;  %v1254_v30 = vadd.f32 %v1093_v33, %v474_v61  ;;  %v1117_v45 = vrot.slane %v878_v25, %v5341_v35 }
 0x129   : > { %v1314_v24 = vmax.f32 %v1250_v4, 0.0 }
 0x12a   : > { %4825 = vmatmul.mubr.msk.f32.gmra.mxu0 %vm1339_vm1, %v1299_v14  ;;  %v1089_v14 = vrot.slane %v831_v5, %v5341_v35  ;;  %v1315_v10 = vmax.f32 %v1251_v13, 0.0  ;;  %v1318_v40 = vmax.f32 %v1254_v30, 0.0 }
 0x12b   : > { %4827 = vmatprep.mubr.msk.f32.mxu0 %vm1339_vm1, %v1300_v18  ;;  %v832_v18 = vcombine.high %v5511_v34, %v5511_v34  ;;  %v479_v34 = vadd.f32 %v4767_v47, %v5336_v29 }
 0x12c   : > { %v1253_v26 = vadd.f32 %v1089_v14, %v474_v61 }
 0x12d   : > { %v1258_v12 = vadd.f32 %v1109_v39, %v479_v34  ;;  %v1259_v46 = vadd.f32 %v1113_v43, %v479_v34  ;;  %v1260_v8 = vadd.f32 %v1117_v45, %v479_v34  ;;  %v1264_v7 = vadd.f32 %v1133_v55, %v479_v34 }
 0x12e   : > { %4828 = vmatmul.mubr.msk.f32.gmra.mxu0 %vm1339_vm1, %v1301_v27  ;;  %v1316_v27 = vmax.f32 %v1252_v16, 0.0  ;;  %v1317_v36 = vmax.f32 %v1253_v26, 0.0 }
 0x12f   : > { %4830 = vmatprep.mubr.msk.f32.mxu0 %vm1339_vm1, %v1302_v38  ;;  %v1105_v38 = vrot.slane %v832_v18, %v5341_v35  ;;  %v1322_v52 = vmax.f32 %v1258_v12, 0.0  ;;  %v1323_v53 = vmax.f32 %v1259_v46, 0.0  ;;  %v1324_v57 = vmax.f32 %v1260_v8, 0.0 }
 0x132   : > { %4831 = vmatmul.mubr.msk.f32.gmra.mxu0 %vm1339_vm1, %v1303_v42  ;;  %v880_v42 = vcombine.high %v5489_v20, %v5489_v20  ;;  %v1125_v20 = vrot.slane %v5486_v19, %v5341_v35 }
 0x133   : > { %4833 = vmatprep.mubr.msk.f32.mxu0 %vm1339_vm1, %v1304_v2  ;;  %v1257_v2 = vadd.f32 %v1105_v38, %v474_v61 }
 0x134   : > { %v1121_v47 = vrot.slane %v880_v42, %v5341_v35  ;;  %v1262_v28 = vadd.f32 %v1125_v20, %v479_v34 }
 0x135   : > { %v1321_v29 = vmax.f32 %v1257_v2, 0.0 }
 0x136   : > { %4834 = vmatmul.mubr.msk.f32.gmra.mxu0 %vm1339_vm1, %v1305_v21  ;;  %v1320_v21 = vmax.f32 %v1256_v41, 0.0  ;;  %v1261_v50 = vadd.f32 %v1121_v47, %v479_v34  ;;  %v1326_v60 = vmax.f32 %v1262_v28, 0.0 }
 0x137   : > { %4836 = vmatprep.mubr.msk.f32.mxu0 %vm1339_vm1, %v1306_v51  ;;  %v881_v51 = vcombine.high %v5504_v32, %v5504_v32 }
 0x138   : > { %v1325_v19 = vmax.f32 %v1261_v50, 0.0 }
 0x139   : > { %v1137_v59 = vrot.slane %v881_v51, %v5341_v35 }
 0x13a   : > { %4837 = vmatmul.mubr.msk.f32.gmra.mxu0 %vm1339_vm1, %v1307_v56  ;;  %v1129_v56 = vrot.slane %v5504_v32, %v5341_v35  ;;  %v5645_v35 = vld [vmem:[%s6627_s4 + $0x10] ss:$0 sm:$0xff] }
 0x13b   : > { %4839 = vmatprep.mubr.msk.f32.mxu0 %vm1339_vm1, %v1308_v58  ;;  %v1265_v32 = vadd.f32 %v1137_v59, %v479_v34 }
 0x13c   : > { %v1263_v58 = vadd.f32 %v1129_v56, %v479_v34 }
 0x13d   : > { %v1329_v63 = vmax.f32 %v1265_v32, 0.0 }
 0x13e   : > { %4840 = vmatmul.mubr.msk.f32.gmra.mxu0 %vm1339_vm1, %v1309_v62  ;;  %v1327_v61 = vmax.f32 %v1263_v58, 0.0  ;;  %v1328_v62 = vmax.f32 %v1264_v7, 0.0 }
 0x13f   : > { %4842 = vmatprep.mubr.msk.f32.mxu0 %vm1339_vm1, %v1310_v1 }
 0x142   : > { %4843 = vmatmul.mubr.msk.f32.gmra.mxu0 %vm1339_vm1, %v1311_v9 }
 0x143   : > { %4845 = vmatprep.mubr.msk.f32.mxu0 %vm1339_vm1, %v1312_v22 }
 0x146   : > { %4846 = vmatmul.mubr.msk.f32.gmra.mxu0 %vm1339_vm1, %v1313_v48 }
 0x147   : > { %4848 = vmatprep.mubr.msk.f32.mxu0 %vm1339_vm1, %v1314_v24 }
 0x14a   : > { %4849 = vmatmul.mubr.msk.f32.gmra.mxu0 %vm1339_vm1, %v1315_v10 }
 0x14b   : > { %4851 = vmatprep.mubr.msk.f32.mxu0 %vm1339_vm1, %v1316_v27 }
 0x14e   : > { %4852 = vmatmul.mubr.msk.f32.gmra.mxu0 %vm1339_vm1, %v1317_v36 }
 0x14f   : > { %4854 = vmatprep.mubr.msk.f32.mxu0 %vm1339_vm1, %v1318_v40 }
 0x152   : > { %4855 = vmatmul.mubr.msk.f32.gmra.mxu0 %vm1339_vm1, %v1319_v44 }
 0x153   : > { %4857 = vmatprep.mubr.msk.f32.mxu0 %vm1339_vm1, %v1320_v21 }
 0x156   : > { %4858 = vmatmul.mubr.msk.f32.gmra.mxu0 %vm1339_vm1, %v1321_v29 }
 0x157   : > { %4860 = vmatprep.mubr.msk.f32.mxu0 %vm1339_vm1, %v1322_v52 }
 0x15a   : > { %4861 = vmatmul.mubr.msk.f32.gmra.mxu0 %vm1339_vm1, %v1323_v53 }
 0x15b   : > { %4863 = vmatprep.mubr.msk.f32.mxu0 %vm1339_vm1, %v1324_v57 }
 0x15e   : > { %4864 = vmatmul.mubr.msk.f32.gmra.mxu0 %vm1339_vm1, %v1325_v19 }
 0x15f   : > { %4866 = vmatprep.mubr.msk.f32.mxu0 %vm1339_vm1, %v1326_v60 }
 0x162   : > { %4867 = vmatmul.mubr.msk.f32.gmra.mxu0 %vm1339_vm1, %v1327_v61 }
 0x163   : > { %4869 = vmatprep.mubr.msk.f32.mxu0 %vm1339_vm1, %v1328_v62 }
 0x166   : > { %4870 = vmatmul.mubr.msk.f32.gmra.mxu0 %vm1339_vm1, %v1329_v63 }
 0x1aa   : > { %v4778_v0 = vpop.f32.mrf.mxu0 }
 0x1ab   : > { %v1604_v17 = vadd.f32 %v4778_v0, %v5645_v35 }
 0x1ac   : > { %v1598_v1 = vpop.f32.mrf.mxu0 }
 0x1ad   : > { %v1599_v3 = vadd.f32 %v5645_v35, %v1598_v1  ;;  %v1918_v6 = vmax.f32 %v1604_v17, 0.0 }
 0x1ae   : > { %v4781_v4 = vpop.f32.mrf.mxu0 }
 0x1af   : > { %v1917_v5 = vmax.f32 %v1599_v3, 0.0  ;;  %v1614_v9 = vadd.f32 %v4781_v4, %v5645_v35 }
 0x1b0   : > { %v1608_v54 = vpop.f32.mrf.mxu0 }
 0x1b1   : > { %v1609_v11 = vadd.f32 %v5645_v35, %v1608_v54  ;;  %4876 = vmatprep.mubr.msk.f32.mxu1 %vm240_vm0, %v1917_v5  ;;  %v1920_v48 = vmax.f32 %v1614_v9, 0.0 }
 0x1b2   : > { %v4784_v22 = vpop.f32.mrf.mxu0  ;;  %4877 = vmatmul.mubr.msk.f32.vlgmr.msra.gmra.mxu1 %vm240_vm0, %v1918_v6 }
 0x1b3   : > { %v1919_v24 = vmax.f32 %v1609_v11, 0.0  ;;  %v1624_v13 = vadd.f32 %v4784_v22, %v5645_v35 }
 0x1b4   : > { %v1618_v14 = vpop.f32.mrf.mxu0 }
 0x1b5   : > { %v1619_v15 = vadd.f32 %v5645_v35, %v1618_v14  ;;  %4879 = vmatprep.mubr.msk.f32.mxu1 %vm240_vm0, %v1919_v24  ;;  %v1922_v18 = vmax.f32 %v1624_v13, 0.0 }
 0x1b6   : > { %v4787_v33 = vpop.f32.mrf.mxu0  ;;  %4880 = vmatmul.mubr.msk.f32.gmra.mxu1 %vm240_vm0, %v1920_v48 }
 0x1b7   : > { %v1921_v16 = vmax.f32 %v1619_v15, 0.0  ;;  %v1634_v10 = vadd.f32 %v4787_v33, %v5645_v35 }
 0x1b8   : > { %v1628_v26 = vpop.f32.mrf.mxu0 }
 0x1b9   : > { %v1629_v23 = vadd.f32 %v5645_v35, %v1628_v26  ;;  %4882 = vmatprep.mubr.msk.f32.mxu1 %vm240_vm0, %v1921_v16  ;;  %v1924_v31 = vmax.f32 %v1634_v10, 0.0 }
 0x1ba   : > { %v4790_v27 = vpop.f32.mrf.mxu0  ;;  %4883 = vmatmul.mubr.msk.f32.gmra.mxu1 %vm240_vm0, %v1922_v18 }
 0x1bb   : > { %v1923_v30 = vmax.f32 %v1629_v23, 0.0  ;;  %v1644_v25 = vadd.f32 %v4790_v27, %v5645_v35 }
 0x1bc   : > { %v1638_v36 = vpop.f32.mrf.mxu0 }
 0x1bd   : > { %v1639_v37 = vadd.f32 %v5645_v35, %v1638_v36  ;;  %4885 = vmatprep.mubr.msk.f32.mxu1 %vm240_vm0, %v1923_v30  ;;  %v1926_v34 = vmax.f32 %v1644_v25, 0.0 }
 0x1be   : > { %v4793_v38 = vpop.f32.mrf.mxu0  ;;  %4886 = vmatmul.mubr.msk.f32.gmra.mxu1 %vm240_vm0, %v1924_v31 }
 0x1bf   : > { %v1925_v39 = vmax.f32 %v1639_v37, 0.0  ;;  %v1654_v40 = vadd.f32 %v4793_v38, %v5645_v35 }
 0x1c0   : > { %v1648_v41 = vpop.f32.mrf.mxu0 }
 0x1c1   : > { %v1649_v42 = vadd.f32 %v5645_v35, %v1648_v41  ;;  %4888 = vmatprep.mubr.msk.f32.mxu1 %vm240_vm0, %v1925_v39  ;;  %v1928_v2 = vmax.f32 %v1654_v40, 0.0 }
 0x1c2   : > { %v4796_v43 = vpop.f32.mrf.mxu0  ;;  %4889 = vmatmul.mubr.msk.f32.gmra.mxu1 %vm240_vm0, %v1926_v34 }
 0x1c3   : > { %v1927_v44 = vmax.f32 %v1649_v42, 0.0  ;;  %v1664_v45 = vadd.f32 %v4796_v43, %v5645_v35 }
 0x1c4   : > { %v1658_v21 = vpop.f32.mrf.mxu0 }
 0x1c5   : > { %v1659_v12 = vadd.f32 %v5645_v35, %v1658_v21  ;;  %4891 = vmatprep.mubr.msk.f32.mxu1 %vm240_vm0, %v1927_v44  ;;  %v1930_v47 = vmax.f32 %v1664_v45, 0.0 }
 0x1c6   : > { %v4799_v29 = vpop.f32.mrf.mxu0  ;;  %4892 = vmatmul.mubr.msk.f32.gmra.mxu1 %vm240_vm0, %v1928_v2 }
 0x1c7   : > { %v1929_v46 = vmax.f32 %v1659_v12, 0.0  ;;  %v1674_v49 = vadd.f32 %v4799_v29, %v5645_v35 }
 0x1c8   : > { %v1668_v20 = vpop.f32.mrf.mxu0 }
 0x1c9   : > { %v1669_v52 = vadd.f32 %v5645_v35, %v1668_v20  ;;  %4894 = vmatprep.mubr.msk.f32.mxu1 %vm240_vm0, %v1929_v46  ;;  %v1932_v53 = vmax.f32 %v1674_v49, 0.0 }
 0x1ca   : > { %v4802_v8 = vpop.f32.mrf.mxu0  ;;  %4895 = vmatmul.mubr.msk.f32.gmra.mxu1 %vm240_vm0, %v1930_v47 }
 0x1cb   : > { %v1931_v51 = vmax.f32 %v1669_v52, 0.0  ;;  %v1684_v50 = vadd.f32 %v4802_v8, %v5645_v35 }
 0x1cc   : > { %v1678_v56 = vpop.f32.mrf.mxu0 }
 0x1cd   : > { %v1679_v57 = vadd.f32 %v5645_v35, %v1678_v56  ;;  %4897 = vmatprep.mubr.msk.f32.mxu1 %vm240_vm0, %v1931_v51  ;;  %v1934_v19 = vmax.f32 %v1684_v50, 0.0 }
 0x1ce   : > { %v4805_v28 = vpop.f32.mrf.mxu0  ;;  %4898 = vmatmul.mubr.msk.f32.gmra.mxu1 %vm240_vm0, %v1932_v53 }
 0x1cf   : > { %v1933_v55 = vmax.f32 %v1679_v57, 0.0  ;;  %v1694_v58 = vadd.f32 %v4805_v28, %v5645_v35 }
 0x1d0   : > { %v1688_v59 = vpop.f32.mrf.mxu0 }
 0x1d1   : > { %v1689_v60 = vadd.f32 %v5645_v35, %v1688_v59  ;;  %4900 = vmatprep.mubr.msk.f32.mxu1 %vm240_vm0, %v1933_v55  ;;  %v1936_v32 = vmax.f32 %v1694_v58, 0.0 }
 0x1d2   : > { %v4808_v7 = vpop.f32.mrf.mxu0  ;;  %4901 = vmatmul.mubr.msk.f32.gmra.mxu1 %vm240_vm0, %v1934_v19 }
 0x1d3   : > { %v1935_v61 = vmax.f32 %v1689_v60, 0.0  ;;  %v1704_v62 = vadd.f32 %v4808_v7, %v5645_v35 }
 0x1d4   : > { %v1698_v63 = vpop.f32.mrf.mxu0 }
 0x1d5   : > { %v1699_v0 = vadd.f32 %v5645_v35, %v1698_v63  ;;  %4903 = vmatprep.mubr.msk.f32.mxu1 %vm240_vm0, %v1935_v61  ;;  %v1938_v3 = vmax.f32 %v1704_v62, 0.0 }
 0x1d6   : > { %v4811_v17 = vpop.f32.mrf.mxu0  ;;  %4904 = vmatmul.mubr.msk.f32.gmra.mxu1 %vm240_vm0, %v1936_v32 }
 0x1d7   : > { %v1937_v1 = vmax.f32 %v1699_v0, 0.0  ;;  %v1714_v4 = vadd.f32 %v4811_v17, %v5645_v35 }
 0x1d8   : > { %v1708_v5 = vpop.f32.mrf.mxu0 }
 0x1d9   : > { %v1709_v6 = vadd.f32 %v5645_v35, %v1708_v5  ;;  %4906 = vmatprep.mubr.msk.f32.mxu1 %vm240_vm0, %v1937_v1  ;;  %v1940_v11 = vmax.f32 %v1714_v4, 0.0 }
 0x1da   : > { %v4814_v9 = vpop.f32.mrf.mxu0  ;;  %4907 = vmatmul.mubr.msk.f32.gmra.mxu1 %vm240_vm0, %v1938_v3 }
 0x1db   : > { %v1939_v54 = vmax.f32 %v1709_v6, 0.0  ;;  %v1724_v22 = vadd.f32 %v4814_v9, %v5645_v35 }
 0x1dc   : > { %v1718_v24 = vpop.f32.mrf.mxu0 }
 0x1dd   : > { %v1719_v48 = vadd.f32 %v5645_v35, %v1718_v24  ;;  %4909 = vmatprep.mubr.msk.f32.mxu1 %vm240_vm0, %v1939_v54  ;;  %v1942_v15 = vmax.f32 %v1724_v22, 0.0 }
 0x1de   : > { %v4817_v13 = vpop.f32.mrf.mxu0  ;;  %4910 = vmatmul.mubr.msk.f32.gmra.mxu1 %vm240_vm0, %v1940_v11 }
 0x1df   : > { %v1941_v14 = vmax.f32 %v1719_v48, 0.0  ;;  %v1734_v33 = vadd.f32 %v4817_v13, %v5645_v35 }
 0x1e0   : > { %v1728_v16 = vpop.f32.mrf.mxu0 }
 0x1e1   : > { %v1729_v18 = vadd.f32 %v5645_v35, %v1728_v16  ;;  %4912 = vmatprep.mubr.msk.f32.mxu1 %vm240_vm0, %v1941_v14  ;;  %v1944_v23 = vmax.f32 %v1734_v33, 0.0 }
 0x1e2   : > { %v4820_v10 = vpop.f32.mrf.mxu0  ;;  %4913 = vmatmul.mubr.msk.f32.gmra.mxu1 %vm240_vm0, %v1942_v15 }
 0x1e3   : > { %v1943_v26 = vmax.f32 %v1729_v18, 0.0  ;;  %v1744_v27 = vadd.f32 %v4820_v10, %v5645_v35 }
 0x1e4   : > { %v1738_v30 = vpop.f32.mrf.mxu0 }
 0x1e5   : > { %v1739_v31 = vadd.f32 %v5645_v35, %v1738_v30  ;;  %4915 = vmatprep.mubr.msk.f32.mxu1 %vm240_vm0, %v1943_v26  ;;  %v1946_v37 = vmax.f32 %v1744_v27, 0.0  ;;  %v3349_v27 = vld [vmem:[%s6626_s3 + $0x58] sm:$0xff] }
 0x1e6   : > { %v4823_v25 = vpop.f32.mrf.mxu0  ;;  %4916 = vmatmul.mubr.msk.f32.gmra.mxu1 %vm240_vm0, %v1944_v23  ;;  %4972 = vmatprep.subr.mxu0 %v3349_v27 }
 0x1e7   : > { %v1945_v36 = vmax.f32 %v1739_v31, 0.0  ;;  %v1754_v38 = vadd.f32 %v4823_v25, %v5645_v35  ;;  %4973 = vmatpush3.msra.mxu0 %v3349_v27 }
 0x1e8   : > { %v1748_v39 = vpop.f32.mrf.mxu0 }
 0x1e9   : > { %v1749_v34 = vadd.f32 %v5645_v35, %v1748_v39  ;;  %4918 = vmatprep.mubr.msk.f32.mxu1 %vm240_vm0, %v1945_v36  ;;  %v1948_v42 = vmax.f32 %v1754_v38, 0.0 }
 0x1ea   : > { %v4826_v40 = vpop.f32.mrf.mxu0  ;;  %4919 = vmatmul.mubr.msk.f32.gmra.mxu1 %vm240_vm0, %v1946_v37 }
 0x1eb   : > { %v1947_v41 = vmax.f32 %v1749_v34, 0.0  ;;  %v1764_v43 = vadd.f32 %v4826_v40, %v5645_v35 }
 0x1ec   : > { %v1758_v44 = vpop.f32.mrf.mxu0 }
 0x1ed   : > { %v1759_v2 = vadd.f32 %v5645_v35, %v1758_v44  ;;  %4921 = vmatprep.mubr.msk.f32.mxu1 %vm240_vm0, %v1947_v41  ;;  %v1950_v12 = vmax.f32 %v1764_v43, 0.0 }
 0x1ee   : > { %v4829_v45 = vpop.f32.mrf.mxu0  ;;  %4922 = vmatmul.mubr.msk.f32.gmra.mxu1 %vm240_vm0, %v1948_v42 }
 0x1ef   : > { %v1949_v21 = vmax.f32 %v1759_v2, 0.0  ;;  %v1774_v29 = vadd.f32 %v4829_v45, %v5645_v35 }
 0x1f0   : > { %v1768_v46 = vpop.f32.mrf.mxu0 }
 0x1f1   : > { %v1769_v47 = vadd.f32 %v5645_v35, %v1768_v46  ;;  %4924 = vmatprep.mubr.msk.f32.mxu1 %vm240_vm0, %v1949_v21  ;;  %v1952_v52 = vmax.f32 %v1774_v29, 0.0 }
 0x1f2   : > { %v4832_v49 = vpop.f32.mrf.mxu0  ;;  %4925 = vmatmul.mubr.msk.f32.gmra.mxu1 %vm240_vm0, %v1950_v12 }
 0x1f3   : > { %v1951_v20 = vmax.f32 %v1769_v47, 0.0  ;;  %v1784_v8 = vadd.f32 %v4832_v49, %v5645_v35 }
 0x1f4   : > { %v1778_v51 = vpop.f32.mrf.mxu0 }
 0x1f5   : > { %v1779_v53 = vadd.f32 %v5645_v35, %v1778_v51  ;;  %4927 = vmatprep.mubr.msk.f32.mxu1 %vm240_vm0, %v1951_v20  ;;  %v1954_v57 = vmax.f32 %v1784_v8, 0.0 }
 0x1f6   : > { %v4835_v50 = vpop.f32.mrf.mxu0  ;;  %4928 = vmatmul.mubr.msk.f32.gmra.mxu1 %vm240_vm0, %v1952_v52 }
 0x1f7   : > { %v1953_v56 = vmax.f32 %v1779_v53, 0.0  ;;  %v1794_v28 = vadd.f32 %v4835_v50, %v5645_v35 }
 0x1f8   : > { %v1788_v55 = vpop.f32.mrf.mxu0 }
 0x1f9   : > { %v1789_v19 = vadd.f32 %v5645_v35, %v1788_v55  ;;  %4930 = vmatprep.mubr.msk.f32.mxu1 %vm240_vm0, %v1953_v56  ;;  %v1956_v60 = vmax.f32 %v1794_v28, 0.0 }
 0x1fa   : > { %v4838_v58 = vpop.f32.mrf.mxu0  ;;  %4931 = vmatmul.mubr.msk.f32.gmra.mxu1 %vm240_vm0, %v1954_v57 }
 0x1fb   : > { %v1955_v59 = vmax.f32 %v1789_v19, 0.0  ;;  %v1804_v7 = vadd.f32 %v4838_v58, %v5645_v35 }
 0x1fc   : > { %v1798_v61 = vpop.f32.mrf.mxu0 }
 0x1fd   : > { %v1799_v32 = vadd.f32 %v5645_v35, %v1798_v61  ;;  %4933 = vmatprep.mubr.msk.f32.mxu1 %vm240_vm0, %v1955_v59  ;;  %v1958_v0 = vmax.f32 %v1804_v7, 0.0 }
 0x1fe   : > { %v4841_v62 = vpop.f32.mrf.mxu0  ;;  %4934 = vmatmul.mubr.msk.f32.gmra.mxu1 %vm240_vm0, %v1956_v60 }
 0x1ff   : > { %v1957_v63 = vmax.f32 %v1799_v32, 0.0  ;;  %v1814_v17 = vadd.f32 %v4841_v62, %v5645_v35 }
 0x200   : > { %v1808_v1 = vpop.f32.mrf.mxu0 }
 0x201   : > { %v1809_v3 = vadd.f32 %v5645_v35, %v1808_v1  ;;  %4936 = vmatprep.mubr.msk.f32.mxu1 %vm240_vm0, %v1957_v63  ;;  %v1960_v6 = vmax.f32 %v1814_v17, 0.0 }
 0x202   : > { %v4844_v4 = vpop.f32.mrf.mxu0  ;;  %4937 = vmatmul.mubr.msk.f32.gmra.mxu1 %vm240_vm0, %v1958_v0 }
 0x203   : > { %v1959_v5 = vmax.f32 %v1809_v3, 0.0  ;;  %v1824_v9 = vadd.f32 %v4844_v4, %v5645_v35  ;;  %v3348_v4 = vld [vmem:[%s6626_s3 + $0x50] sm:$0xff] }
 0x204   : > { %v1818_v54 = vpop.f32.mrf.mxu0  ;;  %4974 = vmatprep.subr.mxu0 %v3348_v4 }
 0x205   : > { %v1819_v11 = vadd.f32 %v5645_v35, %v1818_v54  ;;  %4939 = vmatprep.mubr.msk.f32.mxu1 %vm240_vm0, %v1959_v5  ;;  %v1962_v48 = vmax.f32 %v1824_v9, 0.0  ;;  %4975 = vmatpush3.msra.mxu0 %v3348_v4  ;;  %v2630_v9 = vld [vmem:[%s6624_s1 + $0x8] sm:$0xff] }
 0x206   : > { %v4847_v22 = vpop.f32.mrf.mxu0  ;;  %4940 = vmatmul.mubr.msk.f32.gmra.mxu1 %vm240_vm0, %v1960_v6 }
 0x207   : > { %v1961_v24 = vmax.f32 %v1819_v11, 0.0  ;;  %v1834_v13 = vadd.f32 %v4847_v22, %v5645_v35 }
 0x208   : > { %v1828_v14 = vpop.f32.mrf.mxu0 }
 0x209   : > { %v1829_v15 = vadd.f32 %v5645_v35, %v1828_v14  ;;  %4942 = vmatprep.mubr.msk.f32.mxu1 %vm240_vm0, %v1961_v24  ;;  %v1964_v18 = vmax.f32 %v1834_v13, 0.0  ;;  %v2629_v24 = vld [vmem:[%s6624_s1] sm:$0xff] }
 0x20a   : > { %v4850_v33 = vpop.f32.mrf.mxu0  ;;  %4943 = vmatmul.mubr.msk.f32.gmra.mxu1 %vm240_vm0, %v1962_v48 }
 0x20b   : > { %v1963_v16 = vmax.f32 %v1829_v15, 0.0  ;;  %v1844_v10 = vadd.f32 %v4850_v33, %v5645_v35  ;;  %v2632_v33 = vld [vmem:[%s6624_s1 + $0x18] sm:$0xff] }
 0x20c   : > { %v1838_v26 = vpop.f32.mrf.mxu0 }
 0x20d   : > { %v1839_v23 = vadd.f32 %v5645_v35, %v1838_v26  ;;  %4945 = vmatprep.mubr.msk.f32.mxu1 %vm240_vm0, %v1963_v16  ;;  %v1966_v25 = vmax.f32 %v1844_v10, 0.0 }
 0x20e   : > { %v4853_v30 = vpop.f32.mrf.mxu0  ;;  %4946 = vmatmul.mubr.msk.f32.gmra.mxu1 %vm240_vm0, %v1964_v18 }
 0x20f   : > { %v1965_v31 = vmax.f32 %v1839_v23, 0.0  ;;  %v1854_v36 = vadd.f32 %v4853_v30, %v5645_v35  ;;  %v2631_v30 = vld [vmem:[%s6624_s1 + $0x10] sm:$0xff] }
 0x210   : > { %v1848_v37 = vpop.f32.mrf.mxu0 }
 0x211   : > { %v1849_v38 = vadd.f32 %v5645_v35, %v1848_v37  ;;  %4948 = vmatprep.mubr.msk.f32.mxu1 %vm240_vm0, %v1965_v31  ;;  %v1968_v40 = vmax.f32 %v1854_v36, 0.0 }
 0x212   : > { %v4856_v39 = vpop.f32.mrf.mxu0  ;;  %4949 = vmatmul.mubr.msk.f32.gmra.mxu1 %vm240_vm0, %v1966_v25 }
 0x213   : > { %v1967_v34 = vmax.f32 %v1849_v38, 0.0  ;;  %v1864_v41 = vadd.f32 %v4856_v39, %v5645_v35 }
 0x214   : > { %v1858_v42 = vpop.f32.mrf.mxu0 }
 0x215   : > { %v1859_v43 = vadd.f32 %v5645_v35, %v1858_v42  ;;  %4951 = vmatprep.mubr.msk.f32.mxu1 %vm240_vm0, %v1967_v34  ;;  %v1970_v45 = vmax.f32 %v1864_v41, 0.0 }
 0x216   : > { %v4859_v44 = vpop.f32.mrf.mxu0  ;;  %4952 = vmatmul.mubr.msk.f32.gmra.mxu1 %vm240_vm0, %v1968_v40  ;;  %v2634_v40 = vld [vmem:[%s6624_s1 + $0x28] sm:$0xff] }
 0x217   : > { %v1969_v2 = vmax.f32 %v1859_v43, 0.0  ;;  %v1874_v21 = vadd.f32 %v4859_v44, %v5645_v35 }
 0x218   : > { %v1868_v12 = vpop.f32.mrf.mxu0 }
 0x219   : > { %v1869_v29 = vadd.f32 %v5645_v35, %v1868_v12  ;;  %4954 = vmatprep.mubr.msk.f32.mxu1 %vm240_vm0, %v1969_v2  ;;  %v1972_v49 = vmax.f32 %v1874_v21, 0.0 }
 0x21a   : > { %v4862_v46 = vpop.f32.mrf.mxu0  ;;  %4955 = vmatmul.mubr.msk.f32.gmra.mxu1 %vm240_vm0, %v1970_v45 }
 0x21b   : > { %v1971_v47 = vmax.f32 %v1869_v29, 0.0  ;;  %v1884_v20 = vadd.f32 %v4862_v46, %v5645_v35  ;;  %v2633_v29 = vld [vmem:[%s6624_s1 + $0x20] sm:$0xff] }
 0x21c   : > { %v1878_v52 = vpop.f32.mrf.mxu0 }
 0x21d   : > { %v1879_v8 = vadd.f32 %v5645_v35, %v1878_v52  ;;  %4957 = vmatprep.mubr.msk.f32.mxu1 %vm240_vm0, %v1971_v47  ;;  %v1974_v50 = vmax.f32 %v1884_v20, 0.0 }
 0x21e   : > { %v4865_v51 = vpop.f32.mrf.mxu0  ;;  %4958 = vmatmul.mubr.msk.f32.gmra.mxu1 %vm240_vm0, %v1972_v49 }
 0x21f   : > { %v1973_v53 = vmax.f32 %v1879_v8, 0.0  ;;  %v1894_v56 = vadd.f32 %v4865_v51, %v5645_v35 }
 0x220   : > { %v1888_v57 = vpop.f32.mrf.mxu0 }
 0x221   : > { %v1889_v28 = vadd.f32 %v5645_v35, %v1888_v57  ;;  %4960 = vmatprep.mubr.msk.f32.mxu1 %vm240_vm0, %v1973_v53  ;;  %v1976_v58 = vmax.f32 %v1894_v56, 0.0  ;;  %v2636_v56 = vld [vmem:[%s6624_s1 + $0x38] sm:$0xff] }
 0x222   : > { %v4868_v55 = vpop.f32.mrf.mxu0  ;;  %4961 = vmatmul.mubr.msk.f32.gmra.mxu1 %vm240_vm0, %v1974_v50 }
 0x223   : > { %v1975_v19 = vmax.f32 %v1889_v28, 0.0  ;;  %v1904_v59 = vadd.f32 %v4868_v55, %v5645_v35 }
 0x224   : > { %v1898_v60 = vpop.f32.mrf.mxu0 }
 0x225   : > { %v1899_v7 = vadd.f32 %v5645_v35, %v1898_v60  ;;  %4963 = vmatprep.mubr.msk.f32.mxu1 %vm240_vm0, %v1975_v19  ;;  %v1978_v62 = vmax.f32 %v1904_v59, 0.0 }
 0x226   : > { %v4871_v61 = vpop.f32.mrf.mxu0  ;;  %4964 = vmatmul.mubr.msk.f32.gmra.mxu1 %vm240_vm0, %v1976_v58 }
 0x227   : > { %v1977_v32 = vmax.f32 %v1899_v7, 0.0  ;;  %v1914_v63 = vadd.f32 %v4871_v61, %v5645_v35 }
 0x228   : > { %v1908_v0 = vpop.f32.mrf.mxu0 }
 0x229   : > { %v1909_v17 = vadd.f32 %v5645_v35, %v1908_v0  ;;  %4966 = vmatprep.mubr.msk.f32.mxu1 %vm240_vm0, %v1977_v32  ;;  %v1980_v3 = vmax.f32 %v1914_v63, 0.0  ;;  %v5784_v35 = vld [vmem:[%s6627_s4 + $0x18] ss:$0 sm:$0xff]  ;;  %v2635_v32 = vld [vmem:[%s6624_s1 + $0x30] sm:$0xff] }
 0x22a   : > { %4967 = vmatmul.mubr.msk.f32.gmra.mxu1 %vm240_vm0, %v1978_v62 }
 0x22b   : > { %v1979_v1 = vmax.f32 %v1909_v17, 0.0 }
 0x22d   : > { %4969 = vmatprep.mubr.msk.f32.mxu1 %vm240_vm0, %v1979_v1 }
 0x22e   : > { %4970 = vmatmul.mubr.msk.f32.gmra.mxu1 %vm240_vm0, %v1980_v3 }
 0x272   : > { %v4878_v5 = vpop.f32.mrf.mxu1 }
 0x273   : > { %v2252_v6 = vadd.f32 %v4878_v5, %v5784_v35 }
 0x274   : > { %v2246_v54 = vpop.f32.mrf.mxu1 }
 0x275   : > { %v2566_v11 = vmax.f32 %v2252_v6, 0.0  ;;  %v2247_v22 = vadd.f32 %v5784_v35, %v2246_v54 }
 0x276   : > { %v4881_v48 = vpop.f32.mrf.mxu1 }
 0x277   : > { %v2694_v13 = vmul.f32 %v2630_v9, %v2566_v11  ;;  %v2565_v14 = vmax.f32 %v2247_v22, 0.0  ;;  %v2262_v15 = vadd.f32 %v4881_v48, %v5784_v35 }
 0x278   : > { %v2256_v16 = vpop.f32.mrf.mxu1 }
 0x279   : > { %v2764_v18 = vsel %vm240_vm0, %v2694_v13, 0.0  ;;  %v2693_v10 = vmul.f32 %v2629_v24, %v2565_v14  ;;  %v2568_v26 = vmax.f32 %v2262_v15, 0.0  ;;  %v2257_v23 = vadd.f32 %v5784_v35, %v2256_v16 }
 0x27a   : > { %v2765_v27 = vrot.slane %v2764_v18, 4  ;;  %v4884_v31 = vpop.f32.mrf.mxu1 }
 0x27b   : > { %v2757_v25 = vsel %vm240_vm0, %v2693_v10, 0.0  ;;  %v2696_v36 = vmul.f32 %v2632_v33, %v2568_v26  ;;  %v2567_v37 = vmax.f32 %v2257_v23, 0.0  ;;  %v2272_v38 = vadd.f32 %v4884_v31, %v5784_v35 }
 0x27c   : > { %v2766_v39 = vadd.f32 %v2765_v27, %v2764_v18  ;;  %v2758_v34 = vrot.slane %v2757_v25, 4  ;;  %v2266_v41 = vpop.f32.mrf.mxu1 }
 0x27d   : > { %v2778_v42 = vsel %vm240_vm0, %v2696_v36, 0.0  ;;  %v2695_v43 = vmul.f32 %v2631_v30, %v2567_v37  ;;  %v2570_v44 = vmax.f32 %v2272_v38, 0.0  ;;  %v2267_v2 = vadd.f32 %v5784_v35, %v2266_v41  ;;  %v2638_v30 = vld [vmem:[%s6624_s1 + $0x48] sm:$0xff] }
 0x27e   : > { %v2767_v45 = vrot.slane %v2766_v39, 2  ;;  %v2759_v21 = vadd.f32 %v2758_v34, %v2757_v25  ;;  %v2779_v12 = vrot.slane %v2778_v42, 4  ;;  %v4887_v46 = vpop.f32.mrf.mxu1 }
 0x27f   : > { %v2771_v47 = vsel %vm240_vm0, %v2695_v43, 0.0  ;;  %v2698_v49 = vmul.f32 %v2634_v40, %v2570_v44  ;;  %v2569_v20 = vmax.f32 %v2267_v2, 0.0  ;;  %v2282_v52 = vadd.f32 %v4887_v46, %v5784_v35 }
 0x280   : > { %v2768_v8 = vadd.f32 %v2767_v45, %v2766_v39  ;;  %v2760_v51 = vrot.slane %v2759_v21, 2  ;;  %v2780_v53 = vadd.f32 %v2779_v12, %v2778_v42  ;;  %v2772_v50 = vrot.slane %v2771_v47, 4  ;;  %v2276_v57 = vpop.f32.mrf.mxu1  ;;  %v2640_v12 = vld [vmem:[%s6624_s1 + $0x58] sm:$0xff] }
 0x281   : > { %v2792_v28 = vsel %vm240_vm0, %v2698_v49, 0.0  ;;  %v2697_v55 = vmul.f32 %v2633_v29, %v2569_v20  ;;  %v2572_v19 = vmax.f32 %v2282_v52, 0.0  ;;  %v2277_v58 = vadd.f32 %v5784_v35, %v2276_v57 }
 0x282   : > { %v2769_v59 = vrot.slane %v2768_v8, 1  ;;  %v2761_v60 = vadd.f32 %v2760_v51, %v2759_v21  ;;  %v2781_v7 = vrot.slane %v2780_v53, 2  ;;  %v2773_v61 = vadd.f32 %v2772_v50, %v2771_v47  ;;  %v4890_v62 = vpop.f32.mrf.mxu1  ;;  %v2637_v21 = vld [vmem:[%s6624_s1 + $0x40] sm:$0xff] }
 0x283   : > { %v2793_v63 = vrot.slane %v2792_v28, 4  ;;  %v2785_v0 = vsel %vm240_vm0, %v2697_v55, 0.0  ;;  %v2700_v17 = vmul.f32 %v2636_v56, %v2572_v19  ;;  %v2571_v1 = vmax.f32 %v2277_v58, 0.0 }
 0x284   : > { %v2762_v3 = vrot.slane %v2761_v60, 1  ;;  %v2782_v4 = vadd.f32 %v2781_v7, %v2780_v53  ;;  %v2774_v5 = vrot.slane %v2773_v61, 2  ;;  %v2286_v6 = vpop.f32.mrf.mxu1  ;;  %v2786_v54 = vrot.slane %v2785_v0, 4 }
 0x285   : > { %v2794_v9 = vadd.f32 %v2793_v63, %v2792_v28  ;;  %v2806_v11 = vsel %vm240_vm0, %v2700_v17, 0.0  ;;  %v2699_v22 = vmul.f32 %v2635_v32, %v2571_v1  ;;  %v2770_v24 = vadd.f32 %v2769_v59, %v2768_v8 }
 0x286   : > { %v2775_v48 = vadd.f32 %v2774_v5, %v2773_v61  ;;  %v2807_v13 = vrot.slane %v2806_v11, 4  ;;  %v4893_v14 = vpop.f32.mrf.mxu1  ;;  %v2787_v33 = vadd.f32 %v2786_v54, %v2785_v0  ;;  %v2292_v18 = vadd.f32 %v4890_v62, %v5784_v35 }
 0x287   : > { %v2795_v15 = vrot.slane %v2794_v9, 2  ;;  %v2799_v16 = vsel %vm240_vm0, %v2699_v22, 0.0  ;;  %v2763_v10 = vadd.f32 %v2762_v3, %v2761_v60  ;;  %v2783_v26 = vrot.slane %v2782_v4, 1  ;;  %v2639_v3 = vld [vmem:[%s6624_s1 + $0x50] sm:$0xff] }
 0x288   : > { %v2776_v23 = vrot.slane %v2775_v48, 1  ;;  %v2808_v27 = vadd.f32 %v2807_v13, %v2806_v11  ;;  %v2296_v31 = vpop.f32.mrf.mxu1  ;;  %v2788_v36 = vrot.slane %v2787_v33, 2  ;;  %v2800_v37 = vrot.slane %v2799_v16, 4  ;;  %v2641_v13 = vld [vmem:[%s6624_s1 + $0x60] sm:$0xff] }
 0x289   : > { %v2796_v25 = vadd.f32 %v2795_v15, %v2794_v9  ;;  %v2574_v38 = vmax.f32 %v2292_v18, 0.0  ;;  %v2287_v40 = vadd.f32 %v5784_v35, %v2286_v6  ;;  %v2302_v41 = vadd.f32 %v4893_v14, %v5784_v35 }
 0x28a   : > { %v2777_v39 = vadd.f32 %v2776_v23, %v2775_v48  ;;  %v2809_v34 = vrot.slane %v2808_v27, 2  ;;  %v4896_v42 = vpop.f32.mrf.mxu1  ;;  %v2789_v44 = vadd.f32 %v2788_v36, %v2787_v33  ;;  %v2801_v2 = vadd.f32 %v2800_v37, %v2799_v16 }
 0x28b   : > { %v2797_v43 = vrot.slane %v2796_v25, 1  ;;  %v2702_v45 = vmul.f32 %v2638_v30, %v2574_v38  ;;  %v3270_v29 = vsel %vm3269_vm2, %v2770_v24, %v2763_v10  ;;  %v2573_v46 = vmax.f32 %v2287_v40, 0.0  ;;  %v2644_v30 = vld [vmem:[%s6624_s1 + $0x78] sm:$0xff] }
 0x28c   : > { %v2576_v47 = vmax.f32 %v2302_v41, 0.0  ;;  %v2306_v49 = vpop.f32.mrf.mxu1  ;;  %v3272_v20 = vsel %vm3271_vm3, %v2777_v39, %v3270_v29  ;;  %v2790_v52 = vrot.slane %v2789_v44, 1  ;;  %v2810_v8 = vadd.f32 %v2809_v34, %v2808_v27 }
 0x28d   : > { %v2802_v51 = vrot.slane %v2801_v2, 2  ;;  %v2784_v53 = vadd.f32 %v2783_v26, %v2782_v4  ;;  %v2820_v50 = vsel %vm240_vm0, %v2702_v45, 0.0  ;;  %v2701_v56 = vmul.f32 %v2637_v21, %v2573_v46  ;;  %v2642_v4 = vld [vmem:[%s6624_s1 + $0x68] sm:$0xff] }
 0x28e   : > { %v2704_v57 = vmul.f32 %v2640_v12, %v2576_v47  ;;  %v4899_v28 = vpop.f32.mrf.mxu1  ;;  %v5841_v55 = vadd.f32 %v2797_v43, %v2796_v25  ;;  %v2821_v58 = vrot.slane %v2820_v50, 4  ;;  %v2297_v59 = vadd.f32 %v5784_v35, %v2296_v31  ;;  %v2643_v43 = vld [vmem:[%s6624_s1 + $0x70] sm:$0xff] }
 0x28f   : > { %v2803_v19 = vadd.f32 %v2802_v51, %v2801_v2  ;;  %v3274_v60 = vsel %vm3273_vm4, %v2784_v53, %v3272_v20  ;;  %v2813_v7 = vsel %vm240_vm0, %v2701_v56, 0.0  ;;  %v2312_v32 = vadd.f32 %v4896_v42, %v5784_v35 }
 0x290   : > { %v2834_v61 = vsel %vm240_vm0, %v2704_v57, 0.0  ;;  %v2316_v62 = vpop.f32.mrf.mxu1  ;;  %v2791_v63 = vadd.f32 %v2790_v52, %v2789_v44  ;;  %v2811_v0 = vrot.slane %v2810_v8, 1  ;;  %v2822_v17 = vadd.f32 %v2821_v58, %v2820_v50 }
 0x291   : > { %v2814_v1 = vrot.slane %v2813_v7, 4  ;;  %v2835_v5 = vrot.slane %v2834_v61, 4  ;;  %v2575_v6 = vmax.f32 %v2297_v59, 0.0  ;;  %v2578_v9 = vmax.f32 %v2312_v32, 0.0 }
 0x292   : > { %v2307_v54 = vadd.f32 %v5784_v35, %v2306_v49  ;;  %v4902_v11 = vpop.f32.mrf.mxu1  ;;  %v2804_v22 = vrot.slane %v2803_v19, 1  ;;  %v2823_v24 = vrot.slane %v2822_v17, 2  ;;  %v2322_v14 = vadd.f32 %v4899_v28, %v5784_v35 }
 0x293   : > { %v2815_v48 = vadd.f32 %v2814_v1, %v2813_v7  ;;  %v2836_v15 = vadd.f32 %v2835_v5, %v2834_v61  ;;  %v2703_v33 = vmul.f32 %v2639_v3, %v2575_v6  ;;  %v2706_v16 = vmul.f32 %v2642_v4, %v2578_v9 }
 0x294   : > { %v2577_v18 = vmax.f32 %v2307_v54, 0.0  ;;  %v2326_v10 = vpop.f32.mrf.mxu1  ;;  %v2824_v26 = vadd.f32 %v2823_v24, %v2822_v17  ;;  %v2580_v27 = vmax.f32 %v2322_v14, 0.0  ;;  %v2317_v31 = vadd.f32 %v5784_v35, %v2316_v62 }
 0x295   : > { %v2816_v23 = vrot.slane %v2815_v48, 2  ;;  %v2837_v25 = vrot.slane %v2836_v15, 2  ;;  %v2827_v36 = vsel %vm240_vm0, %v2703_v33, 0.0  ;;  %v2848_v37 = vsel %vm240_vm0, %v2706_v16, 0.0 }
 0x296   : > { %v2705_v38 = vmul.f32 %v2641_v13, %v2577_v18  ;;  %v4905_v39 = vpop.f32.mrf.mxu1  ;;  %v5865_v34 = vadd.f32 %v2811_v0, %v2810_v8  ;;  %v2828_v41 = vrot.slane %v2827_v36, 4  ;;  %v2849_v42 = vrot.slane %v2848_v37, 4  ;;  %v2646_v0 = vld [vmem:[%s6624_s1 + $0x88] sm:$0xff] }
 0x297   : > { %v2817_v40 = vadd.f32 %v2816_v23, %v2815_v48  ;;  %v2825_v44 = vrot.slane %v2824_v26, 1  ;;  %v2708_v45 = vmul.f32 %v2644_v30, %v2580_v27  ;;  %v2579_v21 = vmax.f32 %v2317_v31, 0.0 }
 0x298   : > { %v2841_v2 = vsel %vm240_vm0, %v2705_v38, 0.0  ;;  %v5871_v12 = vpop.f32.mrf.mxu1  ;;  %v5874_v29 = vsel %vm3275_vm5, %v2791_v63, %v3274_v60  ;;  %v2838_v46 = vadd.f32 %v2837_v25, %v2836_v15  ;;  %v2829_v47 = vadd.f32 %v2828_v41, %v2827_v36  ;;  %v2648_v15 = vld [vmem:[%s6624_s1 + $0x98] sm:$0xff] }
 0x299   : > { %v2850_v49 = vadd.f32 %v2849_v42, %v2848_v37  ;;  %v5876_v20 = vadd.f32 %v2804_v22, %v2803_v19  ;;  %v2842_v52 = vrot.slane %v2841_v2, 4  ;;  %v2862_v8 = vsel %vm240_vm0, %v2708_v45, 0.0 }
 0x29a   : > { %v2707_v51 = vmul.f32 %v2643_v43, %v2579_v21  ;;  %v5879_v53 = vpop.f32.mrf.mxu1  ;;  %v2818_v50 = vrot.slane %v2817_v40, 1  ;;  %v2830_v56 = vrot.slane %v2829_v47, 2  ;;  %v2863_v28 = vrot.slane %v2862_v8, 4 }
 0x29b   : > { %v2851_v57 = vrot.slane %v2850_v49, 2  ;;  %v2826_v58 = vadd.f32 %v2825_v44, %v2824_v26  ;;  %v2843_v59 = vadd.f32 %v2842_v52, %v2841_v2  ;;  %v2332_v7 = vadd.f32 %v4902_v11, %v5784_v35  ;;  %v2645_v11 = vld [vmem:[%s6624_s1 + $0x80] sm:$0xff] }
 0x29c   : > { %v2855_v60 = vsel %vm240_vm0, %v2707_v51, 0.0  ;;  %v5883_v61 = vpop.f32.mrf.mxu1  ;;  %v2839_v19 = vrot.slane %v2838_v46, 1  ;;  %v2831_v32 = vadd.f32 %v2830_v56, %v2829_v47  ;;  %v2864_v63 = vadd.f32 %v2863_v28, %v2862_v8  ;;  %v2647_v28 = vld [vmem:[%s6624_s1 + $0x90] sm:$0xff] }
 0x29d   : > { %v2852_v62 = vadd.f32 %v2851_v57, %v2850_v49  ;;  %v2844_v17 = vrot.slane %v2843_v59, 2  ;;  %v2856_v1 = vrot.slane %v2855_v60, 4  ;;  %v2582_v3 = vmax.f32 %v2332_v7, 0.0 }
 0x29e   : > { %v2327_v4 = vadd.f32 %v5784_v35, %v2326_v10  ;;  %v5889_v5 = vpop.f32.mrf.mxu1  ;;  %v2819_v6 = vadd.f32 %v2818_v50, %v2817_v40  ;;  %v2832_v9 = vrot.slane %v2831_v32, 1  ;;  %v2865_v54 = vrot.slane %v2864_v63, 2 }
 0x29f   : > { %v2342_v22 = vadd.f32 %v4905_v39, %v5784_v35  ;;  %v2845_v24 = vadd.f32 %v2844_v17, %v2843_v59  ;;  %v2857_v48 = vadd.f32 %v2856_v1, %v2855_v60  ;;  %v2710_v13 = vmul.f32 %v2646_v0, %v2582_v3 }
 0x2a0   : > { %v2581_v14 = vmax.f32 %v2327_v4, 0.0  ;;  %v5898_v33 = vpop.f32.mrf.mxu1  ;;  %v2833_v16 = vadd.f32 %v2832_v9, %v2831_v32  ;;  %v2853_v18 = vrot.slane %v2852_v62, 1  ;;  %v2866_v10 = vadd.f32 %v2865_v54, %v2864_v63  ;;  %v2650_v4 = vld [vmem:[%s6624_s1 + $0xa8] sm:$0xff] }
 0x2a1   : > { %v2584_v26 = vmax.f32 %v2342_v22, 0.0  ;;  %v2846_v23 = vrot.slane %v2845_v24, 1  ;;  %v2858_v27 = vrot.slane %v2857_v48, 2  ;;  %v2876_v30 = vsel %vm240_vm0, %v2710_v13, 0.0 }
 0x2a2   : > { %v2709_v31 = vmul.f32 %v2645_v11, %v2581_v14  ;;  %v5901_v25 = vpop.f32.mrf.mxu1  ;;  %v3283_v36 = vsel %vm3269_vm2, %v2826_v58, %v2819_v6  ;;  %v2840_v37 = vadd.f32 %v2839_v19, %v2838_v46  ;;  %v2877_v38 = vrot.slane %v2876_v30, 4 }
 0x2a3   : > { %v2712_v39 = vmul.f32 %v2648_v15, %v2584_v26  ;;  %v3284_v40 = vsel %vm3271_vm3, %v2833_v16, %v3283_v36  ;;  %v2847_v41 = vadd.f32 %v2846_v23, %v2845_v24  ;;  %v2859_v42 = vadd.f32 %v2858_v27, %v2857_v48 }
 0x2a4   : > { %v2869_v43 = vsel %vm240_vm0, %v2709_v31, 0.0  ;;  %v5906_v44 = vpop.f32.mrf.mxu1  ;;  %v2854_v2 = vadd.f32 %v2853_v18, %v2852_v62  ;;  %v2878_v45 = vadd.f32 %v2877_v38, %v2876_v30  ;;  %v2867_v49 = vrot.slane %v2866_v10, 1  ;;  %v2649_v18 = vld [vmem:[%s6624_s1 + $0xa0] sm:$0xff] }
 0x2a5   : > { %v2870_v21 = vrot.slane %v2869_v43, 4  ;;  %v2890_v47 = vsel %vm240_vm0, %v2712_v39, 0.0  ;;  %v2860_v52 = vrot.slane %v2859_v42, 1  ;;  %v2337_v46 = vadd.f32 %v5784_v35, %v5871_v12 }
 0x2a6   : > { %v2891_v8 = vrot.slane %v2890_v47, 4  ;;  %v5911_v51 = vpop.f32.mrf.mxu1  ;;  %v3285_v50 = vsel %vm3273_vm4, %v2840_v37, %v3284_v40  ;;  %v2879_v56 = vrot.slane %v2878_v45, 2  ;;  %v3278_v58 = vsel %vm3277_vm6, %v5841_v55, %v5874_v29  ;;  %v5117_v29 = vld [vmem:[%s5286_s17] sm:$0xff] }
 0x2a7   : > { %v2871_v57 = vadd.f32 %v2870_v21, %v2869_v43  ;;  %v3286_v59 = vsel %vm3275_vm5, %v2847_v41, %v3285_v50  ;;  %v2583_v7 = vmax.f32 %v2337_v46, 0.0  ;;  %v3280_v12 = vsel %vm3279_vm7, %v5876_v20, %v3278_v58 }
 0x2a8   : > { %v2892_v60 = vadd.f32 %v2891_v8, %v2890_v47  ;;  %v5923_v19 = vpop.f32.mrf.mxu1  ;;  %v2880_v32 = vadd.f32 %v2879_v56, %v2878_v45  ;;  %v3282_v63 = vsel %vm3281_vm8, %v5865_v34, %v3280_v12  ;;  %v2352_v0 = vadd.f32 %v5879_v53, %v5784_v35  ;;  %v2654_v47 = vld [vmem:[%s6624_s1 + $0xc8] sm:$0xff] }
 0x2a9   : > { %v2872_v62 = vrot.slane %v2871_v57, 2  ;;  %v2861_v17 = vadd.f32 %v2860_v52, %v2859_v42  ;;  %v2711_v55 = vmul.f32 %v2647_v28, %v2583_v7  ;;  %v3340_v3 = vadd.f32 %v5117_v29, %v3282_v63  ;;  %v2651_v42 = vld [vmem:[%s6624_s1 + $0xb0] sm:$0xff] }
 0x2aa   : > { %v2893_v1 = vrot.slane %v2892_v60, 2  ;;  %v5933_v20 = vpop.f32.mrf.mxu1  ;;  %v5935_v6 = vadd.f32 %v2867_v49, %v2866_v10  ;;  %v2881_v9 = vrot.slane %v2880_v32, 1  ;;  %v2586_v11 = vmax.f32 %v2352_v0, 0.0  ;;  %v2652_v10 = vld [vmem:[%s6624_s1 + $0xb8] sm:$0xff]  ;;  %v3494_v49 = vld [vmem:[%s6626_s3 + $0x70] sm:$0xff] }
 0x2ab   : > { %v2873_v54 = vadd.f32 %v2872_v62, %v2871_v57  ;;  %v2883_v53 = vsel %vm240_vm0, %v2711_v55, 0.0  ;;  %4976 = vmatprep.mubr.msk.f32.mxu0 %vm240_vm0, %v3340_v3  ;;  %v2347_v22 = vadd.f32 %v5784_v35, %v5883_v61  ;;  %v2362_v24 = vadd.f32 %v5889_v5, %v5784_v35 }
 0x2ac   : > { %v5937_v34 = vadd.f32 %v2893_v1, %v2892_v60  ;;  %v5945_v48 = vpop.f32.mrf.mxu1  ;;  %v3287_v13 = vsel %vm3277_vm6, %v2854_v2, %v3286_v59  ;;  %v2884_v15 = vrot.slane %v2883_v53, 4  ;;  %v2714_v16 = vmul.f32 %v2650_v4, %v2586_v11  ;;  %v2653_v60 = vld [vmem:[%s6624_s1 + $0xc0] sm:$0xff] }
 0x2ad   : > { %v2874_v14 = vrot.slane %v2873_v54, 1  ;;  %v3288_v61 = vsel %vm3279_vm7, %v2861_v17, %v3287_v13  ;;  %v2585_v26 = vmax.f32 %v2347_v22, 0.0  ;;  %v2588_v23 = vmax.f32 %v2362_v24, 0.0 }
 0x2ae   : > { %v2357_v5 = vadd.f32 %v5784_v35, %v5898_v33  ;;  %v5957_v27 = vpop.f32.mrf.mxu1  ;;  %v2882_v30 = vadd.f32 %v2881_v9, %v2880_v32  ;;  %v2885_v31 = vadd.f32 %v2884_v15, %v2883_v53  ;;  %v2904_v36 = vsel %vm240_vm0, %v2714_v16, 0.0  ;;  %v2656_v15 = vld [vmem:[%s6624_s1 + $0xd8] sm:$0xff] }
 0x2af   : > { %v2372_v37 = vadd.f32 %v5901_v25, %v5784_v35  ;;  %v2895_v38 = vrot.slane %v5937_v34, 1  ;;  %v2905_v39 = vrot.slane %v2904_v36, 4  ;;  %v2713_v40 = vmul.f32 %v2649_v18, %v2585_v26  ;;  %v3495_v25 = vld [vmem:[%s6626_s3 + $0x78] sm:$0xff] }
 0x2b0   : > { %v2716_v41 = vmul.f32 %v2652_v10, %v2588_v23  ;;  %v5966_v43 = vpop.f32.mrf.mxu1  ;;  %v2875_v33 = vadd.f32 %v2874_v14, %v2873_v54  ;;  %v2886_v2 = vrot.slane %v2885_v31, 2  ;;  %v2587_v45 = vmax.f32 %v2357_v5, 0.0  ;;  %4988 = vmatprep.subr.mxu1 %v3495_v25 }
 0x2b1   : > { %v2590_v21 = vmax.f32 %v2372_v37, 0.0  ;;  %v2906_v52 = vadd.f32 %v2905_v39, %v2904_v36  ;;  %v2897_v8 = vsel %vm240_vm0, %v2713_v40, 0.0  ;;  %v2367_v50 = vadd.f32 %v5784_v35, %v5906_v44  ;;  %4989 = vmatpush3.msra.mxu1 %v3495_v25 }
 0x2b2   : > { %v2918_v46 = vsel %vm240_vm0, %v2716_v41, 0.0  ;;  %v5981_v56 = vpop.f32.mrf.mxu1  ;;  %v2887_v57 = vadd.f32 %v2886_v2, %v2885_v31  ;;  %v2898_v28 = vrot.slane %v2897_v8, 4  ;;  %v2715_v59 = vmul.f32 %v2651_v42, %v2587_v45  ;;  %4990 = vmatprep.subr.mxu1 %v3494_v49 }
 0x2b3   : > { %v2919_v58 = vrot.slane %v2918_v46, 4  ;;  %v2907_v7 = vrot.slane %v2906_v52, 2  ;;  %v2718_v12 = vmul.f32 %v2654_v47, %v2590_v21  ;;  %v2589_v32 = vmax.f32 %v2367_v50, 0.0  ;;  %4991 = vmatpush3.msra.mxu1 %v3494_v49  ;;  %v2655_v47 = vld [vmem:[%s6624_s1 + $0xd0] sm:$0xff] }
 0x2b4   : > { %v2382_v62 = vadd.f32 %v5911_v51, %v5784_v35  ;;  %v5988_v63 = vpop.f32.mrf.mxu1  ;;  %v2888_v44 = vrot.slane %v2887_v57, 1  ;;  %v2899_v0 = vadd.f32 %v2898_v28, %v2897_v8  ;;  %v2911_v1 = vsel %vm240_vm0, %v2715_v59, 0.0 }
 0x2b5   : > { %v2920_v17 = vadd.f32 %v2919_v58, %v2918_v46  ;;  %v2908_v55 = vadd.f32 %v2907_v7, %v2906_v52  ;;  %v2912_v29 = vrot.slane %v2911_v1, 4  ;;  %v2932_v3 = vsel %vm240_vm0, %v2718_v12, 0.0  ;;  %v2658_v12 = vld [vmem:[%s6624_s1 + $0xe8] sm:$0xff] }
 0x2b6   : > { %v2717_v4 = vmul.f32 %v2653_v60, %v2589_v32  ;;  %v5992_v9 = vpop.f32.mrf.mxu1  ;;  %v2889_v54 = vadd.f32 %v2888_v44, %v2887_v57  ;;  %v2900_v11 = vrot.slane %v2899_v0, 2  ;;  %v2933_v51 = vrot.slane %v2932_v3, 4  ;;  %v2657_v32 = vld [vmem:[%s6624_s1 + $0xe0] sm:$0xff] }
 0x2b7   : > { %v2921_v53 = vrot.slane %v2920_v17, 2  ;;  %v3289_v22 = vsel %vm3281_vm8, %v5935_v6, %v3288_v61  ;;  %v2913_v24 = vadd.f32 %v2912_v29, %v2911_v1  ;;  %v2592_v14 = vmax.f32 %v2382_v62, 0.0  ;;  %v2660_v29 = vld [vmem:[%s6624_s1 + $0xf8] sm:$0xff] }
 0x2b8   : > { %v2925_v13 = vsel %vm240_vm0, %v2717_v4, 0.0  ;;  %v6000_v16 = vpop.f32.mrf.mxu1  ;;  %v3290_v18 = vsel %vm3269_vm2, %v2882_v30, %v2875_v33  ;;  %v2909_v10 = vrot.slane %v2908_v55, 1  ;;  %v2901_v26 = vadd.f32 %v2900_v11, %v2899_v0  ;;  %v5118_v33 = vld [vmem:[%s5286_s17 + $0x8] sm:$0xff] }
 0x2b9   : > { %v2934_v23 = vadd.f32 %v2933_v51, %v2932_v3  ;;  %v2896_v5 = vadd.f32 %v2895_v38, %v5937_v34  ;;  %v3291_v6 = vsel %vm3271_vm3, %v2889_v54, %v3290_v18  ;;  %v2926_v61 = vrot.slane %v2925_v13, 4 }
 0x2ba   : > { %v6005_v31 = vpop.f32.mrf.mxu1  ;;  %v6007_v36 = vadd.f32 %v2921_v53, %v2920_v17  ;;  %v2914_v37 = vrot.slane %v2913_v24, 2  ;;  %v2720_v40 = vmul.f32 %v2656_v15, %v2592_v14  ;;  %v2902_v41 = vrot.slane %v2901_v26, 1 }
 0x2bb   : > { %v2935_v39 = vrot.slane %v2934_v23, 2  ;;  %v2927_v42 = vadd.f32 %v2926_v61, %v2925_v13  ;;  %v2377_v30 = vadd.f32 %v5784_v35, %v5923_v19  ;;  %v3341_v2 = vadd.f32 %v5118_v33, %v3289_v22  ;;  %v2659_v13 = vld [vmem:[%s6624_s1 + $0xf0] sm:$0xff] }
 0x2bc   : > { %v6012_v45 = vpop.f32.mrf.mxu1  ;;  %v6014_v34 = vadd.f32 %v2909_v10, %v2908_v55  ;;  %v2946_v21 = vsel %vm240_vm0, %v2720_v40, 0.0  ;;  %v6021_v25 = vsel %vm3273_vm4, %v2896_v5, %v3291_v6  ;;  %v2923_v46 = vrot.slane %v6007_v36, 1 }
 0x2bd   : > { %v2936_v38 = vadd.f32 %v2935_v39, %v2934_v23  ;;  %v2928_v49 = vrot.slane %v2927_v42, 2  ;;  %v2947_v52 = vrot.slane %v2946_v21, 4  ;;  %v2591_v8 = vmax.f32 %v2377_v30, 0.0  ;;  %4977 = vmatmul.mubr.msk.f32.vlgmr.msra.gmra.mxu0 %vm240_vm0, %v3341_v2 }
 0x2be   : > { %v6024_v19 = vpop.f32.mrf.mxu1  ;;  %v6027_v50 = vadd.f32 %v2914_v37, %v2913_v24  ;;  %v2392_v57 = vadd.f32 %v5933_v20, %v5784_v35  ;;  %v2387_v28 = vadd.f32 %v5784_v35, %v5945_v48  ;;  %v6033_v58 = vadd.f32 %v2902_v41, %v2901_v26  ;;  %v2662_v37 = vld [vmem:[%s6624_s1 + $0x108] sm:$0xff] }
 0x2bf   : > { %v2929_v59 = vadd.f32 %v2928_v49, %v2927_v42  ;;  %v2948_v60 = vadd.f32 %v2947_v52, %v2946_v21  ;;  %v2719_v7 = vmul.f32 %v2655_v47, %v2591_v8  ;;  %v2937_v44 = vrot.slane %v2936_v38, 1 }
 0x2c0   : > { %v6041_v62 = vpop.f32.mrf.mxu1  ;;  %v2594_v20 = vmax.f32 %v2392_v57, 0.0  ;;  %v2593_v0 = vmax.f32 %v2387_v28, 0.0  ;;  %v2402_v48 = vadd.f32 %v5957_v27, %v5784_v35  ;;  %v2397_v3 = vadd.f32 %v5784_v35, %v5966_v43 }
 0x2c1   : > { %v2930_v17 = vrot.slane %v2929_v59, 1  ;;  %v2949_v1 = vrot.slane %v2948_v60, 2  ;;  %v2939_v55 = vsel %vm240_vm0, %v2719_v7, 0.0  ;;  %v2916_v22 = vrot.slane %v6027_v50, 1  ;;  %v2661_v7 = vld [vmem:[%s6624_s1 + $0x100] sm:$0xff] }
 0x2c2   : > { %v6051_v4 = vpop.f32.mrf.mxu1  ;;  %v2940_v54 = vrot.slane %v2939_v55, 4  ;;  %v2722_v11 = vmul.f32 %v2658_v12, %v2594_v20  ;;  %v2721_v53 = vmul.f32 %v2657_v32, %v2593_v0  ;;  %v2596_v51 = vmax.f32 %v2402_v48, 0.0 }
 0x2c3   : > { %v2950_v27 = vadd.f32 %v2949_v1, %v2948_v60  ;;  %v2595_v24 = vmax.f32 %v2397_v3, 0.0  ;;  %v2412_v14 = vadd.f32 %v5981_v56, %v5784_v35  ;;  %v2938_v23 = vadd.f32 %v2937_v44, %v2936_v38 }
 0x2c4   : > { %v6059_v15 = vpop.f32.mrf.mxu1  ;;  %v2941_v43 = vadd.f32 %v2940_v54, %v2939_v55  ;;  %v2960_v18 = vsel %vm240_vm0, %v2722_v11, 0.0  ;;  %v2953_v10 = vsel %vm240_vm0, %v2721_v53, 0.0  ;;  %v2724_v26 = vmul.f32 %v2660_v29, %v2596_v51  ;;  %v2664_v55 = vld [vmem:[%s6624_s1 + $0x118] sm:$0xff] }
 0x2c5   : > { %v2931_v5 = vadd.f32 %v2930_v17, %v2929_v59  ;;  %v2961_v6 = vrot.slane %v2960_v18, 4  ;;  %v2954_v61 = vrot.slane %v2953_v10, 4  ;;  %v2723_v41 = vmul.f32 %v2659_v13, %v2595_v24 }
 0x2c6   : > { %v6066_v39 = vpop.f32.mrf.mxu1  ;;  %v2942_v40 = vrot.slane %v2941_v43, 2  ;;  %v2974_v56 = vsel %vm240_vm0, %v2724_v26, 0.0  ;;  %v2598_v42 = vmax.f32 %v2412_v14, 0.0  ;;  %v2951_v30 = vrot.slane %v2950_v27, 1 }
 0x2c7   : > { %v2962_v33 = vadd.f32 %v2961_v6, %v2960_v18  ;;  %v2955_v2 = vadd.f32 %v2954_v61, %v2953_v10  ;;  %v2975_v21 = vrot.slane %v2974_v56, 4  ;;  %v2967_v49 = vsel %vm240_vm0, %v2723_v41, 0.0  ;;  %v2663_v41 = vld [vmem:[%s6624_s1 + $0x110] sm:$0xff] }
 0x2c8   : > { %v6069_v47 = vpop.f32.mrf.mxu1  ;;  %v2943_v38 = vadd.f32 %v2942_v40, %v2941_v43  ;;  %v2726_v52 = vmul.f32 %v2662_v37, %v2598_v42  ;;  %v2407_v8 = vadd.f32 %v5784_v35, %v5988_v63  ;;  %v2968_v60 = vrot.slane %v2967_v49, 4 }
 0x2c9   : > { %v2963_v57 = vrot.slane %v2962_v33, 2  ;;  %v2956_v28 = vrot.slane %v2955_v2, 2  ;;  %v2976_v59 = vadd.f32 %v2975_v21, %v2974_v56  ;;  %v2422_v20 = vadd.f32 %v5992_v9, %v5784_v35 }
 0x2ca   : > { %v2944_v12 = vrot.slane %v2943_v38, 1  ;;  %v2988_v32 = vsel %vm240_vm0, %v2726_v52, 0.0  ;;  %v2597_v44 = vmax.f32 %v2407_v8, 0.0  ;;  %v6080_v0 = vpop.f32.mrf.mxu1  ;;  %v2969_v1 = vadd.f32 %v2968_v60, %v2967_v49 }
 0x2cb   : > { %v2964_v48 = vadd.f32 %v2963_v57, %v2962_v33  ;;  %v2957_v17 = vadd.f32 %v2956_v28, %v2955_v2  ;;  %v2977_v63 = vrot.slane %v2976_v59, 2  ;;  %v2989_v3 = vrot.slane %v2988_v32, 4 }
 0x2cc   : > { %v2945_v29 = vadd.f32 %v2944_v12, %v2943_v38  ;;  %v2725_v54 = vmul.f32 %v2661_v7, %v2597_v44  ;;  %v2600_v11 = vmax.f32 %v2422_v20, 0.0  ;;  %v3293_v53 = vsel %vm3275_vm5, %v6033_v58, %v6021_v25  ;;  %v6093_v10 = vpop.f32.mrf.mxu1 }
 0x2cd   : > { %v2924_v9 = vadd.f32 %v2923_v46, %v6007_v36  ;;  %v2965_v51 = vrot.slane %v2964_v48, 1  ;;  %v2958_v24 = vrot.slane %v2957_v17, 1  ;;  %v3297_v13 = vsel %vm3269_vm2, %v2938_v23, %v2931_v5 }
 0x2ce   : > { %v2990_v14 = vadd.f32 %v2989_v3, %v2988_v32  ;;  %v2981_v43 = vsel %vm240_vm0, %v2725_v54, 0.0  ;;  %v2728_v18 = vmul.f32 %v2664_v55, %v2600_v11  ;;  %v2917_v26 = vadd.f32 %v2916_v22, %v6027_v50  ;;  %v2668_v54 = vld [vmem:[%s6624_s1 + $0x138] sm:$0xff]  ;;  %v2667_v11 = vld [vmem:[%s6624_s1 + $0x130] sm:$0xff] }
 0x2cf   : > { %v2952_v6 = vadd.f32 %v2951_v30, %v2950_v27  ;;  %v3298_v61 = vsel %vm3271_vm3, %v2945_v29, %v3297_v13  ;;  %v6097_v25 = vadd.f32 %v2977_v63, %v2976_v59  ;;  %v2970_v58 = vrot.slane %v2969_v1, 2  ;;  %v6114_v30 = vpop.f32.mrf.mxu1  ;;  %v5119_v59 = vld [vmem:[%s5286_s17 + $0x10] sm:$0xff] }
 0x2d0   : > { %v2991_v37 = vrot.slane %v2990_v14, 2  ;;  %v2982_v36 = vrot.slane %v2981_v43, 4  ;;  %v3002_v46 = vsel %vm240_vm0, %v2728_v18, 0.0  ;;  %v6100_v40 = vadd.f32 %v2965_v51, %v2964_v48  ;;  %v2670_v18 = vld [vmem:[%s6624_s1 + $0x148] sm:$0xff] }
 0x2d1   : > { %v6102_v23 = vadd.f32 %v2958_v24, %v2957_v17  ;;  %v3003_v5 = vrot.slane %v3002_v46, 4  ;;  %v2417_v56 = vadd.f32 %v5784_v35, %v6000_v16  ;;  %v6107_v50 = vsel %vm3273_vm4, %v2952_v6, %v3298_v61  ;;  %v6131_v20 = vpop.f32.mrf.mxu1 }
 0x2d2   : > { %v2992_v22 = vadd.f32 %v2991_v37, %v2990_v14  ;;  %v2983_v27 = vadd.f32 %v2982_v36, %v2981_v43  ;;  %v3294_v42 = vsel %vm3277_vm6, %v6014_v34, %v3293_v53  ;;  %v2432_v16 = vadd.f32 %v6005_v31, %v5784_v35  ;;  %v2666_v34 = vld [vmem:[%s6624_s1 + $0x128] sm:$0xff] }
 0x2d3   : > { %v3004_v33 = vadd.f32 %v3003_v5, %v3002_v46  ;;  %v2599_v2 = vmax.f32 %v2417_v56, 0.0  ;;  %v3295_v21 = vsel %vm3279_vm7, %v2917_v26, %v3294_v42  ;;  %v2979_v38 = vrot.slane %v6097_v25, 1  ;;  %v6155_v26 = vpop.f32.mrf.mxu1 }
 0x2d4   : > { %v6120_v49 = vadd.f32 %v2970_v58, %v2969_v1  ;;  %v2984_v52 = vrot.slane %v2983_v27, 2  ;;  %v3296_v8 = vsel %vm3281_vm8, %v2924_v9, %v3295_v21  ;;  %v2602_v7 = vmax.f32 %v2432_v16, 0.0  ;;  %v2665_v1 = vld [vmem:[%s6624_s1 + $0x120] sm:$0xff] }
 0x2d5   : > { %v3005_v57 = vrot.slane %v3004_v33, 2  ;;  %v2727_v28 = vmul.f32 %v2663_v41, %v2599_v2  ;;  %v3342_v60 = vadd.f32 %v5119_v59, %v3296_v8  ;;  %v2993_v12 = vrot.slane %v2992_v22, 1  ;;  %v6161_v21 = vpop.f32.mrf.mxu1  ;;  %v6167_v8 = vld [vmem:[%s6627_s4 + $0x18] ss:$0 sm:$0xff] }
 0x2d6   : > { %v2985_v32 = vadd.f32 %v2984_v52, %v2983_v27  ;;  %v2427_v31 = vadd.f32 %v5784_v35, %v6012_v45  ;;  %v2442_v44 = vadd.f32 %v6024_v19, %v5784_v35  ;;  %v2730_v63 = vmul.f32 %v2666_v34, %v2602_v7 }
 0x2d7   : > { %v6133_v48 = vadd.f32 %v3005_v57, %v3004_v33  ;;  %v2995_v17 = vsel %vm240_vm0, %v2727_v28, 0.0  ;;  %4979 = vmatprep.mubr.msk.f32.mxu0 %vm240_vm0, %v3342_v60  ;;  %v2437_v55 = vadd.f32 %v5784_v35, %v6041_v62  ;;  %v2972_v53 = vrot.slane %v6120_v49, 1 }
 0x2d8   : > { %v2986_v45 = vrot.slane %v2985_v32, 1  ;;  %v2996_v29 = vrot.slane %v2995_v17, 4  ;;  %v2601_v3 = vmax.f32 %v2427_v31, 0.0  ;;  %v2604_v19 = vmax.f32 %v2442_v44, 0.0 }
 0x2d9   : > { %v3016_v9 = vsel %vm240_vm0, %v2730_v63, 0.0  ;;  %v2603_v51 = vmax.f32 %v2437_v55, 0.0  ;;  %v2452_v62 = vadd.f32 %v6051_v4, %v5784_v35  ;;  %v2994_v24 = vadd.f32 %v2993_v12, %v2992_v22  ;;  %v2669_v12 = vld [vmem:[%s6624_s1 + $0x140] sm:$0xff] }
 0x2da   : > { %v2997_v13 = vadd.f32 %v2996_v29, %v2995_v17  ;;  %v3017_v14 = vrot.slane %v3016_v9, 4  ;;  %v2729_v43 = vmul.f32 %v2665_v1, %v2601_v3  ;;  %v3007_v6 = vrot.slane %v6133_v48, 1 }
 0x2db   : > { %v2732_v61 = vmul.f32 %v2668_v54, %v2604_v19  ;;  %v2731_v58 = vmul.f32 %v2667_v11, %v2603_v51  ;;  %v2606_v37 = vmax.f32 %v2452_v62, 0.0  ;;  %v2987_v36 = vadd.f32 %v2986_v45, %v2985_v32  ;;  %v2672_v32 = vld [vmem:[%s6624_s1 + $0x158] sm:$0xff]  ;;  %v6179_v45 = vpop.f32.mrf.mxu1 }
 0x2dc   : > { %v2998_v46 = vrot.slane %v2997_v13, 2  ;;  %v3018_v5 = vadd.f32 %v3017_v14, %v3016_v9  ;;  %v3009_v35 = vsel %vm240_vm0, %v2729_v43, 0.0  ;;  %v2447_v34 = vadd.f32 %v6167_v8, %v6059_v15 }
 0x2dd   : > { %v3010_v4 = vrot.slane %v3009_v35, 4  ;;  %v3030_v56 = vsel %vm240_vm0, %v2732_v61, 0.0  ;;  %v3023_v22 = vsel %vm240_vm0, %v2731_v58, 0.0  ;;  %v2734_v27 = vmul.f32 %v2670_v18, %v2606_v37 }
 0x2de   : > { %v2999_v41 = vadd.f32 %v2998_v46, %v2997_v13  ;;  %v3019_v42 = vrot.slane %v3018_v5, 2  ;;  %v3031_v33 = vrot.slane %v3030_v56, 4  ;;  %v3024_v2 = vrot.slane %v3023_v22, 4 }
 0x2df   : > { %v3011_v16 = vadd.f32 %v3010_v4, %v3009_v35  ;;  %v3044_v52 = vsel %vm240_vm0, %v2734_v27, 0.0  ;;  %v2462_v57 = vadd.f32 %v6167_v8, %v6066_v39  ;;  %v2605_v17 = vmax.f32 %v2447_v34, 0.0  ;;  %v2673_v34 = vld [vmem:[%s6624_s1 + $0x160] sm:$0xff] }
 0x2e0   : > { %v3000_v28 = vrot.slane %v2999_v41, 1  ;;  %v3020_v59 = vadd.f32 %v3019_v42, %v3018_v5  ;;  %v3032_v60 = vadd.f32 %v3031_v33, %v3030_v56  ;;  %v3025_v7 = vadd.f32 %v3024_v2, %v3023_v22 }
 0x2e1   : > { %v3012_v31 = vrot.slane %v3011_v16, 2  ;;  %v3045_v44 = vrot.slane %v3044_v52, 4  ;;  %v2608_v63 = vmax.f32 %v2462_v57, 0.0  ;;  %v2733_v19 = vmul.f32 %v2669_v12, %v2605_v17  ;;  %v5121_v57 = vld [vmem:[%s5286_s17 + $0x18] sm:$0xff] }
 0x2e2   : > { %v3001_v15 = vadd.f32 %v3000_v28, %v2999_v41  ;;  %v3021_v1 = vrot.slane %v3020_v59, 1  ;;  %v3033_v55 = vrot.slane %v3032_v60, 2  ;;  %v3026_v39 = vrot.slane %v3025_v7, 2 }
 0x2e3   : > { %v3013_v29 = vadd.f32 %v3012_v31, %v3011_v16  ;;  %v3046_v3 = vadd.f32 %v3045_v44, %v3044_v52  ;;  %v2736_v54 = vmul.f32 %v2672_v32, %v2608_v63  ;;  %v3300_v11 = vsel %vm3275_vm5, %v6102_v23, %v6107_v50  ;;  %v6195_v50 = vpop.f32.mrf.mxu1 }
 0x2e4   : > { %v3304_v9 = vsel %vm3269_vm2, %v2994_v24, %v2987_v36  ;;  %v3034_v51 = vadd.f32 %v3033_v55, %v3032_v60  ;;  %v6185_v62 = vadd.f32 %v3026_v39, %v3025_v7  ;;  %v2980_v13 = vadd.f32 %v2979_v38, %v6097_v25 }
 0x2e5   : > { %v3305_v14 = vsel %vm3271_vm3, %v3001_v15, %v3304_v9  ;;  %v3014_v43 = vrot.slane %v3013_v29, 1  ;;  %v3037_v18 = vsel %vm240_vm0, %v2733_v19, 0.0  ;;  %v2973_v61 = vadd.f32 %v2972_v53, %v6120_v49  ;;  %v6217_v42 = vpop.f32.mrf.mxu1  ;;  %v2676_v15 = vld [vmem:[%s6624_s1 + $0x178] sm:$0xff] }
 0x2e6   : > { %v3008_v58 = vadd.f32 %v3007_v6, %v6133_v48  ;;  %v3038_v37 = vrot.slane %v3037_v18, 4  ;;  %v3058_v23 = vsel %vm240_vm0, %v2736_v54, 0.0  ;;  %v6197_v24 = vadd.f32 %v3021_v1, %v3020_v59  ;;  %v2671_v48 = vld [vmem:[%s6624_s1 + $0x150] sm:$0xff] }
 0x2e7   : > { %v3047_v36 = vrot.slane %v3046_v3, 2  ;;  %v3059_v46 = vrot.slane %v3058_v23, 4  ;;  %v2457_v25 = vadd.f32 %v6167_v8, %v6069_v47  ;;  %v3035_v5 = vrot.slane %v3034_v51, 1  ;;  %v6240_v1 = vpop.f32.mrf.mxu1 }
 0x2e8   : > { %v6202_v38 = vsel %vm3273_vm4, %v3008_v58, %v3305_v14  ;;  %v3028_v49 = vrot.slane %v6185_v62, 1  ;;  %v3039_v53 = vadd.f32 %v3038_v37, %v3037_v18  ;;  %v6208_v6 = vadd.f32 %v3014_v43, %v3013_v29  ;;  %v2678_v43 = vld [vmem:[%s6624_s1 + $0x188] sm:$0xff] }
 0x2e9   : > { %v3060_v35 = vadd.f32 %v3059_v46, %v3058_v23  ;;  %v2607_v4 = vmax.f32 %v2457_v25, 0.0  ;;  %v3301_v56 = vsel %vm3277_vm6, %v6100_v40, %v3300_v11  ;;  %v2472_v27 = vadd.f32 %v6167_v8, %v6080_v0  ;;  %v2674_v40 = vld [vmem:[%s6624_s1 + $0x168] sm:$0xff]  ;;  %v6256_v37 = vpop.f32.mrf.mxu1 }
 0x2ea   : > { %v3040_v47 = vrot.slane %v3039_v53, 2  ;;  %v3302_v22 = vsel %vm3279_vm7, %v2973_v61, %v3301_v56  ;;  %v2467_v41 = vadd.f32 %v6167_v8, %v6093_v10  ;;  %v6219_v33 = vadd.f32 %v3047_v36, %v3046_v3 }
 0x2eb   : > { %v3061_v2 = vrot.slane %v3060_v35, 2  ;;  %v2735_v16 = vmul.f32 %v2671_v48, %v2607_v4  ;;  %v3303_v52 = vsel %vm3281_vm8, %v2980_v13, %v3302_v22  ;;  %v2610_v10 = vmax.f32 %v2472_v27, 0.0  ;;  %v2677_v27 = vld [vmem:[%s6624_s1 + $0x180] sm:$0xff] }
 0x2ec   : > { %v3041_v0 = vadd.f32 %v3040_v47, %v3039_v53  ;;  %v3343_v28 = vadd.f32 %v5121_v57, %v3303_v52  ;;  %v2609_v59 = vmax.f32 %v2467_v41, 0.0  ;;  %v2482_v12 = vadd.f32 %v6167_v8, %v6114_v30  ;;  %v2675_v30 = vld [vmem:[%s6624_s1 + $0x170] sm:$0xff]  ;;  %v6268_v52 = vpop.f32.mrf.mxu1 }
 0x2ed   : > { %v6229_v60 = vadd.f32 %v3061_v2, %v3060_v35  ;;  %v3051_v7 = vsel %vm240_vm0, %v2735_v16, 0.0  ;;  %v2477_v32 = vadd.f32 %v6167_v8, %v6131_v20  ;;  %v2738_v17 = vmul.f32 %v2674_v40, %v2610_v10 }
 0x2ee   : > { %v3042_v31 = vrot.slane %v3041_v0, 1  ;;  %v3052_v44 = vrot.slane %v3051_v7, 4  ;;  %4980 = vmatmul.mubr.msk.f32.gmra.mxu0 %vm240_vm0, %v3343_v28  ;;  %v2737_v63 = vmul.f32 %v2673_v34, %v2609_v59  ;;  %v6242_v55 = vadd.f32 %v3035_v5, %v3034_v51  ;;  %v2680_v28 = vld [vmem:[%s6624_s1 + $0x198] sm:$0xff] }
 0x2ef   : > { %v2612_v39 = vmax.f32 %v2482_v12, 0.0  ;;  %v2611_v29 = vmax.f32 %v2477_v32, 0.0  ;;  %v2492_v20 = vadd.f32 %v6167_v8, %v6155_v26  ;;  %v3049_v3 = vrot.slane %v6219_v33, 1 }
 0x2f0   : > { %v3053_v19 = vadd.f32 %v3052_v44, %v3051_v7  ;;  %v3072_v54 = vsel %vm240_vm0, %v2738_v17, 0.0  ;;  %v3065_v11 = vsel %vm240_vm0, %v2737_v63, 0.0  ;;  %v3063_v9 = vrot.slane %v6229_v60, 1 }
 0x2f1   : > { %v3073_v51 = vrot.slane %v3072_v54, 4  ;;  %v3066_v13 = vrot.slane %v3065_v11, 4  ;;  %v2740_v14 = vmul.f32 %v2676_v15, %v2612_v39  ;;  %v3043_v18 = vadd.f32 %v3042_v31, %v3041_v0 }
 0x2f2   : > { %v3054_v61 = vrot.slane %v3053_v19, 2  ;;  %v2739_v58 = vmul.f32 %v2675_v30, %v2611_v29  ;;  %v2614_v26 = vmax.f32 %v2492_v20, 0.0  ;;  %v2487_v25 = vadd.f32 %v6167_v8, %v6161_v21  ;;  %v4962_v29 = vpop.f32.mrf.mxu1 }
 0x2f3   : > { %v3074_v23 = vadd.f32 %v3073_v51, %v3072_v54  ;;  %v3067_v36 = vadd.f32 %v3066_v13, %v3065_v11  ;;  %v3086_v46 = vsel %vm240_vm0, %v2740_v14, 0.0  ;;  %v2502_v21 = vadd.f32 %v6167_v8, %v6179_v45  ;;  %v2679_v14 = vld [vmem:[%s6624_s1 + $0x190] sm:$0xff] }
 0x2f4   : > { %v3055_v5 = vadd.f32 %v3054_v61, %v3053_v19  ;;  %v3087_v53 = vrot.slane %v3086_v46, 4  ;;  %v3079_v48 = vsel %vm240_vm0, %v2739_v58, 0.0  ;;  %v2742_v35 = vmul.f32 %v2678_v43, %v2614_v26 }
 0x2f5   : > { %v3075_v4 = vrot.slane %v3074_v23, 2  ;;  %v3068_v56 = vrot.slane %v3067_v36, 2  ;;  %v3080_v47 = vrot.slane %v3079_v48, 4  ;;  %v2613_v22 = vmax.f32 %v2487_v25, 0.0 }
 0x2f6   : > { %v3056_v41 = vrot.slane %v3055_v5, 1  ;;  %v3088_v2 = vadd.f32 %v3087_v53, %v3086_v46  ;;  %v3100_v16 = vsel %vm240_vm0, %v2742_v35, 0.0  ;;  %v2616_v12 = vmax.f32 %v2502_v21, 0.0  ;;  %v2682_v35 = vld [vmem:[%s6624_s1 + $0x1a8] sm:$0xff] }
 0x2f7   : > { %v3076_v40 = vadd.f32 %v3075_v4, %v3074_v23  ;;  %v3069_v34 = vadd.f32 %v3068_v56, %v3067_v36  ;;  %v3081_v0 = vadd.f32 %v3080_v47, %v3079_v48  ;;  %v3101_v57 = vrot.slane %v3100_v16, 4  ;;  %v5122_v48 = vld [vmem:[%s5286_s17 + $0x20] sm:$0xff] }
 0x2f8   : > { %v3057_v10 = vadd.f32 %v3056_v41, %v3055_v5  ;;  %v3089_v59 = vrot.slane %v3088_v2, 2  ;;  %v2741_v7 = vmul.f32 %v2677_v27, %v2613_v22  ;;  %v3050_v32 = vadd.f32 %v3049_v3, %v6219_v33  ;;  %v3493_v41 = vld [vmem:[%s6626_s3 + $0x68] sm:$0xff] }
 0x2f9   : > { %v3077_v31 = vrot.slane %v3076_v40, 1  ;;  %v3070_v44 = vrot.slane %v3069_v34, 1  ;;  %v3102_v17 = vadd.f32 %v3101_v57, %v3100_v16  ;;  %v3029_v45 = vadd.f32 %v3028_v49, %v6185_v62  ;;  %4992 = vmatprep.subr.mxu1 %v3493_v41 }
 0x2fa   : > { %v3082_v63 = vrot.slane %v3081_v0, 2  ;;  %v3093_v15 = vsel %vm240_vm0, %v2741_v7, 0.0  ;;  %v2744_v39 = vmul.f32 %v2680_v28, %v2616_v12  ;;  %v3307_v30 = vsel %vm3275_vm5, %v6208_v6, %v6202_v38  ;;  %4993 = vmatpush3.msra.mxu1 %v3493_v41 }
 0x2fb   : > { %v3311_v20 = vsel %vm3269_vm2, %v3050_v32, %v3043_v18  ;;  %v6283_v33 = vadd.f32 %v3063_v9, %v6229_v60  ;;  %v6285_v3 = vadd.f32 %v3089_v59, %v3088_v2  ;;  %v3103_v62 = vrot.slane %v3102_v17, 2  ;;  %v6304_v18 = vpop.f32.mrf.mxu1 }
 0x2fc   : > { %v6288_v19 = vsel %vm3271_vm3, %v3057_v10, %v3311_v20  ;;  %v3094_v49 = vrot.slane %v3093_v15, 4  ;;  %v3114_v54 = vsel %vm240_vm0, %v2744_v39, 0.0  ;;  %v6291_v11 = vadd.f32 %v3077_v31, %v3076_v40  ;;  %v2683_v10 = vld [vmem:[%s6624_s1 + $0x1b0] sm:$0xff] }
 0x2fd   : > { %v6293_v51 = vadd.f32 %v3070_v44, %v3069_v34  ;;  %v3115_v13 = vrot.slane %v3114_v54, 4  ;;  %v2497_v38 = vadd.f32 %v6167_v8, %v6195_v50  ;;  %v6297_v6 = vadd.f32 %v3082_v63, %v3081_v0  ;;  %v4965_v27 = vpop.f32.mrf.mxu1 }
 0x2fe   : > { %v3104_v60 = vadd.f32 %v3103_v62, %v3102_v17  ;;  %v3095_v9 = vadd.f32 %v3094_v49, %v3093_v15  ;;  %v3308_v43 = vsel %vm3277_vm6, %v6197_v24, %v3307_v30  ;;  %v3091_v61 = vrot.slane %v6285_v3, 1 }
 0x2ff   : > { %v3116_v58 = vadd.f32 %v3115_v13, %v3114_v54  ;;  %v2615_v26 = vmax.f32 %v2497_v38, 0.0  ;;  %v3309_v50 = vsel %vm3279_vm7, %v3029_v45, %v3308_v43  ;;  %v2512_v25 = vadd.f32 %v6167_v8, %v6217_v42  ;;  %v2536_v45 = vpop.f32.mrf.mxu1  ;;  %v2686_v54 = vld [vmem:[%s6624_s1 + $0x1c8] sm:$0xff] }
 0x300   : > { %v3105_v23 = vrot.slane %v3104_v60, 1  ;;  %v3096_v36 = vrot.slane %v3095_v9, 2  ;;  %v3310_v46 = vsel %vm3281_vm8, %v6242_v55, %v3309_v50  ;;  %v2507_v4 = vadd.f32 %v6167_v8, %v6240_v1  ;;  %v2681_v55 = vld [vmem:[%s6624_s1 + $0x1a0] sm:$0xff] }
 0x301   : > { %v3117_v5 = vrot.slane %v3116_v58, 2  ;;  %v2743_v53 = vmul.f32 %v2679_v14, %v2615_v26  ;;  %v3344_v24 = vadd.f32 %v5122_v48, %v3310_v46  ;;  %v3084_v56 = vrot.slane %v6297_v6, 1  ;;  %v3492_v1 = vld [vmem:[%s6626_s3 + $0x60] sm:$0xff]  ;;  %v4968_v50 = vpop.f32.mrf.mxu1 }
 0x302   : > { %v3097_v47 = vadd.f32 %v3096_v36, %v3095_v9  ;;  %v2618_v22 = vmax.f32 %v2512_v25, 0.0  ;;  %v2522_v42 = vadd.f32 %v6167_v8, %v6256_v37  ;;  %v2617_v21 = vmax.f32 %v2507_v4, 0.0  ;;  %v2684_v37 = vld [vmem:[%s6624_s1 + $0x1b8] sm:$0xff]  ;;  %4994 = vmatprep.subr.mxu1 %v3492_v1 }
 0x303   : > { %v6330_v2 = vadd.f32 %v3117_v5, %v3116_v58  ;;  %v3107_v16 = vsel %vm240_vm0, %v2743_v53, 0.0  ;;  %4982 = vmatprep.mubr.msk.f32.mxu0 %vm240_vm0, %v3344_v24  ;;  %v2517_v40 = vadd.f32 %v6167_v8, %v6268_v52  ;;  %v3106_v59 = vadd.f32 %v3105_v23, %v3104_v60  ;;  %4995 = vmatpush3.msra.mxu1 %v3492_v1  ;;  %v2688_v4 = vld [vmem:[%s6624_s1 + $0x1d8] sm:$0xff] }
 0x304   : > { %v3098_v34 = vrot.slane %v3097_v47, 1  ;;  %v3108_v0 = vrot.slane %v3107_v16, 4  ;;  %v2746_v57 = vmul.f32 %v2682_v35, %v2618_v22  ;;  %v2620_v28 = vmax.f32 %v2522_v42, 0.0  ;;  %v2685_v35 = vld [vmem:[%s6624_s1 + $0x1c0] sm:$0xff] }
 0x305   : > { %v2745_v7 = vmul.f32 %v2681_v55, %v2617_v21  ;;  %v2619_v12 = vmax.f32 %v2517_v40, 0.0  ;;  %v2532_v32 = vadd.f32 %v6167_v8, %v4962_v29  ;;  %v3119_v63 = vrot.slane %v6330_v2, 1 }
 0x306   : > { %v3099_v31 = vadd.f32 %v3098_v34, %v3097_v47  ;;  %v3109_v44 = vadd.f32 %v3108_v0, %v3107_v16  ;;  %v3128_v52 = vsel %vm240_vm0, %v2746_v57, 0.0  ;;  %v2748_v17 = vmul.f32 %v2684_v37, %v2620_v28  ;;  %v2546_v16 = vpop.f32.mrf.mxu1 }
 0x307   : > { %v3129_v15 = vrot.slane %v3128_v52, 4  ;;  %v3121_v39 = vsel %vm240_vm0, %v2745_v7, 0.0  ;;  %v2747_v30 = vmul.f32 %v2683_v10, %v2619_v12  ;;  %v2622_v9 = vmax.f32 %v2532_v32, 0.0 }
 0x308   : > { %v3318_v20 = vsel %vm3269_vm2, %v3106_v59, %v3099_v31  ;;  %v3110_v62 = vrot.slane %v3109_v44, 2  ;;  %v3122_v49 = vrot.slane %v3121_v39, 4  ;;  %v3142_v29 = vsel %vm240_vm0, %v2748_v17, 0.0 }
 0x309   : > { %v3130_v13 = vadd.f32 %v3129_v15, %v3128_v52  ;;  %v3143_v38 = vrot.slane %v3142_v29, 4  ;;  %v3135_v60 = vsel %vm240_vm0, %v2747_v30, 0.0  ;;  %v2527_v26 = vadd.f32 %v6167_v8, %v6304_v18  ;;  %v4971_v52 = vpop.f32.mrf.mxu1 }
 0x30a   : > { %v3111_v14 = vadd.f32 %v3110_v62, %v3109_v44  ;;  %v3123_v43 = vadd.f32 %v3122_v49, %v3121_v39  ;;  %v3136_v58 = vrot.slane %v3135_v60, 4  ;;  %v2750_v46 = vmul.f32 %v2686_v54, %v2622_v9  ;;  %v2690_v54 = vld [vmem:[%s6624_s1 + $0x1e8] sm:$0xff] }
 0x30b   : > { %v3131_v23 = vrot.slane %v3130_v13, 2  ;;  %v3144_v36 = vadd.f32 %v3143_v38, %v3142_v29  ;;  %v2542_v25 = vadd.f32 %v6167_v8, %v4965_v27  ;;  %v2621_v24 = vmax.f32 %v2527_v26, 0.0  ;;  %v2556_v38 = vpop.f32.mrf.mxu1 }
 0x30c   : > { %v3112_v5 = vrot.slane %v3111_v14, 1  ;;  %v3124_v53 = vrot.slane %v3123_v43, 2  ;;  %v3137_v48 = vadd.f32 %v3136_v58, %v3135_v60  ;;  %v3156_v22 = vsel %vm240_vm0, %v2750_v46, 0.0  ;;  %v2689_v58 = vld [vmem:[%s6624_s1 + $0x1e0] sm:$0xff] }
 0x30d   : > { %v3132_v47 = vadd.f32 %v3131_v23, %v3130_v13  ;;  %v3145_v18 = vrot.slane %v3144_v36, 2  ;;  %v2624_v55 = vmax.f32 %v2542_v25, 0.0  ;;  %v3157_v1 = vrot.slane %v3156_v22, 4 }
 0x30e   : > { %v3113_v42 = vadd.f32 %v3112_v5, %v3111_v14  ;;  %v3125_v41 = vadd.f32 %v3124_v53, %v3123_v43  ;;  %v3138_v27 = vrot.slane %v3137_v48, 2  ;;  %v2749_v40 = vmul.f32 %v2685_v35, %v2621_v24 }
 0x30f   : > { %v3133_v21 = vrot.slane %v3132_v47, 1  ;;  %v6362_v37 = vadd.f32 %v3145_v18, %v3144_v36  ;;  %v2752_v34 = vmul.f32 %v2688_v4, %v2624_v55  ;;  %v3313_v0 = vsel %vm3273_vm4, %v6283_v33, %v6288_v19  ;;  %v2691_v18 = vld [vmem:[%s6624_s1 + $0x1f0] sm:$0xff] }
 0x310   : > { %v3319_v57 = vsel %vm3271_vm3, %v3113_v42, %v3318_v20  ;;  %v3126_v28 = vrot.slane %v3125_v41, 1  ;;  %v3139_v10 = vadd.f32 %v3138_v27, %v3137_v48  ;;  %v3314_v59 = vsel %vm3275_vm5, %v6293_v51, %v3313_v0 }
 0x311   : > { %v3085_v7 = vadd.f32 %v3084_v56, %v6297_v6  ;;  %v3120_v12 = vadd.f32 %v3119_v63, %v6330_v2  ;;  %v3149_v32 = vsel %vm240_vm0, %v2749_v40, 0.0  ;;  %v3092_v31 = vadd.f32 %v3091_v61, %v6285_v3  ;;  %v2687_v3 = vld [vmem:[%s6624_s1 + $0x1d0] sm:$0xff] }
 0x312   : > { %v3134_v33 = vadd.f32 %v3133_v21, %v3132_v47  ;;  %v3158_v19 = vadd.f32 %v3157_v1, %v3156_v22  ;;  %v3150_v44 = vrot.slane %v3149_v32, 4  ;;  %v3147_v51 = vrot.slane %v6362_v37, 1  ;;  %v2692_v47 = vld [vmem:[%s6624_s1 + $0x1f8] sm:$0xff] }
 0x313   : > { %v3320_v17 = vsel %vm3273_vm4, %v3120_v12, %v3319_v57  ;;  %v3170_v15 = vsel %vm240_vm0, %v2752_v34, 0.0  ;;  %v2537_v6 = vadd.f32 %v6167_v8, %v2536_v45  ;;  %v3127_v56 = vadd.f32 %v3126_v28, %v3125_v41 }
 0x314   : > { %v3140_v2 = vrot.slane %v3139_v10, 1  ;;  %v3151_v63 = vadd.f32 %v3150_v44, %v3149_v32  ;;  %v3315_v61 = vsel %vm3277_vm6, %v6291_v11, %v3314_v59  ;;  %v3171_v39 = vrot.slane %v3170_v15, 4  ;;  %v5123_v11 = vld [vmem:[%s5286_s17 + $0x28] sm:$0xff] }
 0x315   : > { %v2623_v30 = vmax.f32 %v2537_v6, 0.0  ;;  %v3316_v20 = vsel %vm3279_vm7, %v3085_v7, %v3315_v61  ;;  %v2552_v62 = vadd.f32 %v6167_v8, %v4968_v50  ;;  %v3159_v49 = vrot.slane %v3158_v19, 2 }
 0x316   : > { %v3152_v29 = vrot.slane %v3151_v63, 2  ;;  %v3317_v45 = vsel %vm3281_vm8, %v3092_v31, %v3316_v20  ;;  %v2547_v13 = vadd.f32 %v6167_v8, %v2546_v16  ;;  %v3172_v60 = vadd.f32 %v3171_v39, %v3170_v15  ;;  %v5124_v39 = vld [vmem:[%s5286_s17 + $0x30] sm:$0xff] }
 0x317   : > { %v2751_v9 = vmul.f32 %v2687_v3, %v2623_v30  ;;  %v3345_v14 = vadd.f32 %v5123_v11, %v3317_v45  ;;  %v2626_v43 = vmax.f32 %v2552_v62, 0.0  ;;  %v3321_v26 = vsel %vm3275_vm5, %v3127_v56, %v3320_v17 }
 0x318   : > { %v3153_v50 = vadd.f32 %v3152_v29, %v3151_v63  ;;  %v2625_v23 = vmax.f32 %v2547_v13, 0.0  ;;  %v2562_v36 = vadd.f32 %v6167_v8, %v4971_v52  ;;  %v3173_v46 = vrot.slane %v3172_v60, 2 }
 0x319   : > { %v3163_v25 = vsel %vm240_vm0, %v2751_v9, 0.0  ;;  %4983 = vmatmul.mubr.msk.f32.gmra.mxu0 %vm240_vm0, %v3345_v14  ;;  %v2754_v5 = vmul.f32 %v2690_v54, %v2626_v43  ;;  %v2557_v53 = vadd.f32 %v6167_v8, %v2556_v38  ;;  %v3141_v48 = vadd.f32 %v3140_v2, %v3139_v10 }
 0x31a   : > { %v3164_v24 = vrot.slane %v3163_v25, 4  ;;  %v2753_v35 = vmul.f32 %v2689_v58, %v2625_v23  ;;  %v2628_v4 = vmax.f32 %v2562_v36, 0.0  ;;  %v3160_v22 = vadd.f32 %v3159_v49, %v3158_v19 }
 0x31b   : > { %v3154_v55 = vrot.slane %v3153_v50, 1  ;;  %v3184_v42 = vsel %vm240_vm0, %v2754_v5, 0.0  ;;  %v2627_v41 = vmax.f32 %v2557_v53, 0.0  ;;  %v3174_v27 = vadd.f32 %v3173_v46, %v3172_v60  ;;  %v5125_v53 = vld [vmem:[%s5286_s17 + $0x38] sm:$0xff]  ;;  %s4265_s17 = sshll.u32 %s218_s15, 4  ;;  %s4266_s17 = int_to_ptr.vmem [resolvable:$true] %s4265_s17 }
 0x31c   : > { %v3165_v1 = vadd.f32 %v3164_v24, %v3163_v25  ;;  %v3185_v8 = vrot.slane %v3184_v42, 4  ;;  %v3177_v16 = vsel %vm240_vm0, %v2753_v35, 0.0  ;;  %v2756_v40 = vmul.f32 %v2692_v47, %v2628_v4  ;;  %v4479_v24 = vld [vmem:[%s6627_s4 + $0x20] ss:$0 sm:$0xff]  ;;  %s5126_s30 = scalar_lea.vmem %s4266_s17, 128  ;;  %p5133_p0 = scmp.lt.s32.totalorder %s4266_s17, %s5131_s22 }
 0x31d   : > { %v3178_v21 = vrot.slane %v3177_v16, 4  ;;  %v2755_v34 = vmul.f32 %v2691_v18, %v2627_v41  ;;  %v3322_v0 = vsel %vm3277_vm6, %v3134_v33, %v3321_v26  ;;  %v3148_v57 = vadd.f32 %v3147_v51, %v6362_v37  ;;  %p5127_p11 = scmp.ne.s32.totalorder %s4266_s17, %s5126_s30  ;;  %p5134_p1 = scmp.lt.s32.totalorder %s5132_s7, %s5126_s30 }
 0x31e   : > { %v3166_v28 = vrot.slane %v3165_v1, 2  ;;  %v3186_v10 = vadd.f32 %v3185_v8, %v3184_v42  ;;  %v3323_v59 = vsel %vm3279_vm7, %v3141_v48, %v3322_v0  ;;  %v3161_v7 = vrot.slane %v3160_v22, 1 }
 0x31f   : > { %v3179_v12 = vadd.f32 %v3178_v21, %v3177_v16  ;;  %v3198_v32 = vsel %vm240_vm0, %v2756_v40, 0.0  ;;  %v3191_v31 = vsel %vm240_vm0, %v2755_v34, 0.0  ;;  %v3155_v15 = vadd.f32 %v3154_v55, %v3153_v50  ;;  %v3639_v21 = vld [vmem:[%s6626_s3 + $0x88] sm:$0xff]  ;;  %v3638_v40 = vld [vmem:[%s6626_s3 + $0x80] sm:$0xff]  ;;  %p5128_p12 = pnand %p5127_p11, %p5260_p5  ;;  %p5135_p2 = por %p5134_p1, %p5133_p0 }
 0x320   : > { %v3167_v19 = vadd.f32 %v3166_v28, %v3165_v1  ;;  %v3187_v44 = vrot.slane %v3186_v10, 2  ;;  %v3199_v52 = vrot.slane %v3198_v32, 4  ;;  %v3192_v17 = vrot.slane %v3191_v31, 4  ;;  %5008 = vmatprep.subr.mxu0 %v3639_v21 }
 0x321   : > { %v3175_v6 = vrot.slane %v3174_v27, 1  ;;  %v3180_v33 = vrot.slane %v3179_v12, 2  ;;  %v3324_v37 = vsel %vm3281_vm8, %v3148_v57, %v3323_v59  ;;  %v3162_v3 = vadd.f32 %v3161_v7, %v3160_v22  ;;  %5009 = vmatpush3.msra.mxu0 %v3639_v21  ;;  %p5129_p13 = pneg %p5128_p12 }
 0x322   : > { %v3168_v51 = vrot.slane %v3167_v19, 1  ;;  %v3188_v56 = vadd.f32 %v3187_v44, %v3186_v10  ;;  %v3200_v2 = vadd.f32 %v3199_v52, %v3198_v32  ;;  %v3193_v63 = vadd.f32 %v3192_v17, %v3191_v31  ;;  %5010 = vmatprep.subr.mxu0 %v3638_v40  ;;  %v4488_v52 = vld [vmem:[%s6627_s4 + $0x28] ss:$0 sm:$0xff] }
 0x323   : > { %v3181_v61 = vadd.f32 %v3180_v33, %v3179_v12  ;;  %v3346_v30 = vadd.f32 %v5124_v39, %v3324_v37  ;;  %v3325_v29 = vsel %vm3269_vm2, %v3162_v3, %v3155_v15  ;;  %v3176_v13 = vadd.f32 %v3175_v6, %v3174_v27  ;;  %5011 = vmatpush3.msra.mxu0 %v3638_v40  ;;  %p5136_p3 = pnand %p5135_p2, %p5129_p13 }
 0x324   : > { %v3169_v20 = vadd.f32 %v3168_v51, %v3167_v19  ;;  %v3201_v62 = vrot.slane %v3200_v2, 2  ;;  %v3194_v49 = vrot.slane %v3193_v63, 2  ;;  %v3189_v45 = vrot.slane %v3188_v56, 1 }
 0x325   : > { %v3182_v54 = vrot.slane %v3181_v61, 1  ;;  %4985 = vmatprep.mubr.msk.f32.mxu0 %vm240_vm0, %v3346_v30  ;;  %v3782_v30 = vld [vmem:[%s6626_s3 + $0x90] sm:$0xff]  ;;  %v5189_v40 = vmov 0.0  }
 0x326   : > { %v3326_v38 = vsel %vm3271_vm3, %v3169_v20, %v3325_v29  ;;  %v3202_v60 = vadd.f32 %v3201_v62, %v3200_v2  ;;  %v3195_v9 = vadd.f32 %v3194_v49, %v3193_v63  ;;  %v3190_v26 = vadd.f32 %v3189_v45, %v3188_v56  ;;  %5024 = vmatprep.subr.mxu1 %v3782_v30 }
 0x327   : > { %v3183_v11 = vadd.f32 %v3182_v54, %v3181_v61  ;;  %v3327_v14 = vsel %vm3273_vm4, %v3176_v13, %v3326_v38  ;;  %5038 = vmatprep.subr.mxu0 %v5189_v40 }
 0x328   : > { %v3203_v43 = vrot.slane %v3202_v60, 1  ;;  %v3196_v58 = vrot.slane %v3195_v9, 1 }
 0x329   : > { %v3328_v50 = vsel %vm3275_vm5, %v3183_v11, %v3327_v14 }
 0x32a   : > { %v3197_v23 = vadd.f32 %v3196_v58, %v3195_v9  ;;  %v3204_v36 = vadd.f32 %v3203_v43, %v3202_v60  ;;  %v3329_v46 = vsel %vm3277_vm6, %v3190_v26, %v3328_v50  ;;  %v4497_v43 = vld [vmem:[%s6627_s4 + $0x30] ss:$0 sm:$0xff] }
 0x32c   : > { %v3330_v25 = vsel %vm3279_vm7, %v3197_v23, %v3329_v46 }
 0x32d   : > { %v3331_v5 = vsel %vm3281_vm8, %v3204_v36, %v3330_v25 }
 0x32e   : > { %v3347_v48 = vadd.f32 %v5125_v53, %v3331_v5 }
 0x330   : > { %4986 = vmatmul.mubr.msk.f32.gmra.mxu0 %vm240_vm0, %v3347_v48 }
 0x37d   : > { %v4978_v35 = vpop.f32.mrf.mxu0 }
 0x37e   : > { %v3451_v4 = vadd.f32 %v4978_v35, %v4479_v24 }
 0x37f   : > { %v3445_v47 = vpop.f32.mrf.mxu0 }
 0x380   : > { %v3446_v18 = vadd.f32 %v4479_v24, %v3445_v47  ;;  %v3485_v55 = vmax.f32 %v3451_v4, 0.0 }
 0x382   : > { %v3484_v22 = vmax.f32 %v3446_v18, 0.0 }
 0x384   : > { %4996 = vmatprep.mubr.msk.f32.mxu1 %vm1339_vm1, %v3484_v22 }
 0x385   : > { %4997 = vmatmul.mubr.msk.f32.vlgmr.msra.gmra.mxu1 %vm1339_vm1, %v3485_v55 }
 0x386   : > { %5025 = vmatpush3.msra.mxu1 %v3782_v30 }
 0x387   : > { %5057 = vmatprep.subr.mxu1 %v5189_v40 }
 0x3ae   : > { %v4981_v42 = vpop.f32.mrf.mxu0 }
 0x3af   : > { %v3461_v41 = vadd.f32 %v4981_v42, %v4479_v24 }
 0x3b0   : > { %v3455_v27 = vpop.f32.mrf.mxu0 }
 0x3b1   : > { %v3456_v1 = vadd.f32 %v4479_v24, %v3455_v27  ;;  %v3487_v16 = vmax.f32 %v3461_v41, 0.0 }
 0x3b3   : > { %v3486_v8 = vmax.f32 %v3456_v1, 0.0 }
 0x3b5   : > { %4999 = vmatprep.mubr.msk.f32.mxu1 %vm1339_vm1, %v3486_v8 }
 0x3b6   : > { %5000 = vmatmul.mubr.msk.f32.gmra.mxu1 %vm1339_vm1, %v3487_v16 }
 0x3d9   : > { %v4984_v34 = vpop.f32.mrf.mxu0 }
 0x3da   : > { %v3471_v0 = vadd.f32 %v4984_v34, %v4479_v24  ;;  %v3993_v34 = vld [vmem:[%s6626_s3 + $0xd0] sm:$0xff] }
 0x3db   : > { %v3465_v57 = vpop.f32.mrf.mxu0 }
 0x3dc   : > { %v3466_v28 = vadd.f32 %v4479_v24, %v3465_v57  ;;  %v3489_v59 = vmax.f32 %v3471_v0, 0.0  ;;  %v3992_v0 = vld [vmem:[%s6626_s3 + $0xc8] sm:$0xff]  ;;  %v3991_v57 = vld [vmem:[%s6626_s3 + $0xc0] sm:$0xff] }
 0x3de   : > { %v3488_v10 = vmax.f32 %v3466_v28, 0.0  ;;  %v3990_v28 = vld [vmem:[%s6626_s3 + $0xb8] sm:$0xff] }
 0x3e0   : > { %5002 = vmatprep.mubr.msk.f32.mxu1 %vm1339_vm1, %v3488_v10  ;;  %v3989_v10 = vld [vmem:[%s6626_s3 + $0xb0] sm:$0xff] }
 0x3e1   : > { %5003 = vmatmul.mubr.msk.f32.gmra.mxu1 %vm1339_vm1, %v3489_v59  ;;  %v4090_v59 = vld [vmem:[%s6626_s3 + $0xf0] sm:$0xff] }
 0x3f0   : > { %v4987_v7 = vpop.f32.mrf.mxu0 }
 0x3f1   : > { %v3481_v12 = vadd.f32 %v4987_v7, %v4479_v24  ;;  %v4089_v7 = vld [vmem:[%s6626_s3 + $0xe8] sm:$0xff] }
 0x3f2   : > { %v3475_v32 = vpop.f32.mrf.mxu0 }
 0x3f3   : > { %v3476_v31 = vadd.f32 %v4479_v24, %v3475_v32  ;;  %v3491_v44 = vmax.f32 %v3481_v12, 0.0  ;;  %v3988_v12 = vld [vmem:[%s6626_s3 + $0xa8] sm:$0xff]  ;;  %v4088_v32 = vld [vmem:[%s6626_s3 + $0xe0] sm:$0xff] }
 0x3f5   : > { %v3490_v19 = vmax.f32 %v3476_v31, 0.0  ;;  %v3987_v31 = vld [vmem:[%s6626_s3 + $0xa0] sm:$0xff] }
 0x3f7   : > { %5005 = vmatprep.mubr.msk.f32.mxu1 %vm1339_vm1, %v3490_v19  ;;  %v3986_v19 = vld [vmem:[%s6626_s3 + $0x98] sm:$0xff] }
 0x3f8   : > { %5006 = vmatmul.mubr.msk.f32.gmra.mxu1 %vm1339_vm1, %v3491_v44 }
 0x445   : > { %v4998_v17 = vpop.f32.mrf.mxu1 }
 0x446   : > { %v3597_v15 = vadd.f32 %v4998_v17, %v4488_v52 }
 0x447   : > { %v3591_v6 = vpop.f32.mrf.mxu1 }
 0x448   : > { %v3592_v33 = vadd.f32 %v4488_v52, %v3591_v6  ;;  %v3631_v51 = vmax.f32 %v3597_v15, 0.0  ;;  %v3913_v15 = vld [vmem:[%s6625_s2] sm:$0xff] }
 0x44a   : > { %v3630_v37 = vmax.f32 %v3592_v33, 0.0  ;;  %v3914_v33 = vld [vmem:[%s6625_s2 + $0x8] sm:$0xff] }
 0x44c   : > { %5012 = vmatprep.mubr.msk.f32.mxu0 %vm240_vm0, %v3630_v37  ;;  %v3915_v37 = vld [vmem:[%s6625_s2 + $0x10] sm:$0xff] }
 0x44d   : > { %5013 = vmatmul.mubr.msk.f32.vlgmr.msra.gmra.mxu0 %vm240_vm0, %v3631_v51 }
 0x44e   : > { %5039 = vmatpush3.msra.mxu0 %v3993_v34 }
 0x44f   : > { %5040 = vmatprep.subr.mxu0 %v5189_v40 }
 0x450   : > { %5041 = vmatpush3.msra.mxu0 %v3992_v0 }
 0x451   : > { %5042 = vmatprep.subr.mxu0 %v5189_v40 }
 0x452   : > { %5043 = vmatpush3.msra.mxu0 %v3991_v57 }
 0x453   : > { %5044 = vmatprep.subr.mxu0 %v5189_v40 }
 0x454   : > { %5045 = vmatpush3.msra.mxu0 %v3990_v28 }
 0x455   : > { %5046 = vmatprep.subr.mxu0 %v5189_v40 }
 0x456   : > { %5047 = vmatpush3.msra.mxu0 %v3989_v10 }
 0x457   : > { %5048 = vmatprep.subr.mxu0 %v5189_v40 }
 0x458   : > { %5049 = vmatpush3.msra.mxu0 %v3988_v12 }
 0x459   : > { %5050 = vmatprep.subr.mxu0 %v5189_v40 }
 0x45a   : > { %5051 = vmatpush3.msra.mxu0 %v3987_v31 }
 0x45b   : > { %5052 = vmatprep.subr.mxu0 %v5189_v40 }
 0x45c   : > { %5053 = vmatpush3.msra.mxu0 %v3986_v19 }
 0x45d   : > { %5068 = vmatprep.subr.mxu0 %v5189_v40 }
 0x476   : > { %v5001_v56 = vpop.f32.mrf.mxu1 }
 0x477   : > { %v3607_v2 = vadd.f32 %v5001_v56, %v4488_v52 }
 0x478   : > { %v3601_v63 = vpop.f32.mrf.mxu1 }
 0x479   : > { %v3602_v3 = vadd.f32 %v4488_v52, %v3601_v63  ;;  %v3633_v39 = vmax.f32 %v3607_v2, 0.0 }
 0x47b   : > { %v3632_v61 = vmax.f32 %v3602_v3, 0.0 }
 0x47d   : > { %5015 = vmatprep.mubr.msk.f32.mxu0 %vm240_vm0, %v3632_v61  ;;  %v3917_v61 = vld [vmem:[%s6625_s2 + $0x20] sm:$0xff] }
 0x47e   : > { %5016 = vmatmul.mubr.msk.f32.gmra.mxu0 %vm240_vm0, %v3633_v39  ;;  %v3916_v39 = vld [vmem:[%s6625_s2 + $0x18] sm:$0xff] }
 0x4a1   : > { %v5004_v20 = vpop.f32.mrf.mxu1 }
 0x4a2   : > { %v3617_v62 = vadd.f32 %v5004_v20, %v4488_v52 }
 0x4a3   : > { %v3611_v49 = vpop.f32.mrf.mxu1 }
 0x4a4   : > { %v3612_v29 = vadd.f32 %v4488_v52, %v3611_v49  ;;  %v3635_v54 = vmax.f32 %v3617_v62, 0.0 }
 0x4a6   : > { %v3634_v45 = vmax.f32 %v3612_v29, 0.0 }
 0x4a8   : > { %5018 = vmatprep.mubr.msk.f32.mxu0 %vm240_vm0, %v3634_v45 }
 0x4a9   : > { %5019 = vmatmul.mubr.msk.f32.gmra.mxu0 %vm240_vm0, %v3635_v54  ;;  %v3918_v54 = vld [vmem:[%s6625_s2 + $0x28] sm:$0xff] }
 0x4b8   : > { %v5007_v13 = vpop.f32.mrf.mxu1 }
 0x4b9   : > { %v3627_v38 = vadd.f32 %v5007_v13, %v4488_v52 }
 0x4ba   : > { %v3621_v60 = vpop.f32.mrf.mxu1 }
 0x4bb   : > { %v3622_v9 = vadd.f32 %v4488_v52, %v3621_v60  ;;  %v3637_v14 = vmax.f32 %v3627_v38, 0.0 }
 0x4bd   : > { %v3636_v11 = vmax.f32 %v3622_v9, 0.0 }
 0x4bf   : > { %5021 = vmatprep.mubr.msk.f32.mxu0 %vm240_vm0, %v3636_v11 }
 0x4c0   : > { %5022 = vmatmul.mubr.msk.f32.gmra.mxu0 %vm240_vm0, %v3637_v14 }
 0x4c1   : > { %5054 = vmatprep.mubr.msk.f32.mxu0 %vm5190_vm10, %v5189_v40 }
 0x50d   : > { %v5014_v58 = vpop.f32.mrf.mxu0 }
 0x50e   : > { %v3741_v26 = vadd.f32 %v5014_v58, %v4497_v43 }
 0x50f   : > { %v3735_v50 = vpop.f32.mrf.mxu0 }
 0x510   : > { %v3736_v23 = vadd.f32 %v4497_v43, %v3735_v50  ;;  %v3775_v46 = vmax.f32 %v3741_v26, 0.0 }
 0x512   : > { %v3774_v36 = vmax.f32 %v3736_v23, 0.0 }
 0x514   : > { %5026 = vmatprep.mubr.msk.f32.mxu1 %vm3783_vm9, %v3774_v36 }
 0x515   : > { %5027 = vmatmul.mubr.msk.f32.vlgmr.msra.gmra.mxu1 %vm3783_vm9, %v3775_v46 }
 0x516   : > { %5058 = vmatpush3.msra.mxu1 %v4090_v59 }
 0x517   : > { %5059 = vmatprep.subr.mxu1 %v5189_v40 }
 0x518   : > { %5060 = vmatpush3.msra.mxu1 %v4089_v7 }
 0x519   : > { %5061 = vmatprep.subr.mxu1 %v5189_v40 }
 0x51a   : > { %5062 = vmatpush3.msra.mxu1 %v4088_v32 }
 0x51b   : > { %5063 = vmatprep.subr.mxu1 %v5189_v40 }
 0x53e   : > { %v5017_v25 = vpop.f32.mrf.mxu0 }
 0x53f   : > { %v3751_v5 = vadd.f32 %v5017_v25, %v4497_v43 }
 0x540   : > { %v3745_v53 = vpop.f32.mrf.mxu0 }
 0x541   : > { %v3746_v48 = vadd.f32 %v4497_v43, %v3745_v53  ;;  %v3777_v35 = vmax.f32 %v3751_v5, 0.0 }
 0x543   : > { %v3776_v24 = vmax.f32 %v3746_v48, 0.0 }
 0x545   : > { %5029 = vmatprep.mubr.msk.f32.mxu1 %vm3783_vm9, %v3776_v24 }
 0x546   : > { %5030 = vmatmul.mubr.msk.f32.gmra.mxu1 %vm3783_vm9, %v3777_v35 }
 0x569   : > { %v5020_v4 = vpop.f32.mrf.mxu0 }
 0x56a   : > { %v3761_v47 = vadd.f32 %v5020_v4, %v4497_v43 }
 0x56b   : > { %v3755_v18 = vpop.f32.mrf.mxu0 }
 0x56c   : > { %v3756_v22 = vadd.f32 %v4497_v43, %v3755_v18  ;;  %v3779_v42 = vmax.f32 %v3761_v47, 0.0  ;;  %v3920_v18 = vld [vmem:[%s6625_s2 + $0x38] sm:$0xff] }
 0x56e   : > { %v3778_v55 = vmax.f32 %v3756_v22, 0.0 }
 0x570   : > { %5032 = vmatprep.mubr.msk.f32.mxu1 %vm3783_vm9, %v3778_v55 }
 0x571   : > { %5033 = vmatmul.mubr.msk.f32.gmra.mxu1 %vm3783_vm9, %v3779_v42 }
 0x580   : > { %v5023_v41 = vpop.f32.mrf.mxu0 }
 0x581   : > { %v3771_v27 = vadd.f32 %v5023_v41, %v4497_v43  ;;  %v3919_v41 = vld [vmem:[%s6625_s2 + $0x30] sm:$0xff] }
 0x582   : > { %v3765_v1 = vpop.f32.mrf.mxu0 }
 0x583   : > { %v3766_v8 = vadd.f32 %v4497_v43, %v3765_v1  ;;  %v3781_v21 = vmax.f32 %v3771_v27, 0.0 }
 0x585   : > { %v3780_v16 = vmax.f32 %v3766_v8, 0.0 }
 0x587   : > { %5035 = vmatprep.mubr.msk.f32.mxu1 %vm3783_vm9, %v3780_v16 }
 0x588   : > { %5036 = vmatmul.mubr.msk.f32.gmra.mxu1 %vm3783_vm9, %v3781_v21 }
 0x589   : > { %5065 = vmatprep.mubr.msk.f32.mxu1 %vm5190_vm10, %v5189_v40 }
 0x5d5   : > { %v5028_v44 = vpop.f32.mrf.mxu1 }
 0x5d6   : > { %v3922_v2 = vmul.f32 %v5028_v44, %v3914_v33 }
 0x5d7   : > { %v3874_v52 = vpop.f32.mrf.mxu1 }
 0x5d8   : > { %v3921_v56 = vmul.f32 %v3913_v15, %v3874_v52  ;;  %v3937_v20 = vsel %vm3929_vm11, %v3922_v2, 0.0 }
 0x5d9   : > { %v3938_v13 = vrot.slane %v3937_v20, 4 }
 0x5da   : > { %v3930_v30 = vsel %vm3929_vm11, %v3921_v56, 0.0 }
 0x5db   : > { %v3931_v45 = vrot.slane %v3930_v30, 4  ;;  %v3939_v43 = vadd.f32 %v3938_v13, %v3937_v20 }
 0x5dd   : > { %v3932_v14 = vadd.f32 %v3931_v45, %v3930_v30  ;;  %v3940_v46 = vrot.slane %v3939_v43, 2 }
 0x5df   : > { %v3933_v36 = vrot.slane %v3932_v14, 2  ;;  %v3941_v35 = vadd.f32 %v3940_v46, %v3939_v43 }
 0x5e1   : > { %v3934_v24 = vadd.f32 %v3933_v36, %v3932_v14  ;;  %v3942_v8 = vrot.slane %v3941_v35, 1  ;;  %v4516_v36 = vld [vmem:[%s6627_s4 + $0x48] ss:$0 sm:$0xff] }
 0x5e3   : > { %v3935_v27 = vrot.slane %v3934_v24, 1  ;;  %v3943_v52 = vadd.f32 %v3942_v8, %v3941_v35 }
 0x5e5   : > { %v3936_v7 = vadd.f32 %v3935_v27, %v3934_v24 }
 0x606   : > { %v5031_v17 = vpop.f32.mrf.mxu1 }
 0x607   : > { %v3924_v29 = vmul.f32 %v5031_v17, %v3916_v39 }
 0x608   : > { %v3884_v6 = vpop.f32.mrf.mxu1 }
 0x609   : > { %v3923_v63 = vmul.f32 %v3915_v37, %v3884_v6  ;;  %v3951_v9 = vsel %vm3929_vm11, %v3924_v29, 0.0  ;;  %v4007_v37 = vsel %vm3269_vm2, %v3943_v52, %v3936_v7 }
 0x60a   : > { %v3952_v50 = vrot.slane %v3951_v9, 4 }
 0x60b   : > { %v3944_v62 = vsel %vm3929_vm11, %v3923_v63, 0.0 }
 0x60c   : > { %v3945_v38 = vrot.slane %v3944_v62, 4  ;;  %v3953_v53 = vadd.f32 %v3952_v50, %v3951_v9  ;;  %v4087_v9 = vld [vmem:[%s6626_s3 + $0xd8] sm:$0xff]  ;;  %v4171_v50 = vld [vmem:[%s6626_s3 + $0x100] sm:$0xff] }
 0x60d   : > { %5064 = vmatpush3.msra.mxu1 %v4087_v9 }
 0x60e   : > { %v3946_v58 = vadd.f32 %v3945_v38, %v3944_v62  ;;  %v3954_v22 = vrot.slane %v3953_v53, 2 }
 0x610   : > { %v3947_v25 = vrot.slane %v3946_v58, 2  ;;  %v3955_v0 = vadd.f32 %v3954_v22, %v3953_v53 }
 0x612   : > { %v3948_v4 = vadd.f32 %v3947_v25, %v3946_v58  ;;  %v3956_v17 = vrot.slane %v3955_v0, 1 }
 0x614   : > { %v3949_v16 = vrot.slane %v3948_v4, 1 }
 0x616   : > { %v3950_v32 = vadd.f32 %v3949_v16, %v3948_v4 }
 0x631   : > { %v5034_v51 = vpop.f32.mrf.mxu1 }
 0x632   : > { %v3926_v11 = vmul.f32 %v5034_v51, %v3918_v54  ;;  %v4008_v51 = vsel %vm3271_vm3, %v3950_v32, %v4007_v37 }
 0x633   : > { %v3894_v3 = vpop.f32.mrf.mxu1 }
 0x634   : > { %v3925_v49 = vmul.f32 %v3917_v61, %v3894_v3  ;;  %v3965_v23 = vsel %vm3929_vm11, %v3926_v11, 0.0  ;;  %v3957_v3 = vadd.f32 %v3956_v17, %v3955_v0  ;;  %v4514_v11 = vld [vmem:[%s6627_s4 + $0x40] ss:$0 sm:$0xff] }
 0x635   : > { %v3966_v48 = vrot.slane %v3965_v23, 4 }
 0x636   : > { %v3958_v60 = vsel %vm3929_vm11, %v3925_v49, 0.0  ;;  %v4009_v30 = vsel %vm3273_vm4, %v3957_v3, %v4008_v51 }
 0x637   : > { %v3959_v26 = vrot.slane %v3958_v60, 4  ;;  %v3967_v55 = vadd.f32 %v3966_v48, %v3965_v23  ;;  %v4170_v23 = vld [vmem:[%s6626_s3 + $0xf8] sm:$0xff]  ;;  %v4518_v48 = vld [vmem:[%s6627_s4 + $0x50] ss:$0 sm:$0xff] }
 0x639   : > { %v3960_v5 = vadd.f32 %v3959_v26, %v3958_v60  ;;  %v3968_v57 = vrot.slane %v3967_v55, 2 }
 0x63b   : > { %v3961_v47 = vrot.slane %v3960_v5, 2  ;;  %v3969_v15 = vadd.f32 %v3968_v57, %v3967_v55 }
 0x63d   : > { %v3962_v21 = vadd.f32 %v3961_v47, %v3960_v5  ;;  %v3970_v61 = vrot.slane %v3969_v15, 1 }
 0x63f   : > { %v3963_v31 = vrot.slane %v3962_v21, 1  ;;  %v3971_v29 = vadd.f32 %v3970_v61, %v3969_v15 }
 0x641   : > { %v3964_v56 = vadd.f32 %v3963_v31, %v3962_v21 }
 0x643   : > { %v4010_v62 = vsel %vm3275_vm5, %v3964_v56, %v4009_v30 }
 0x644   : > { %v4011_v13 = vsel %vm3277_vm6, %v3971_v29, %v4010_v62 }
 0x648   : > { %v5037_v42 = vpop.f32.mrf.mxu1 }
 0x649   : > { %v3928_v1 = vmul.f32 %v5037_v42, %v3920_v18 }
 0x64a   : > { %v3904_v34 = vpop.f32.mrf.mxu1 }
 0x64b   : > { %v3979_v28 = vsel %vm3929_vm11, %v3928_v1, 0.0  ;;  %v3927_v10 = vmul.f32 %v3919_v41, %v3904_v34 }
 0x64c   : > { %v3980_v59 = vrot.slane %v3979_v28, 4 }
 0x64d   : > { %v3972_v12 = vsel %vm3929_vm11, %v3927_v10, 0.0 }
 0x64e   : > { %v3981_v19 = vadd.f32 %v3980_v59, %v3979_v28  ;;  %v3973_v44 = vrot.slane %v3972_v12, 4 }
 0x650   : > { %v3982_v6 = vrot.slane %v3981_v19, 2  ;;  %v3974_v33 = vadd.f32 %v3973_v44, %v3972_v12 }
 0x652   : > { %v3983_v2 = vadd.f32 %v3982_v6, %v3981_v19  ;;  %v3975_v63 = vrot.slane %v3974_v33, 2 }
 0x654   : > { %v3976_v39 = vadd.f32 %v3975_v63, %v3974_v33  ;;  %v3984_v20 = vrot.slane %v3983_v2, 1 }
 0x656   : > { %v3977_v49 = vrot.slane %v3976_v39, 1  ;;  %v3985_v54 = vadd.f32 %v3984_v20, %v3983_v2 }
 0x658   : > { %v3978_v45 = vadd.f32 %v3977_v49, %v3976_v39 }
 0x65a   : > { %v4012_v38 = vsel %vm3279_vm7, %v3978_v45, %v4011_v13 }
 0x65b   : > { %v4013_v60 = vsel %vm3281_vm8, %v3985_v54, %v4012_v38 }
 0x65c   : > { %5055 = vmatmul.mubr.msk.f32.vlgmr.msra.gmra.mxu0 %vm3929_vm11, %v4013_v60 }
 0x65d   : > { %5072 = vmatprep.mubr.msk.f32.mxu0 %vm5190_vm10, %v5189_v40  ;;  %5069 = vmatpush3.msra.mxu0 %v4171_v50 }
 0x65e   : > { %5070 = vmatprep.subr.mxu0 %v5189_v40 }
 0x65f   : > { %5071 = vmatpush3.msra.mxu0 %v4170_v23 }
 0x71c   : > { %v4082_v14 = vpop.f32.mrf.mxu0 }
 0x71d   : > { %v4083_v43 = vadd.f32 %v4514_v11, %v4082_v14 }
 0x71e   : > { %v5056_v58 = vpop.f32.mrf.mxu0 }
 0x71f   : > { %v4086_v26 = vmax.f32 %v4083_v43, 0.0 }
 0x721   : > { %5066 = vmatmul.mubr.msk.f32.vlgmr.msra.gmra.mxu1 %vm1339_vm1, %v4086_v26 }
 0x7e1   : > { %v4165_v46 = vpop.f32.mrf.mxu1 }
 0x7e2   : > { %v4166_v25 = vadd.f32 %v4516_v36, %v4165_v46 }
 0x7e3   : > { %v5067_v5 = vpop.f32.mrf.mxu1 }
 0x7e4   : > { %v4169_v53 = vmax.f32 %v4166_v25, 0.0 }
 0x7e6   : > { %5073 = vmatmul.mubr.msk.f32.vlgmr.msra.gmra.mxu0 %vm240_vm0, %v4169_v53 }
 0x8a6   : > { %v4246_v40 = vpop.f32.mrf.mxu0 }
 0x8a7   : > { %v4247_v24 = vadd.f32 %v4518_v48, %v4246_v40 }
 0x8a8   : > { %v5074_v35 = vpop.f32.mrf.mxu0 }
 0x8a9   : > { %4250 = vst [vmem:[%s218_s15] sm:$0xff] %v4247_v24 }
 0x8aa   : > { %5139 = shalt.err (!%p5136_p3)
}
 0x8ab   : > { %s5140_s8 = scalar_lea.hbm %s6588_s25, 128  ;;  %s5144_s11 = scalar_lea.hbm %s6628_s5, 256 }
 0x8ac   : > { %p5141_p4 = scmp.ne.s32.totalorder %s6588_s25, %s5140_s8  ;;  %p5145_p9 = scmp.lt.s32.totalorder %s6588_s25, %s6628_s5 }
 0x8ad   : > { %p5146_p10 = scmp.lt.s32.totalorder %s5144_s11, %s5140_s8 }
 0x8ae   : > { %p5142_p7 = pnand %p5141_p4, %p5260_p5 }
 0x8af   : > { %p5147_p11 = por %p5146_p10, %p5145_p9 }
 0x8b0   : > { %p5143_p8 = pneg %p5142_p7 }
 0x8b2   : > { %p5148_p12 = pnand %p5147_p11, %p5143_p8 }
 0x8b4   : > { %5151 = shalt.err (!%p5148_p12)
}
 0x8b5   : > { %5075 = dma.vmem_to_hbm [thread:$0]  (%p5260_p5), %s4266_s17, 128, %s6588_s25, %s4252_s26  }
 0x8b6 PF: > { %p5081_p13 = scmp.ge.s32.totalorder %s5186_s21, 2  ;;  %s4277_s14 = sand.u32 1, %s5174_s18  }
 0x8b7   : > { %s4278_s15 = scalar_lea.sflag [#allocation3], %s4277_s14 }
 0x8b8   : > { %p5078_p0 = pnand %p5081_p13, %p5264_p6 }
 0x8ba   : > { %p5079_p1 = pneg %p5078_p0 }
 0x8bc   : > { %5169 = dma.done.wait (%p5079_p1), %s4278_s15, 128  }
 0x8bd   : > { %5171 = vsyncadd (%p5079_p1), %s4278_s15, 4294967168  ;;  %p15_p2 = scmp.ge.s32.totalorder %s5247_s24, 4   ;;  %s6631_s18 = smov %s5178_s19 }
 0x8be   : > { %s6632_s19 = smov %s5182_s20  ;;  %s6633_s20 = smov %s5258_s27 }
 0x8bf   : > { %s6634_s21 = smov %s5247_s24  ;;  %17 = sbr.rel (!%p15_p2) target bundleno = 3 (0x3), region = 75 }
 0x8c4   :  { %4283 = vsyncpa [#allocation3], 1 }
 0x8c5   :  { %4285 = vsyncpa [#allocation3 + $0x1], 1 }

</bundles_post_ra>
